<compile_context>
chip_gen: v6e
topology: v6e:2x2x1
jax: 0.10.0
libtpu: 0.0.40
codegen_flags: <defaults>
</compile_context>

<pallas_src>
import functools

import jax
import jax.numpy as jnp
from jax.experimental import pallas as pl
from jax.experimental.pallas import tpu as pltpu

EPS = 1e-5
_VMEM_LIMIT = 48 * 1024 * 1024  # keep double-buffered tiles well under v7x's 64 MiB


def _round_up(x, m):
    return (x + m - 1) // m * m


# ----------------------------------------------------------------------------- kernels
def _matmul_stats_kernel(x_ref, w_ref, y_ref, sum_ref, sq_ref):
    """One M-tile: folded-tap matmul + per-tile per-channel sum / sum-of-squares."""
    y = jnp.dot(x_ref[...], w_ref[...], preferred_element_type=jnp.float32)
    y_ref[...] = y
    sum_ref[...] = jnp.sum(y, axis=0, keepdims=True)
    sq_ref[...] = jnp.sum(y * y, axis=0, keepdims=True)


def _matmul_tanh_kernel(x_ref, w_ref, o_ref):
    """Final layer: folded matmul with fused tanh epilogue (no BN, no gamma/beta)."""
    o_ref[...] = jnp.tanh(
        jnp.dot(x_ref[...], w_ref[...], preferred_element_type=jnp.float32))


def _bn_relu_kernel(y_ref, scale_ref, shift_ref, o_ref):
    """Elementwise BN(scale/shift) + ReLU over one M-tile."""
    o_ref[...] = jnp.maximum(y_ref[...] * scale_ref[...] + shift_ref[...], 0.0)


# -------------------------------------------------------------------------- layer call
def fused_convt_layer(x_cols, w_mat, gamma, beta, mode, use_pallas=True, tile_m=256):
    """x_cols: (M, K*K*Cin) bf16-castable, w_mat: (K*K*Cin, Cout).  Returns (M, Cout) f32."""
    M, Kd = x_cols.shape
    Cout = w_mat.shape[1]
    Coutp = _round_up(Cout, 128)          # lane-dense output stores + full MXU columns
    tm = min(tile_m, _round_up(M, 8))     # M tile (multiple of 8 sublanes)
    Mp = _round_up(M, tm)
    T = Mp // tm

    x_p = jnp.pad(x_cols, ((0, Mp - M), (0, 0))).astype(jnp.bfloat16)
    w_p = jnp.pad(w_mat, ((0, 0), (0, Coutp - Cout))).astype(jnp.bfloat16)

    cparams = pltpu.CompilerParams(
        dimension_semantics=("parallel",),   # independent M tiles -> megacore on v7x
        vmem_limit_bytes=_VMEM_LIMIT,
    )

    if mode == "tanh":
        if use_pallas:
            y = pl.pallas_call(
                _matmul_tanh_kernel,
                out_shape=jax.ShapeDtypeStruct((Mp, Coutp), jnp.float32),
                grid_spec=pltpu.PrefetchScalarGridSpec(
                    num_scalar_prefetch=0,
                    grid=(T,),
                    in_specs=[
                        pl.BlockSpec((tm, Kd), lambda i: (i, 0)),
                        pl.BlockSpec((Kd, Coutp), lambda i: (0, 0)),
                    ],
                    out_specs=pl.BlockSpec((tm, Coutp), lambda i: (i, 0)),
                ),
                compiler_params=cparams,
            )(x_p, w_p)
        else:
            y = jnp.tanh(jnp.dot(x_p, w_p, preferred_element_type=jnp.float32))
        return y[:M, :Cout]

    # ----- bn_relu: pass 1 = matmul + partial stats, finalize stats, pass 2 = apply
    gamma_p = jnp.pad(gamma.astype(jnp.float32), (0, Coutp - Cout))
    beta_p = jnp.pad(beta.astype(jnp.float32), (0, Coutp - Cout))

    if use_pallas:
        y, s1, s2 = pl.pallas_call(
            _matmul_stats_kernel,
            out_shape=(
                jax.ShapeDtypeStruct((Mp, Coutp), jnp.float32),
                jax.ShapeDtypeStruct((T, 1, Coutp), jnp.float32),
                jax.ShapeDtypeStruct((T, 1, Coutp), jnp.float32),
            ),
            grid_spec=pltpu.PrefetchScalarGridSpec(
                num_scalar_prefetch=0,
                grid=(T,),
                in_specs=[
                    pl.BlockSpec((tm, Kd), lambda i: (i, 0)),
                    pl.BlockSpec((Kd, Coutp), lambda i: (0, 0)),
                ],
                out_specs=(
                    pl.BlockSpec((tm, Coutp), lambda i: (i, 0)),
                    pl.BlockSpec((None, 1, Coutp), lambda i: (i, 0, 0)),
                    pl.BlockSpec((None, 1, Coutp), lambda i: (i, 0, 0)),
                ),
            ),
            compiler_params=cparams,
        )(x_p, w_p)
    else:
        y = jnp.dot(x_p, w_p, preferred_element_type=jnp.float32)
        s1 = jnp.sum(y.reshape(T, tm, Coutp), axis=1, keepdims=True)
        s2 = jnp.sum(jnp.square(y).reshape(T, tm, Coutp), axis=1, keepdims=True)

    # Tiny (T, Coutp) finalize in JAX: batch mean / biased variance over the TRUE M rows
    # (zero-padded rows contribute nothing to the partial sums).
    mean = jnp.sum(s1, axis=(0, 1)) / M
    var = jnp.maximum(jnp.sum(s2, axis=(0, 1)) / M - mean * mean, 0.0)
    inv = jax.lax.rsqrt(var + EPS)
    scale = (gamma_p * inv).reshape(1, Coutp)
    shift = (beta_p - mean * gamma_p * inv).reshape(1, Coutp)

    if use_pallas:
        out = pl.pallas_call(
            _bn_relu_kernel,
            out_shape=jax.ShapeDtypeStruct((Mp, Coutp), jnp.float32),
            grid_spec=pltpu.PrefetchScalarGridSpec(
                num_scalar_prefetch=0,
                grid=(T,),
                in_specs=[
                    pl.BlockSpec((tm, Coutp), lambda i: (i, 0)),
                    pl.BlockSpec((1, Coutp), lambda i: (0, 0)),
                    pl.BlockSpec((1, Coutp), lambda i: (0, 0)),
                ],
                out_specs=pl.BlockSpec((tm, Coutp), lambda i: (i, 0)),
            ),
            compiler_params=cparams,
        )(y, scale, shift)
    else:
        out = jnp.maximum(y * scale + shift, 0.0)
    return out[:M, :Cout]


# --------------------------------------------------------------------------- JAX glue
def conv_transpose_im2col(x_nhwc, w, stride, padding):
    """ConvTranspose2d as a regular conv on a zero-dilated, padded input, with all
    K*K taps folded into one (M, K*K*Cin) im2col matrix (single deep matmul).

    x_nhwc : (N, H, W, Cin)   w : PyTorch layout (Cin, Cout, K, K)
    returns x_cols (N*Ho*Wo, K*K*Cin) bf16, w_mat (K*K*Cin, Cout), Ho
    """
    x_nhwc = x_nhwc.astype(jnp.bfloat16)   # halve HBM bytes of the im2col expansion
    N, H, W, Cin = x_nhwc.shape
    _, Cout, K, _ = w.shape
    # Equivalent regular-conv weight: spatially flipped, (K, K, Cin, Cout).
    w_flip = jnp.transpose(w[:, :, ::-1, ::-1], (2, 3, 0, 1))
    Ho = (H - 1) * stride - 2 * padding + K
    Wo = (W - 1) * stride - 2 * padding + K
    pad = K - 1 - padding
    Hd = (H - 1) * stride + 1
    Wd = (W - 1) * stride + 1
    # TODO(synk): for stride=2 layers, decompose into 4 parity sub-convolutions
    # (pixel-shuffle form) to skip the ~75% structural zeros in x_dil.
    x_dil = jnp.zeros((N, Hd, Wd, Cin), x_nhwc.dtype)
    x_dil = x_dil.at[:, ::stride, ::stride, :].set(x_nhwc)
    x_pad = jnp.pad(x_dil, ((0, 0), (pad, pad), (pad, pad), (0, 0)))
    cols = [x_pad[:, kh:kh + Ho, kw:kw + Wo, :]
            for kh in range(K) for kw in range(K)]
    x_cols = jnp.concatenate(cols, axis=-1).reshape(N * Ho * Wo, K * K * Cin)
    w_mat = w_flip.reshape(K * K * Cin, Cout)
    return x_cols, w_mat, Ho


def generator_forward(x_nchw, params, use_pallas=True):
    """DCGAN generator forward. x_nchw: (N, nz, 1, 1) -> (N, nc, 32, 32)."""
    x = jnp.transpose(x_nchw, (0, 2, 3, 1)).astype(jnp.float32)  # NCHW -> NHWC
    N = x.shape[0]
    layer_cfg = [  # (name, stride, padding, epilogue)
        ("conv1", 1, 0, "bn_relu"),
        ("conv2", 2, 1, "bn_relu"),
        ("conv3", 2, 1, "bn_relu"),
        ("conv4", 2, 1, "bn_relu"),
        ("conv5", 1, 0, "tanh"),
    ]
    for name, stride, padding, mode in layer_cfg:
        w = params[name + "_w"]
        Cout = w.shape[1]
        x_cols, w_mat, Ho = conv_transpose_im2col(x, w, stride, padding)
        gamma = params.get(name + "_gamma", None)
        beta = params.get(name + "_beta", None)
        y = fused_convt_layer(x_cols, w_mat, gamma, beta, mode, use_pallas=use_pallas)
        x = y.reshape(N, Ho, Ho, Cout)
    return jnp.transpose(x, (0, 3, 1, 2))  # NHWC -> NCHW


def init_params(key, nz, ngf, nc):
    """Deterministic DCGAN-style init (conv ~ N(0, 0.02), bn gamma ~ N(1, 0.02), beta 0)."""
    shapes = {
        "conv1_w": (nz, ngf * 8, 4, 4),
        "conv2_w": (ngf * 8, ngf * 4, 4, 4),
        "conv3_w": (ngf * 4, ngf * 2, 4, 4),
        "conv4_w": (ngf * 2, ngf, 4, 4),
        "conv5_w": (ngf, nc, 1, 1),
    }
    params = {}
    for i, (name, shp) in enumerate(shapes.items()):
        params[name] = 0.02 * jax.random.normal(
            jax.random.fold_in(key, i), shp, jnp.float32)
    for i, (name, ch) in enumerate(
            [("conv1", ngf * 8), ("conv2", ngf * 4), ("conv3", ngf * 2), ("conv4", ngf)]):
        params[name + "_gamma"] = 1.0 + 0.02 * jax.random.normal(
            jax.random.fold_in(key, 100 + i), (ch,), jnp.float32)
        params[name + "_beta"] = jnp.zeros((ch,), jnp.float32)
    return params


if __name__ == "__main__":
    batch, nz, ngf, nc = 2, 16, 8, 3   # small shapes consistent with generator(nc, nz, ngf)
    key = jax.random.PRNGKey(0)
    params = init_params(key, nz, ngf, nc)
    x = jax.random.normal(jax.random.fold_in(key, 999), (batch, nz, 1, 1), jnp.float32)

    fwd_pallas = jax.jit(functools.partial(generator_forward, use_pallas=True))
    fwd_ref = jax.jit(functools.partial(generator_forward, use_pallas=False))

    out = jax.block_until_ready(fwd_pallas(x, params))
    ref = jax.block_until_ready(fwd_ref(x, params))

    assert out.shape == (batch, nc, 32, 32), out.shape
    assert bool(jnp.all(jnp.isfinite(out)))
    assert bool(jnp.allclose(out, ref, atol=2e-2, rtol=2e-2))
    print("KERNEL_OK")
</pallas_src>

<mosaic_0001>
module attributes {stable_mosaic.version = 11 : i64} {
  func.func @_matmul_stats_kernel(%arg0: i32, %arg1: memref<32x256xbf16, #tpu.memory_space<vmem>>, %arg2: memref<256x128xbf16, #tpu.memory_space<vmem>>, %arg3: memref<32x128xf32, #tpu.memory_space<vmem>>, %arg4: memref<1x1x128xf32, #tpu.memory_space<vmem>>, %arg5: memref<1x1x128xf32, #tpu.memory_space<vmem>>) attributes {dimension_semantics = [#tpu.dimension_semantics<parallel>], iteration_bounds = array<i64: 1>, scalar_prefetch = 0 : i64, scratch_operands = 0 : i64, tpu.core_type = #tpu.core_type<tc>, window_params = [{transform_indices = @transform_0, window_bounds = array<i64: 32, 256>}, {pipeline_mode = #tpu.pipeline_mode<synchronous>, transform_indices = @transform_1, window_bounds = array<i64: 256, 128>}, {transform_indices = @transform_2, window_bounds = array<i64: 32, 128>}, {transform_indices = @transform_3, window_bounds = array<i64: 1, 1, 128>}, {transform_indices = @transform_4, window_bounds = array<i64: 1, 1, 128>}]} {
    %c0 = arith.constant 0 : index
    %c0_0 = arith.constant 0 : index
    %0 = vector.load %arg1[%c0, %c0_0] : memref<32x256xbf16, #tpu.memory_space<vmem>>, vector<32x256xbf16>
    %c0_1 = arith.constant 0 : index
    %c0_2 = arith.constant 0 : index
    %1 = vector.load %arg2[%c0_1, %c0_2] : memref<256x128xbf16, #tpu.memory_space<vmem>>, vector<256x128xbf16>
    %cst = arith.constant dense<0.000000e+00> : vector<32x128xf32>
    %2 = tpu.matmul %0, %1, %cst {dimension_numbers = #tpu.dot_dimension_numbers<[1], [0], [0], [1], [0, 0, 1, 1], [], []>} : vector<32x256xbf16>, vector<256x128xbf16>, vector<32x128xf32> -> vector<32x128xf32>
    %c0_3 = arith.constant 0 : index
    %c0_4 = arith.constant 0 : index
    %3 = vector.load %arg3[%c0_3, %c0_4] : memref<32x128xf32, #tpu.memory_space<vmem>>, vector<32x128xf32>
    tpu.vector_store %arg3[%c0_3, %c0_4], %2 {strides = array<i32>} : memref<32x128xf32, #tpu.memory_space<vmem>>, vector<32x128xf32>,
    %cst_5 = arith.constant dense<0.000000e+00> : vector<128xf32>
    %4 = vector.multi_reduction <add>, %2, %cst_5 [0] : vector<32x128xf32> to vector<128xf32>
    %5 = vector.shape_cast %4 : vector<128xf32> to vector<1x128xf32>
    %c0_6 = arith.constant 0 : index
    %c0_7 = arith.constant 0 : index
    %c0_8 = arith.constant 0 : index
    %6 = vector.load %arg4[%c0_6, %c0_7, %c0_8] : memref<1x1x128xf32, #tpu.memory_space<vmem>>, vector<1x1x128xf32>
    %7 = vector.shape_cast %6 : vector<1x1x128xf32> to vector<1x128xf32>
    %8 = vector.shape_cast %5 : vector<1x128xf32> to vector<1x1x128xf32>
    tpu.vector_store %arg4[%c0_6, %c0_7, %c0_8], %8 {strides = array<i32>} : memref<1x1x128xf32, #tpu.memory_space<vmem>>, vector<1x1x128xf32>,
    %9 = arith.mulf %2, %2 : vector<32x128xf32>
    %cst_9 = arith.constant dense<0.000000e+00> : vector<128xf32>
    %10 = vector.multi_reduction <add>, %9, %cst_9 [0] : vector<32x128xf32> to vector<128xf32>
    %11 = vector.shape_cast %10 : vector<128xf32> to vector<1x128xf32>
    %c0_10 = arith.constant 0 : index
    %c0_11 = arith.constant 0 : index
    %c0_12 = arith.constant 0 : index
    %12 = vector.load %arg5[%c0_10, %c0_11, %c0_12] : memref<1x1x128xf32, #tpu.memory_space<vmem>>, vector<1x1x128xf32>
    %13 = vector.shape_cast %12 : vector<1x1x128xf32> to vector<1x128xf32>
    %14 = vector.shape_cast %11 : vector<1x128xf32> to vector<1x1x128xf32>
    tpu.vector_store %arg5[%c0_10, %c0_11, %c0_12], %14 {strides = array<i32>} : memref<1x1x128xf32, #tpu.memory_space<vmem>>, vector<1x1x128xf32>,
    return
  }
  func.func @transform_0(%arg0: i32) -> (i32, i32) {
    %c0_i32 = arith.constant 0 : i32
    %c0_i32_0 = arith.constant 0 : i32
    return %arg0, %c0_i32 : i32, i32
  }
  func.func @transform_1(%arg0: i32) -> (i32, i32) {
    %c0_i32 = arith.constant 0 : i32
    %c0_i32_0 = arith.constant 0 : i32
    %c0_i32_1 = arith.constant 0 : i32
    return %c0_i32, %c0_i32_0 : i32, i32
  }
  func.func @transform_2(%arg0: i32) -> (i32, i32) {
    %c0_i32 = arith.constant 0 : i32
    %c0_i32_0 = arith.constant 0 : i32
    return %arg0, %c0_i32 : i32, i32
  }
  func.func @transform_3(%arg0: i32) -> (i32, i32, i32) {
    %c0_i32 = arith.constant 0 : i32
    %c0_i32_0 = arith.constant 0 : i32
    %c0_i32_1 = arith.constant 0 : i32
    return %arg0, %c0_i32, %c0_i32_0 : i32, i32, i32
  }
  func.func @transform_4(%arg0: i32) -> (i32, i32, i32) {
    %c0_i32 = arith.constant 0 : i32
    %c0_i32_0 = arith.constant 0 : i32
    %c0_i32_1 = arith.constant 0 : i32
    return %arg0, %c0_i32, %c0_i32_0 : i32, i32, i32
  }
}

module attributes {stable_mosaic.version = 11 : i64} {
  func.func @_bn_relu_kernel(%arg0: i32, %arg1: memref<32x128xf32, #tpu.memory_space<vmem>>, %arg2: memref<1x128xf32, #tpu.memory_space<vmem>>, %arg3: memref<1x128xf32, #tpu.memory_space<vmem>>, %arg4: memref<32x128xf32, #tpu.memory_space<vmem>>) attributes {dimension_semantics = [#tpu.dimension_semantics<parallel>], iteration_bounds = array<i64: 1>, scalar_prefetch = 0 : i64, scratch_operands = 0 : i64, tpu.core_type = #tpu.core_type<tc>, window_params = [{transform_indices = @transform_0, window_bounds = array<i64: 32, 128>}, {pipeline_mode = #tpu.pipeline_mode<synchronous>, transform_indices = @transform_1, window_bounds = array<i64: 1, 128>}, {pipeline_mode = #tpu.pipeline_mode<synchronous>, transform_indices = @transform_2, window_bounds = array<i64: 1, 128>}, {transform_indices = @transform_3, window_bounds = array<i64: 32, 128>}]} {
    %c0 = arith.constant 0 : index
    %c0_0 = arith.constant 0 : index
    %0 = vector.load %arg1[%c0, %c0_0] : memref<32x128xf32, #tpu.memory_space<vmem>>, vector<32x128xf32>
    %c0_1 = arith.constant 0 : index
    %c0_2 = arith.constant 0 : index
    %1 = vector.load %arg2[%c0_1, %c0_2] : memref<1x128xf32, #tpu.memory_space<vmem>>, vector<1x128xf32>
    %2 = vector.broadcast %1 : vector<1x128xf32> to vector<32x128xf32>
    %3 = arith.mulf %0, %2 : vector<32x128xf32>
    %c0_3 = arith.constant 0 : index
    %c0_4 = arith.constant 0 : index
    %4 = vector.load %arg3[%c0_3, %c0_4] : memref<1x128xf32, #tpu.memory_space<vmem>>, vector<1x128xf32>
    %5 = vector.broadcast %4 : vector<1x128xf32> to vector<32x128xf32>
    %6 = arith.addf %3, %5 : vector<32x128xf32>
    %cst = arith.constant 0.000000e+00 : f32
    %7 = vector.broadcast %cst : f32 to vector<32x128xf32>
    %8 = arith.maximumf %6, %7 : vector<32x128xf32>
    %c0_5 = arith.constant 0 : index
    %c0_6 = arith.constant 0 : index
    %9 = vector.load %arg4[%c0_5, %c0_6] : memref<32x128xf32, #tpu.memory_space<vmem>>, vector<32x128xf32>
    tpu.vector_store %arg4[%c0_5, %c0_6], %8 {strides = array<i32>} : memref<32x128xf32, #tpu.memory_space<vmem>>, vector<32x128xf32>,
    return
  }
  func.func @transform_0(%arg0: i32) -> (i32, i32) {
    %c0_i32 = arith.constant 0 : i32
    %c0_i32_0 = arith.constant 0 : i32
    return %arg0, %c0_i32 : i32, i32
  }
  func.func @transform_1(%arg0: i32) -> (i32, i32) {
    %c0_i32 = arith.constant 0 : i32
    %c0_i32_0 = arith.constant 0 : i32
    %c0_i32_1 = arith.constant 0 : i32
    return %c0_i32, %c0_i32_0 : i32, i32
  }
  func.func @transform_2(%arg0: i32) -> (i32, i32) {
    %c0_i32 = arith.constant 0 : i32
    %c0_i32_0 = arith.constant 0 : i32
    %c0_i32_1 = arith.constant 0 : i32
    return %c0_i32, %c0_i32_0 : i32, i32
  }
  func.func @transform_3(%arg0: i32) -> (i32, i32) {
    %c0_i32 = arith.constant 0 : i32
    %c0_i32_0 = arith.constant 0 : i32
    return %arg0, %c0_i32 : i32, i32
  }
}

module attributes {stable_mosaic.version = 11 : i64} {
  func.func @_matmul_stats_kernel(%arg0: i32, %arg1: memref<128x1024xbf16, #tpu.memory_space<vmem>>, %arg2: memref<1024x128xbf16, #tpu.memory_space<vmem>>, %arg3: memref<128x128xf32, #tpu.memory_space<vmem>>, %arg4: memref<1x1x128xf32, #tpu.memory_space<vmem>>, %arg5: memref<1x1x128xf32, #tpu.memory_space<vmem>>) attributes {dimension_semantics = [#tpu.dimension_semantics<parallel>], iteration_bounds = array<i64: 1>, scalar_prefetch = 0 : i64, scratch_operands = 0 : i64, tpu.core_type = #tpu.core_type<tc>, window_params = [{transform_indices = @transform_0, window_bounds = array<i64: 128, 1024>}, {pipeline_mode = #tpu.pipeline_mode<synchronous>, transform_indices = @transform_1, window_bounds = array<i64: 1024, 128>}, {transform_indices = @transform_2, window_bounds = array<i64: 128, 128>}, {transform_indices = @transform_3, window_bounds = array<i64: 1, 1, 128>}, {transform_indices = @transform_4, window_bounds = array<i64: 1, 1, 128>}]} {
    %c0 = arith.constant 0 : index
    %c0_0 = arith.constant 0 : index
    %0 = vector.load %arg1[%c0, %c0_0] : memref<128x1024xbf16, #tpu.memory_space<vmem>>, vector<128x1024xbf16>
    %c0_1 = arith.constant 0 : index
    %c0_2 = arith.constant 0 : index
    %1 = vector.load %arg2[%c0_1, %c0_2] : memref<1024x128xbf16, #tpu.memory_space<vmem>>, vector<1024x128xbf16>
    %cst = arith.constant dense<0.000000e+00> : vector<128x128xf32>
    %2 = tpu.matmul %0, %1, %cst {dimension_numbers = #tpu.dot_dimension_numbers<[1], [0], [0], [1], [0, 0, 1, 1], [], []>} : vector<128x1024xbf16>, vector<1024x128xbf16>, vector<128x128xf32> -> vector<128x128xf32>
    %c0_3 = arith.constant 0 : index
    %c0_4 = arith.constant 0 : index
    %3 = vector.load %arg3[%c0_3, %c0_4] : memref<128x128xf32, #tpu.memory_space<vmem>>, vector<128x128xf32>
    tpu.vector_store %arg3[%c0_3, %c0_4], %2 {strides = array<i32>} : memref<128x128xf32, #tpu.memory_space<vmem>>, vector<128x128xf32>,
    %cst_5 = arith.constant dense<0.000000e+00> : vector<128xf32>
    %4 = vector.multi_reduction <add>, %2, %cst_5 [0] : vector<128x128xf32> to vector<128xf32>
    %5 = vector.shape_cast %4 : vector<128xf32> to vector<1x128xf32>
    %c0_6 = arith.constant 0 : index
    %c0_7 = arith.constant 0 : index
    %c0_8 = arith.constant 0 : index
    %6 = vector.load %arg4[%c0_6, %c0_7, %c0_8] : memref<1x1x128xf32, #tpu.memory_space<vmem>>, vector<1x1x128xf32>
    %7 = vector.shape_cast %6 : vector<1x1x128xf32> to vector<1x128xf32>
    %8 = vector.shape_cast %5 : vector<1x128xf32> to vector<1x1x128xf32>
    tpu.vector_store %arg4[%c0_6, %c0_7, %c0_8], %8 {strides = array<i32>} : memref<1x1x128xf32, #tpu.memory_space<vmem>>, vector<1x1x128xf32>,
    %9 = arith.mulf %2, %2 : vector<128x128xf32>
    %cst_9 = arith.constant dense<0.000000e+00> : vector<128xf32>
    %10 = vector.multi_reduction <add>, %9, %cst_9 [0] : vector<128x128xf32> to vector<128xf32>
    %11 = vector.shape_cast %10 : vector<128xf32> to vector<1x128xf32>
    %c0_10 = arith.constant 0 : index
    %c0_11 = arith.constant 0 : index
    %c0_12 = arith.constant 0 : index
    %12 = vector.load %arg5[%c0_10, %c0_11, %c0_12] : memref<1x1x128xf32, #tpu.memory_space<vmem>>, vector<1x1x128xf32>
    %13 = vector.shape_cast %12 : vector<1x1x128xf32> to vector<1x128xf32>
    %14 = vector.shape_cast %11 : vector<1x128xf32> to vector<1x1x128xf32>
    tpu.vector_store %arg5[%c0_10, %c0_11, %c0_12], %14 {strides = array<i32>} : memref<1x1x128xf32, #tpu.memory_space<vmem>>, vector<1x1x128xf32>,
    return
  }
  func.func @transform_0(%arg0: i32) -> (i32, i32) {
    %c0_i32 = arith.constant 0 : i32
    %c0_i32_0 = arith.constant 0 : i32
    return %arg0, %c0_i32 : i32, i32
  }
  func.func @transform_1(%arg0: i32) -> (i32, i32) {
    %c0_i32 = arith.constant 0 : i32
    %c0_i32_0 = arith.constant 0 : i32
    %c0_i32_1 = arith.constant 0 : i32
    return %c0_i32, %c0_i32_0 : i32, i32
  }
  func.func @transform_2(%arg0: i32) -> (i32, i32) {
    %c0_i32 = arith.constant 0 : i32
    %c0_i32_0 = arith.constant 0 : i32
    return %arg0, %c0_i32 : i32, i32
  }
  func.func @transform_3(%arg0: i32) -> (i32, i32, i32) {
    %c0_i32 = arith.constant 0 : i32
    %c0_i32_0 = arith.constant 0 : i32
    %c0_i32_1 = arith.constant 0 : i32
    return %arg0, %c0_i32, %c0_i32_0 : i32, i32, i32
  }
  func.func @transform_4(%arg0: i32) -> (i32, i32, i32) {
    %c0_i32 = arith.constant 0 : i32
    %c0_i32_0 = arith.constant 0 : i32
    %c0_i32_1 = arith.constant 0 : i32
    return %arg0, %c0_i32, %c0_i32_0 : i32, i32, i32
  }
}

module attributes {stable_mosaic.version = 11 : i64} {
  func.func @_bn_relu_kernel(%arg0: i32, %arg1: memref<128x128xf32, #tpu.memory_space<vmem>>, %arg2: memref<1x128xf32, #tpu.memory_space<vmem>>, %arg3: memref<1x128xf32, #tpu.memory_space<vmem>>, %arg4: memref<128x128xf32, #tpu.memory_space<vmem>>) attributes {dimension_semantics = [#tpu.dimension_semantics<parallel>], iteration_bounds = array<i64: 1>, scalar_prefetch = 0 : i64, scratch_operands = 0 : i64, tpu.core_type = #tpu.core_type<tc>, window_params = [{transform_indices = @transform_0, window_bounds = array<i64: 128, 128>}, {pipeline_mode = #tpu.pipeline_mode<synchronous>, transform_indices = @transform_1, window_bounds = array<i64: 1, 128>}, {pipeline_mode = #tpu.pipeline_mode<synchronous>, transform_indices = @transform_2, window_bounds = array<i64: 1, 128>}, {transform_indices = @transform_3, window_bounds = array<i64: 128, 128>}]} {
    %c0 = arith.constant 0 : index
    %c0_0 = arith.constant 0 : index
    %0 = vector.load %arg1[%c0, %c0_0] : memref<128x128xf32, #tpu.memory_space<vmem>>, vector<128x128xf32>
    %c0_1 = arith.constant 0 : index
    %c0_2 = arith.constant 0 : index
    %1 = vector.load %arg2[%c0_1, %c0_2] : memref<1x128xf32, #tpu.memory_space<vmem>>, vector<1x128xf32>
    %2 = vector.broadcast %1 : vector<1x128xf32> to vector<128x128xf32>
    %3 = arith.mulf %0, %2 : vector<128x128xf32>
    %c0_3 = arith.constant 0 : index
    %c0_4 = arith.constant 0 : index
    %4 = vector.load %arg3[%c0_3, %c0_4] : memref<1x128xf32, #tpu.memory_space<vmem>>, vector<1x128xf32>
    %5 = vector.broadcast %4 : vector<1x128xf32> to vector<128x128xf32>
    %6 = arith.addf %3, %5 : vector<128x128xf32>
    %cst = arith.constant 0.000000e+00 : f32
    %7 = vector.broadcast %cst : f32 to vector<128x128xf32>
    %8 = arith.maximumf %6, %7 : vector<128x128xf32>
    %c0_5 = arith.constant 0 : index
    %c0_6 = arith.constant 0 : index
    %9 = vector.load %arg4[%c0_5, %c0_6] : memref<128x128xf32, #tpu.memory_space<vmem>>, vector<128x128xf32>
    tpu.vector_store %arg4[%c0_5, %c0_6], %8 {strides = array<i32>} : memref<128x128xf32, #tpu.memory_space<vmem>>, vector<128x128xf32>,
    return
  }
  func.func @transform_0(%arg0: i32) -> (i32, i32) {
    %c0_i32 = arith.constant 0 : i32
    %c0_i32_0 = arith.constant 0 : i32
    return %arg0, %c0_i32 : i32, i32
  }
  func.func @transform_1(%arg0: i32) -> (i32, i32) {
    %c0_i32 = arith.constant 0 : i32
    %c0_i32_0 = arith.constant 0 : i32
    %c0_i32_1 = arith.constant 0 : i32
    return %c0_i32, %c0_i32_0 : i32, i32
  }
  func.func @transform_2(%arg0: i32) -> (i32, i32) {
    %c0_i32 = arith.constant 0 : i32
    %c0_i32_0 = arith.constant 0 : i32
    %c0_i32_1 = arith.constant 0 : i32
    return %c0_i32, %c0_i32_0 : i32, i32
  }
  func.func @transform_3(%arg0: i32) -> (i32, i32) {
    %c0_i32 = arith.constant 0 : i32
    %c0_i32_0 = arith.constant 0 : i32
    return %arg0, %c0_i32 : i32, i32
  }
}

module attributes {stable_mosaic.version = 11 : i64} {
  func.func @_matmul_stats_kernel(%arg0: i32, %arg1: memref<256x512xbf16, #tpu.memory_space<vmem>>, %arg2: memref<512x128xbf16, #tpu.memory_space<vmem>>, %arg3: memref<256x128xf32, #tpu.memory_space<vmem>>, %arg4: memref<1x1x128xf32, #tpu.memory_space<vmem>>, %arg5: memref<1x1x128xf32, #tpu.memory_space<vmem>>) attributes {dimension_semantics = [#tpu.dimension_semantics<parallel>], iteration_bounds = array<i64: 2>, scalar_prefetch = 0 : i64, scratch_operands = 0 : i64, tpu.core_type = #tpu.core_type<tc>, window_params = [{transform_indices = @transform_0, window_bounds = array<i64: 256, 512>}, {pipeline_mode = #tpu.pipeline_mode<synchronous>, transform_indices = @transform_1, window_bounds = array<i64: 512, 128>}, {transform_indices = @transform_2, window_bounds = array<i64: 256, 128>}, {transform_indices = @transform_3, window_bounds = array<i64: 1, 1, 128>}, {transform_indices = @transform_4, window_bounds = array<i64: 1, 1, 128>}]} {
    %c0 = arith.constant 0 : index
    %c0_0 = arith.constant 0 : index
    %0 = vector.load %arg1[%c0, %c0_0] : memref<256x512xbf16, #tpu.memory_space<vmem>>, vector<256x512xbf16>
    %c0_1 = arith.constant 0 : index
    %c0_2 = arith.constant 0 : index
    %1 = vector.load %arg2[%c0_1, %c0_2] : memref<512x128xbf16, #tpu.memory_space<vmem>>, vector<512x128xbf16>
    %cst = arith.constant dense<0.000000e+00> : vector<256x128xf32>
    %2 = tpu.matmul %0, %1, %cst {dimension_numbers = #tpu.dot_dimension_numbers<[1], [0], [0], [1], [0, 0, 1, 1], [], []>} : vector<256x512xbf16>, vector<512x128xbf16>, vector<256x128xf32> -> vector<256x128xf32>
    %c0_3 = arith.constant 0 : index
    %c0_4 = arith.constant 0 : index
    %3 = vector.load %arg3[%c0_3, %c0_4] : memref<256x128xf32, #tpu.memory_space<vmem>>, vector<256x128xf32>
    tpu.vector_store %arg3[%c0_3, %c0_4], %2 {strides = array<i32>} : memref<256x128xf32, #tpu.memory_space<vmem>>, vector<256x128xf32>,
    %cst_5 = arith.constant dense<0.000000e+00> : vector<128xf32>
    %4 = vector.multi_reduction <add>, %2, %cst_5 [0] : vector<256x128xf32> to vector<128xf32>
    %5 = vector.shape_cast %4 : vector<128xf32> to vector<1x128xf32>
    %c0_6 = arith.constant 0 : index
    %c0_7 = arith.constant 0 : index
    %c0_8 = arith.constant 0 : index
    %6 = vector.load %arg4[%c0_6, %c0_7, %c0_8] : memref<1x1x128xf32, #tpu.memory_space<vmem>>, vector<1x1x128xf32>
    %7 = vector.shape_cast %6 : vector<1x1x128xf32> to vector<1x128xf32>
    %8 = vector.shape_cast %5 : vector<1x128xf32> to vector<1x1x128xf32>
    tpu.vector_store %arg4[%c0_6, %c0_7, %c0_8], %8 {strides = array<i32>} : memref<1x1x128xf32, #tpu.memory_space<vmem>>, vector<1x1x128xf32>,
    %9 = arith.mulf %2, %2 : vector<256x128xf32>
    %cst_9 = arith.constant dense<0.000000e+00> : vector<128xf32>
    %10 = vector.multi_reduction <add>, %9, %cst_9 [0] : vector<256x128xf32> to vector<128xf32>
    %11 = vector.shape_cast %10 : vector<128xf32> to vector<1x128xf32>
    %c0_10 = arith.constant 0 : index
    %c0_11 = arith.constant 0 : index
    %c0_12 = arith.constant 0 : index
    %12 = vector.load %arg5[%c0_10, %c0_11, %c0_12] : memref<1x1x128xf32, #tpu.memory_space<vmem>>, vector<1x1x128xf32>
    %13 = vector.shape_cast %12 : vector<1x1x128xf32> to vector<1x128xf32>
    %14 = vector.shape_cast %11 : vector<1x128xf32> to vector<1x1x128xf32>
    tpu.vector_store %arg5[%c0_10, %c0_11, %c0_12], %14 {strides = array<i32>} : memref<1x1x128xf32, #tpu.memory_space<vmem>>, vector<1x1x128xf32>,
    return
  }
  func.func @transform_0(%arg0: i32) -> (i32, i32) {
    %c0_i32 = arith.constant 0 : i32
    %c0_i32_0 = arith.constant 0 : i32
    return %arg0, %c0_i32 : i32, i32
  }
  func.func @transform_1(%arg0: i32) -> (i32, i32) {
    %c0_i32 = arith.constant 0 : i32
    %c0_i32_0 = arith.constant 0 : i32
    %c0_i32_1 = arith.constant 0 : i32
    return %c0_i32, %c0_i32_0 : i32, i32
  }
  func.func @transform_2(%arg0: i32) -> (i32, i32) {
    %c0_i32 = arith.constant 0 : i32
    %c0_i32_0 = arith.constant 0 : i32
    return %arg0, %c0_i32 : i32, i32
  }
  func.func @transform_3(%arg0: i32) -> (i32, i32, i32) {
    %c0_i32 = arith.constant 0 : i32
    %c0_i32_0 = arith.constant 0 : i32
    %c0_i32_1 = arith.constant 0 : i32
    return %arg0, %c0_i32, %c0_i32_0 : i32, i32, i32
  }
  func.func @transform_4(%arg0: i32) -> (i32, i32, i32) {
    %c0_i32 = arith.constant 0 : i32
    %c0_i32_0 = arith.constant 0 : i32
    %c0_i32_1 = arith.constant 0 : i32
    return %arg0, %c0_i32, %c0_i32_0 : i32, i32, i32
  }
}

module attributes {stable_mosaic.version = 11 : i64} {
  func.func @_bn_relu_kernel(%arg0: i32, %arg1: memref<256x128xf32, #tpu.memory_space<vmem>>, %arg2: memref<1x128xf32, #tpu.memory_space<vmem>>, %arg3: memref<1x128xf32, #tpu.memory_space<vmem>>, %arg4: memref<256x128xf32, #tpu.memory_space<vmem>>) attributes {dimension_semantics = [#tpu.dimension_semantics<parallel>], iteration_bounds = array<i64: 2>, scalar_prefetch = 0 : i64, scratch_operands = 0 : i64, tpu.core_type = #tpu.core_type<tc>, window_params = [{transform_indices = @transform_0, window_bounds = array<i64: 256, 128>}, {pipeline_mode = #tpu.pipeline_mode<synchronous>, transform_indices = @transform_1, window_bounds = array<i64: 1, 128>}, {pipeline_mode = #tpu.pipeline_mode<synchronous>, transform_indices = @transform_2, window_bounds = array<i64: 1, 128>}, {transform_indices = @transform_3, window_bounds = array<i64: 256, 128>}]} {
    %c0 = arith.constant 0 : index
    %c0_0 = arith.constant 0 : index
    %0 = vector.load %arg1[%c0, %c0_0] : memref<256x128xf32, #tpu.memory_space<vmem>>, vector<256x128xf32>
    %c0_1 = arith.constant 0 : index
    %c0_2 = arith.constant 0 : index
    %1 = vector.load %arg2[%c0_1, %c0_2] : memref<1x128xf32, #tpu.memory_space<vmem>>, vector<1x128xf32>
    %2 = vector.broadcast %1 : vector<1x128xf32> to vector<256x128xf32>
    %3 = arith.mulf %0, %2 : vector<256x128xf32>
    %c0_3 = arith.constant 0 : index
    %c0_4 = arith.constant 0 : index
    %4 = vector.load %arg3[%c0_3, %c0_4] : memref<1x128xf32, #tpu.memory_space<vmem>>, vector<1x128xf32>
    %5 = vector.broadcast %4 : vector<1x128xf32> to vector<256x128xf32>
    %6 = arith.addf %3, %5 : vector<256x128xf32>
    %cst = arith.constant 0.000000e+00 : f32
    %7 = vector.broadcast %cst : f32 to vector<256x128xf32>
    %8 = arith.maximumf %6, %7 : vector<256x128xf32>
    %c0_5 = arith.constant 0 : index
    %c0_6 = arith.constant 0 : index
    %9 = vector.load %arg4[%c0_5, %c0_6] : memref<256x128xf32, #tpu.memory_space<vmem>>, vector<256x128xf32>
    tpu.vector_store %arg4[%c0_5, %c0_6], %8 {strides = array<i32>} : memref<256x128xf32, #tpu.memory_space<vmem>>, vector<256x128xf32>,
    return
  }
  func.func @transform_0(%arg0: i32) -> (i32, i32) {
    %c0_i32 = arith.constant 0 : i32
    %c0_i32_0 = arith.constant 0 : i32
    return %arg0, %c0_i32 : i32, i32
  }
  func.func @transform_1(%arg0: i32) -> (i32, i32) {
    %c0_i32 = arith.constant 0 : i32
    %c0_i32_0 = arith.constant 0 : i32
    %c0_i32_1 = arith.constant 0 : i32
    return %c0_i32, %c0_i32_0 : i32, i32
  }
  func.func @transform_2(%arg0: i32) -> (i32, i32) {
    %c0_i32 = arith.constant 0 : i32
    %c0_i32_0 = arith.constant 0 : i32
    %c0_i32_1 = arith.constant 0 : i32
    return %c0_i32, %c0_i32_0 : i32, i32
  }
  func.func @transform_3(%arg0: i32) -> (i32, i32) {
    %c0_i32 = arith.constant 0 : i32
    %c0_i32_0 = arith.constant 0 : i32
    return %arg0, %c0_i32 : i32, i32
  }
}

module attributes {stable_mosaic.version = 11 : i64} {
  func.func @_matmul_stats_kernel(%arg0: i32, %arg1: memref<256x256xbf16, #tpu.memory_space<vmem>>, %arg2: memref<256x128xbf16, #tpu.memory_space<vmem>>, %arg3: memref<256x128xf32, #tpu.memory_space<vmem>>, %arg4: memref<1x1x128xf32, #tpu.memory_space<vmem>>, %arg5: memref<1x1x128xf32, #tpu.memory_space<vmem>>) attributes {dimension_semantics = [#tpu.dimension_semantics<parallel>], iteration_bounds = array<i64: 8>, scalar_prefetch = 0 : i64, scratch_operands = 0 : i64, tpu.core_type = #tpu.core_type<tc>, window_params = [{transform_indices = @transform_0, window_bounds = array<i64: 256, 256>}, {pipeline_mode = #tpu.pipeline_mode<synchronous>, transform_indices = @transform_1, window_bounds = array<i64: 256, 128>}, {transform_indices = @transform_2, window_bounds = array<i64: 256, 128>}, {transform_indices = @transform_3, window_bounds = array<i64: 1, 1, 128>}, {transform_indices = @transform_4, window_bounds = array<i64: 1, 1, 128>}]} {
    %c0 = arith.constant 0 : index
    %c0_0 = arith.constant 0 : index
    %0 = vector.load %arg1[%c0, %c0_0] : memref<256x256xbf16, #tpu.memory_space<vmem>>, vector<256x256xbf16>
    %c0_1 = arith.constant 0 : index
    %c0_2 = arith.constant 0 : index
    %1 = vector.load %arg2[%c0_1, %c0_2] : memref<256x128xbf16, #tpu.memory_space<vmem>>, vector<256x128xbf16>
    %cst = arith.constant dense<0.000000e+00> : vector<256x128xf32>
    %2 = tpu.matmul %0, %1, %cst {dimension_numbers = #tpu.dot_dimension_numbers<[1], [0], [0], [1], [0, 0, 1, 1], [], []>} : vector<256x256xbf16>, vector<256x128xbf16>, vector<256x128xf32> -> vector<256x128xf32>
    %c0_3 = arith.constant 0 : index
    %c0_4 = arith.constant 0 : index
    %3 = vector.load %arg3[%c0_3, %c0_4] : memref<256x128xf32, #tpu.memory_space<vmem>>, vector<256x128xf32>
    tpu.vector_store %arg3[%c0_3, %c0_4], %2 {strides = array<i32>} : memref<256x128xf32, #tpu.memory_space<vmem>>, vector<256x128xf32>,
    %cst_5 = arith.constant dense<0.000000e+00> : vector<128xf32>
    %4 = vector.multi_reduction <add>, %2, %cst_5 [0] : vector<256x128xf32> to vector<128xf32>
    %5 = vector.shape_cast %4 : vector<128xf32> to vector<1x128xf32>
    %c0_6 = arith.constant 0 : index
    %c0_7 = arith.constant 0 : index
    %c0_8 = arith.constant 0 : index
    %6 = vector.load %arg4[%c0_6, %c0_7, %c0_8] : memref<1x1x128xf32, #tpu.memory_space<vmem>>, vector<1x1x128xf32>
    %7 = vector.shape_cast %6 : vector<1x1x128xf32> to vector<1x128xf32>
    %8 = vector.shape_cast %5 : vector<1x128xf32> to vector<1x1x128xf32>
    tpu.vector_store %arg4[%c0_6, %c0_7, %c0_8], %8 {strides = array<i32>} : memref<1x1x128xf32, #tpu.memory_space<vmem>>, vector<1x1x128xf32>,
    %9 = arith.mulf %2, %2 : vector<256x128xf32>
    %cst_9 = arith.constant dense<0.000000e+00> : vector<128xf32>
    %10 = vector.multi_reduction <add>, %9, %cst_9 [0] : vector<256x128xf32> to vector<128xf32>
    %11 = vector.shape_cast %10 : vector<128xf32> to vector<1x128xf32>
    %c0_10 = arith.constant 0 : index
    %c0_11 = arith.constant 0 : index
    %c0_12 = arith.constant 0 : index
    %12 = vector.load %arg5[%c0_10, %c0_11, %c0_12] : memref<1x1x128xf32, #tpu.memory_space<vmem>>, vector<1x1x128xf32>
    %13 = vector.shape_cast %12 : vector<1x1x128xf32> to vector<1x128xf32>
    %14 = vector.shape_cast %11 : vector<1x128xf32> to vector<1x1x128xf32>
    tpu.vector_store %arg5[%c0_10, %c0_11, %c0_12], %14 {strides = array<i32>} : memref<1x1x128xf32, #tpu.memory_space<vmem>>, vector<1x1x128xf32>,
    return
  }
  func.func @transform_0(%arg0: i32) -> (i32, i32) {
    %c0_i32 = arith.constant 0 : i32
    %c0_i32_0 = arith.constant 0 : i32
    return %arg0, %c0_i32 : i32, i32
  }
  func.func @transform_1(%arg0: i32) -> (i32, i32) {
    %c0_i32 = arith.constant 0 : i32
    %c0_i32_0 = arith.constant 0 : i32
    %c0_i32_1 = arith.constant 0 : i32
    return %c0_i32, %c0_i32_0 : i32, i32
  }
  func.func @transform_2(%arg0: i32) -> (i32, i32) {
    %c0_i32 = arith.constant 0 : i32
    %c0_i32_0 = arith.constant 0 : i32
    return %arg0, %c0_i32 : i32, i32
  }
  func.func @transform_3(%arg0: i32) -> (i32, i32, i32) {
    %c0_i32 = arith.constant 0 : i32
    %c0_i32_0 = arith.constant 0 : i32
    %c0_i32_1 = arith.constant 0 : i32
    return %arg0, %c0_i32, %c0_i32_0 : i32, i32, i32
  }
  func.func @transform_4(%arg0: i32) -> (i32, i32, i32) {
    %c0_i32 = arith.constant 0 : i32
    %c0_i32_0 = arith.constant 0 : i32
    %c0_i32_1 = arith.constant 0 : i32
    return %arg0, %c0_i32, %c0_i32_0 : i32, i32, i32
  }
}

module attributes {stable_mosaic.version = 11 : i64} {
  func.func @_bn_relu_kernel(%arg0: i32, %arg1: memref<256x128xf32, #tpu.memory_space<vmem>>, %arg2: memref<1x128xf32, #tpu.memory_space<vmem>>, %arg3: memref<1x128xf32, #tpu.memory_space<vmem>>, %arg4: memref<256x128xf32, #tpu.memory_space<vmem>>) attributes {dimension_semantics = [#tpu.dimension_semantics<parallel>], iteration_bounds = array<i64: 8>, scalar_prefetch = 0 : i64, scratch_operands = 0 : i64, tpu.core_type = #tpu.core_type<tc>, window_params = [{transform_indices = @transform_0, window_bounds = array<i64: 256, 128>}, {pipeline_mode = #tpu.pipeline_mode<synchronous>, transform_indices = @transform_1, window_bounds = array<i64: 1, 128>}, {pipeline_mode = #tpu.pipeline_mode<synchronous>, transform_indices = @transform_2, window_bounds = array<i64: 1, 128>}, {transform_indices = @transform_3, window_bounds = array<i64: 256, 128>}]} {
    %c0 = arith.constant 0 : index
    %c0_0 = arith.constant 0 : index
    %0 = vector.load %arg1[%c0, %c0_0] : memref<256x128xf32, #tpu.memory_space<vmem>>, vector<256x128xf32>
    %c0_1 = arith.constant 0 : index
    %c0_2 = arith.constant 0 : index
    %1 = vector.load %arg2[%c0_1, %c0_2] : memref<1x128xf32, #tpu.memory_space<vmem>>, vector<1x128xf32>
    %2 = vector.broadcast %1 : vector<1x128xf32> to vector<256x128xf32>
    %3 = arith.mulf %0, %2 : vector<256x128xf32>
    %c0_3 = arith.constant 0 : index
    %c0_4 = arith.constant 0 : index
    %4 = vector.load %arg3[%c0_3, %c0_4] : memref<1x128xf32, #tpu.memory_space<vmem>>, vector<1x128xf32>
    %5 = vector.broadcast %4 : vector<1x128xf32> to vector<256x128xf32>
    %6 = arith.addf %3, %5 : vector<256x128xf32>
    %cst = arith.constant 0.000000e+00 : f32
    %7 = vector.broadcast %cst : f32 to vector<256x128xf32>
    %8 = arith.maximumf %6, %7 : vector<256x128xf32>
    %c0_5 = arith.constant 0 : index
    %c0_6 = arith.constant 0 : index
    %9 = vector.load %arg4[%c0_5, %c0_6] : memref<256x128xf32, #tpu.memory_space<vmem>>, vector<256x128xf32>
    tpu.vector_store %arg4[%c0_5, %c0_6], %8 {strides = array<i32>} : memref<256x128xf32, #tpu.memory_space<vmem>>, vector<256x128xf32>,
    return
  }
  func.func @transform_0(%arg0: i32) -> (i32, i32) {
    %c0_i32 = arith.constant 0 : i32
    %c0_i32_0 = arith.constant 0 : i32
    return %arg0, %c0_i32 : i32, i32
  }
  func.func @transform_1(%arg0: i32) -> (i32, i32) {
    %c0_i32 = arith.constant 0 : i32
    %c0_i32_0 = arith.constant 0 : i32
    %c0_i32_1 = arith.constant 0 : i32
    return %c0_i32, %c0_i32_0 : i32, i32
  }
  func.func @transform_2(%arg0: i32) -> (i32, i32) {
    %c0_i32 = arith.constant 0 : i32
    %c0_i32_0 = arith.constant 0 : i32
    %c0_i32_1 = arith.constant 0 : i32
    return %c0_i32, %c0_i32_0 : i32, i32
  }
  func.func @transform_3(%arg0: i32) -> (i32, i32) {
    %c0_i32 = arith.constant 0 : i32
    %c0_i32_0 = arith.constant 0 : i32
    return %arg0, %c0_i32 : i32, i32
  }
}

module attributes {stable_mosaic.version = 11 : i64} {
  func.func @_matmul_tanh_kernel(%arg0: i32, %arg1: memref<256x8xbf16, #tpu.memory_space<vmem>>, %arg2: memref<8x128xbf16, #tpu.memory_space<vmem>>, %arg3: memref<256x128xf32, #tpu.memory_space<vmem>>) attributes {dimension_semantics = [#tpu.dimension_semantics<parallel>], iteration_bounds = array<i64: 8>, scalar_prefetch = 0 : i64, scratch_operands = 0 : i64, tpu.core_type = #tpu.core_type<tc>, window_params = [{transform_indices = @transform_0, window_bounds = array<i64: 256, 8>}, {pipeline_mode = #tpu.pipeline_mode<synchronous>, transform_indices = @transform_1, window_bounds = array<i64: 8, 128>}, {transform_indices = @transform_2, window_bounds = array<i64: 256, 128>}]} {
    %c0 = arith.constant 0 : index
    %c0_0 = arith.constant 0 : index
    %0 = vector.load %arg1[%c0, %c0_0] : memref<256x8xbf16, #tpu.memory_space<vmem>>, vector<256x8xbf16>
    %c0_1 = arith.constant 0 : index
    %c0_2 = arith.constant 0 : index
    %1 = vector.load %arg2[%c0_1, %c0_2] : memref<8x128xbf16, #tpu.memory_space<vmem>>, vector<8x128xbf16>
    %cst = arith.constant dense<0.000000e+00> : vector<256x128xf32>
    %2 = tpu.matmul %0, %1, %cst {dimension_numbers = #tpu.dot_dimension_numbers<[1], [0], [0], [1], [0, 0, 1, 1], [], []>} : vector<256x8xbf16>, vector<8x128xbf16>, vector<256x128xf32> -> vector<256x128xf32>
    %3 = math.tanh %2 : vector<256x128xf32>
    %c0_3 = arith.constant 0 : index
    %c0_4 = arith.constant 0 : index
    %4 = vector.load %arg3[%c0_3, %c0_4] : memref<256x128xf32, #tpu.memory_space<vmem>>, vector<256x128xf32>
    tpu.vector_store %arg3[%c0_3, %c0_4], %3 {strides = array<i32>} : memref<256x128xf32, #tpu.memory_space<vmem>>, vector<256x128xf32>,
    return
  }
  func.func @transform_0(%arg0: i32) -> (i32, i32) {
    %c0_i32 = arith.constant 0 : i32
    %c0_i32_0 = arith.constant 0 : i32
    return %arg0, %c0_i32 : i32, i32
  }
  func.func @transform_1(%arg0: i32) -> (i32, i32) {
    %c0_i32 = arith.constant 0 : i32
    %c0_i32_0 = arith.constant 0 : i32
    %c0_i32_1 = arith.constant 0 : i32
    return %c0_i32, %c0_i32_0 : i32, i32
  }
  func.func @transform_2(%arg0: i32) -> (i32, i32) {
    %c0_i32 = arith.constant 0 : i32
    %c0_i32_0 = arith.constant 0 : i32
    return %arg0, %c0_i32 : i32, i32
  }
}

</mosaic_0001>

<bundles_post_ra>
// kernel: generator_forward.9
= control target key start
LH: loop header
LB: loop body
LE: loop exit
PB: predicated region body
PF: predicated region fallthrough
CT: control target
= control target key end

     0   :  { %s445_s1 = inlined_call_operand.vmem [shape: bf16[256,128], index: 1, kind: input, shape index: {}]   ;;  %s446_s0 = inlined_call_operand.vmem [shape: bf16[32,256], index: 0, kind: input, shape index: {}]   ;;  %s447_s2 = inlined_call_operand.vmem [shape: f32[32,128], index: 2, kind: output, shape index: {0}]   ;;  %s448_s3 = inlined_call_operand.vmem [shape: f32[1,1,128], index: 3, kind: output, shape index: {1}]   ;;  %s449_s4 = inlined_call_operand.vmem [shape: f32[1,1,128], index: 4, kind: output, shape index: {2}]  }
   0x1   :  { %v320_v0 = vld [vmem:[%s445_s1 + $0x78] sm:$0xff]   ;;  %v322_v2 = vld [vmem:[%s445_s1 + $0x70] sm:$0xff]   ;;  %v324_v4 = vld [vmem:[%s445_s1 + $0x68] sm:$0xff]  }
   0x2   :  { %v321_v1 = vld [vmem:[%s445_s1 + $0x38] sm:$0xff]   ;;  %276 = vmatprep.subr.bf16.mxu0 %v320_v0  ;;  %304 = vmatprep.subr.bf16.mxu1 %v320_v0  ;;  %v323_v3 = vld [vmem:[%s445_s1 + $0x30] sm:$0xff]   ;;  %v325_v5 = vld [vmem:[%s445_s1 + $0x28] sm:$0xff]  }
   0x3   :  { %277 = vmatpush3.bf16.msra.mxu0 %v321_v1  ;;  %312 = vmatpush3.bf16.msra.mxu1 %v321_v1  ;;  %v326_v6 = vld [vmem:[%s445_s1 + $0x60] sm:$0xff]   ;;  %v328_v8 = vld [vmem:[%s445_s1 + $0x58] sm:$0xff]   ;;  %v330_v10 = vld [vmem:[%s445_s1 + $0x50] sm:$0xff]  }
   0x4   :  { %278 = vmatprep.subr.bf16.mxu0 %v322_v2  ;;  %305 = vmatprep.subr.bf16.mxu1 %v322_v2  ;;  %v327_v7 = vld [vmem:[%s445_s1 + $0x20] sm:$0xff]   ;;  %v329_v9 = vld [vmem:[%s445_s1 + $0x18] sm:$0xff]   ;;  %v331_v13 = vld [vmem:[%s445_s1 + $0x10] sm:$0xff]  }
   0x5   :  { %v338_v11 = vld [vmem:[%s446_s0 + $0x4] ss:$8 sps:$4 sm:$0xff]   ;;  %v341_v12 = vld [vmem:[%s446_s0 + $0x14] ss:$8 sps:$4 sm:$0xff]   ;;  %v336_v18 = vld [vmem:[%s446_s0] ss:$8 sps:$4 sm:$0xff]  }
   0x6   :  { %v332_v14 = vld [vmem:[%s445_s1 + $0x48] sm:$0xff]   ;;  %199 = vmatprep.mubr.bf16.mxu0 %v338_v11  ;;  %207 = vmatprep.mubr.bf16.mxu1 %v341_v12  ;;  %v334_v16 = vld [vmem:[%s445_s1 + $0x40] sm:$0xff]   ;;  %v339_v19 = vld [vmem:[%s446_s0 + $0x10] ss:$8 sps:$4 sm:$0xff]  }
   0x7   :  { %279 = vmatpush3.bf16.msra.mxu0 %v323_v3  ;;  %313 = vmatpush3.bf16.msra.mxu1 %v323_v3  ;;  %v333_v15 = vld [vmem:[%s445_s1 + $0x8] sm:$0xff]   ;;  %v335_v17 = vld [vmem:[%s445_s1] sm:$0xff]  }
   0x8   :  { %280 = vmatprep.subr.bf16.mxu0 %v324_v4  ;;  %306 = vmatprep.subr.bf16.mxu1 %v324_v4 }
   0xb   :  { %281 = vmatpush3.bf16.msra.mxu0 %v325_v5  ;;  %314 = vmatpush3.bf16.msra.mxu1 %v325_v5 }
   0xc   :  { %282 = vmatprep.subr.bf16.mxu0 %v326_v6  ;;  %307 = vmatprep.subr.bf16.mxu1 %v326_v6 }
   0xf   :  { %283 = vmatpush3.bf16.msra.mxu0 %v327_v7  ;;  %315 = vmatpush3.bf16.msra.mxu1 %v327_v7 }
  0x10   :  { %284 = vmatprep.subr.bf16.mxu0 %v328_v8  ;;  %308 = vmatprep.subr.bf16.mxu1 %v328_v8 }
  0x13   :  { %285 = vmatpush3.bf16.msra.mxu0 %v329_v9  ;;  %316 = vmatpush3.bf16.msra.mxu1 %v329_v9 }
  0x14   :  { %286 = vmatprep.subr.bf16.mxu0 %v330_v10  ;;  %309 = vmatprep.subr.bf16.mxu1 %v330_v10 }
  0x17   :  { %287 = vmatpush3.bf16.msra.mxu0 %v331_v13  ;;  %317 = vmatpush3.bf16.msra.mxu1 %v331_v13 }
  0x18   :  { %288 = vmatprep.subr.bf16.mxu0 %v332_v14  ;;  %310 = vmatprep.subr.bf16.mxu1 %v332_v14 }
  0x1b   :  { %289 = vmatpush3.bf16.msra.mxu0 %v333_v15  ;;  %318 = vmatpush3.bf16.msra.mxu1 %v333_v15 }
  0x1c   :  { %290 = vmatprep.subr.bf16.mxu0 %v334_v16  ;;  %311 = vmatprep.subr.bf16.mxu1 %v334_v16 }
  0x1f   :  { %291 = vmatpush3.bf16.msra.mxu0 %v335_v17  ;;  %319 = vmatpush3.bf16.msra.mxu1 %v335_v17 }
  0x22   :  { %200 = vmatmul.mubr.bf16.vlgmr.msra.gmra.mxu0 %v336_v18  ;;  %208 = vmatmul.mubr.bf16.vlgmr.msra.gmra.mxu1 %v339_v19 }
  0xe2   :  { %v292_v20 = vpop.f32.mrf.mxu0  ;;  %v298_v21 = vpop.f32.mrf.mxu1 }
  0xe4   :  { %v293_v22 = vpop.f32.mrf.mxu0  ;;  %v299_v23 = vpop.f32.mrf.mxu1 }
  0xe5   :  { %v294_v24 = vadd.f32 %v293_v22, %v292_v20  ;;  %v300_v25 = vadd.f32 %v299_v23, %v298_v21 }
  0xe6   :  { %v295_v26 = vpop.f32.mrf.mxu0  ;;  %v301_v27 = vpop.f32.mrf.mxu1 }
  0xe7   :  { %216 = vst [vmem:[%s447_s2] sm:$0xff] %v294_v24  ;;  %218 = vst [vmem:[%s447_s2 + $0x10] sm:$0xff] %v300_v25  ;;  %v230_v32 = vmul.f32 %v294_v24, %v294_v24  ;;  %v232_v35 = vmul.f32 %v300_v25, %v300_v25 }
  0xe8   :  { %v296_v28 = vpop.f32.mrf.mxu0  ;;  %v302_v29 = vpop.f32.mrf.mxu1 }
  0xe9   :  { %v297_v30 = vadd.f32 %v296_v28, %v295_v26  ;;  %v303_v31 = vadd.f32 %v302_v29, %v301_v27 }
  0xeb   :  { %217 = vst [vmem:[%s447_s2 + $0x8] sm:$0xff] %v297_v30  ;;  %v220_v33 = vadd.f32 %v297_v30, %v294_v24  ;;  %v231_v34 = vmul.f32 %v297_v30, %v297_v30  ;;  %219 = vst [vmem:[%s447_s2 + $0x18] sm:$0xff] %v303_v31  ;;  %v233_v39 = vmul.f32 %v303_v31, %v303_v31 }
  0xed   :  { %v234_v36 = vadd.f32 %v231_v34, %v230_v32  ;;  %v221_v37 = vadd.f32 %v300_v25, %v220_v33 }
  0xef   :  { %v222_v38 = vadd.f32 %v303_v31, %v221_v37  ;;  %v235_v40 = vadd.f32 %v234_v36, %v232_v35 }
  0xf1   :  { %v223_v41 = vrot.slane %v222_v38, 4  ;;  %v236_v42 = vadd.f32 %v235_v40, %v233_v39 }
  0xf3   :  { %v224_v43 = vadd.f32 %v223_v41, %v222_v38  ;;  %v237_v44 = vrot.slane %v236_v42, 4 }
  0xf5   :  { %v225_v45 = vrot.slane %v224_v43, 2  ;;  %v238_v46 = vadd.f32 %v237_v44, %v236_v42 }
  0xf7   :  { %v226_v47 = vadd.f32 %v225_v45, %v224_v43  ;;  %v239_v48 = vrot.slane %v238_v46, 2 }
  0xf9   :  { %v227_v49 = vrot.slane %v226_v47, 1  ;;  %v240_v50 = vadd.f32 %v239_v48, %v238_v46 }
  0xfb   :  { %v228_v51 = vadd.f32 %v227_v49, %v226_v47  ;;  %v241_v52 = vrot.slane %v240_v50, 1 }
  0xfd   :  { %229 = vst [vmem:[%s448_s3] sm:$0x1] %v228_v51  ;;  %v242_v53 = vadd.f32 %v241_v52, %v240_v50 }
  0xff   :  { %243 = vst [vmem:[%s449_s4] sm:$0x1] %v242_v53 }

// kernel: generator_forward.10
= control target key start
LH: loop header
LB: loop body
LE: loop exit
PB: predicated region body
PF: predicated region fallthrough
CT: control target
= control target key end

     0   :  { %s104_s0 = inlined_call_operand.vmem [shape: f32[32,128], index: 0, kind: input, shape index: {}]   ;;  %s105_s1 = inlined_call_operand.vmem [shape: f32[1,128], index: 1, kind: input, shape index: {}]   ;;  %s106_s2 = inlined_call_operand.vmem [shape: f32[1,128], index: 2, kind: input, shape index: {}]   ;;  %s107_s3 = inlined_call_operand.vmem [shape: f32[32,128], index: 3, kind: output, shape index: {}]  }
   0x1   :  { %v14_v0 = vld [vmem:[%s104_s0] sm:$0xff]  ;;  %v15_v4 = vld [vmem:[%s104_s0 + $0x8] sm:$0xff]  ;;  %v16_v5 = vld [vmem:[%s104_s0 + $0x10] sm:$0xff] }
   0x2   :  { %v52_v1 = vld [vmem:[%s105_s1] ss:$0 sm:$0xff]  ;;  %v17_v6 = vld [vmem:[%s104_s0 + $0x18] sm:$0xff] }
   0x3   :  { %v53_v2 = vld [vmem:[%s106_s2] ss:$0 sm:$0xff]  ;;  %v25_v3 = vmul.f32 %v52_v1, %v14_v0  ;;  %v26_v7 = vmul.f32 %v52_v1, %v15_v4  ;;  %v27_v8 = vmul.f32 %v52_v1, %v16_v5  ;;  %v28_v9 = vmul.f32 %v52_v1, %v17_v6 }
   0x5   :  { %v36_v10 = vadd.f32 %v53_v2, %v25_v3  ;;  %v37_v11 = vadd.f32 %v53_v2, %v26_v7  ;;  %v38_v12 = vadd.f32 %v53_v2, %v27_v8  ;;  %v39_v13 = vadd.f32 %v53_v2, %v28_v9 }
   0x7   :  { %v40_v14 = vmax.f32 %v36_v10, 0.0  ;;  %v41_v15 = vmax.f32 %v37_v11, 0.0  ;;  %v42_v16 = vmax.f32 %v38_v12, 0.0  ;;  %v43_v17 = vmax.f32 %v39_v13, 0.0 }
   0x9   :  { %44 = vst [vmem:[%s107_s3] sm:$0xff] %v40_v14  ;;  %45 = vst [vmem:[%s107_s3 + $0x8] sm:$0xff] %v41_v15 }
   0xa   :  { %46 = vst [vmem:[%s107_s3 + $0x10] sm:$0xff] %v42_v16  ;;  %47 = vst [vmem:[%s107_s3 + $0x18] sm:$0xff] %v43_v17 }

// kernel: generator_forward.12
= control target key start
LH: loop header
LB: loop body
LE: loop exit
PB: predicated region body
PF: predicated region fallthrough
CT: control target
= control target key end

     0   :  { %s254_s0 = inlined_call_operand.vmem [shape: f32[128,128], index: 0, kind: input, shape index: {}]   ;;  %s255_s1 = inlined_call_operand.vmem [shape: f32[1,128], index: 1, kind: input, shape index: {}]   ;;  %s256_s2 = inlined_call_operand.vmem [shape: f32[1,128], index: 2, kind: input, shape index: {}]   ;;  %s257_s3 = inlined_call_operand.vmem [shape: f32[128,128], index: 3, kind: output, shape index: {}]  }
   0x1   :  { %v14_v0 = vld [vmem:[%s254_s0] sm:$0xff]  ;;  %v15_v4 = vld [vmem:[%s254_s0 + $0x8] sm:$0xff]  ;;  %v16_v5 = vld [vmem:[%s254_s0 + $0x10] sm:$0xff] }
   0x2   :  { %v112_v1 = vld [vmem:[%s255_s1] ss:$0 sm:$0xff]  ;;  %v17_v6 = vld [vmem:[%s254_s0 + $0x18] sm:$0xff]  ;;  %v19_v11 = vld [vmem:[%s254_s0 + $0x28] sm:$0xff] }
   0x3   :  { %v143_v2 = vld [vmem:[%s256_s2] ss:$0 sm:$0xff]  ;;  %v37_v3 = vmul.f32 %v112_v1, %v14_v0  ;;  %v38_v7 = vmul.f32 %v112_v1, %v15_v4  ;;  %v39_v8 = vmul.f32 %v112_v1, %v16_v5  ;;  %v40_v9 = vmul.f32 %v112_v1, %v17_v6  ;;  %v20_v12 = vld [vmem:[%s254_s0 + $0x30] sm:$0xff]  ;;  %v21_v17 = vld [vmem:[%s254_s0 + $0x38] sm:$0xff] }
   0x4   :  { %v18_v10 = vld [vmem:[%s254_s0 + $0x20] sm:$0xff]  ;;  %v42_v15 = vmul.f32 %v112_v1, %v19_v11  ;;  %v43_v16 = vmul.f32 %v112_v1, %v20_v12  ;;  %v44_v21 = vmul.f32 %v112_v1, %v21_v17  ;;  %v23_v27 = vld [vmem:[%s254_s0 + $0x48] sm:$0xff]  ;;  %v24_v28 = vld [vmem:[%s254_s0 + $0x50] sm:$0xff] }
   0x5   :  { %v60_v13 = vadd.f32 %v143_v2, %v37_v3  ;;  %v41_v14 = vmul.f32 %v112_v1, %v18_v10  ;;  %v61_v18 = vadd.f32 %v143_v2, %v38_v7  ;;  %v62_v19 = vadd.f32 %v143_v2, %v39_v8  ;;  %v22_v22 = vld [vmem:[%s254_s0 + $0x40] sm:$0xff]  ;;  %v25_v29 = vld [vmem:[%s254_s0 + $0x58] sm:$0xff]  ;;  %v27_v35 = vld [vmem:[%s254_s0 + $0x68] sm:$0xff] }
   0x6   :  { %v63_v20 = vadd.f32 %v143_v2, %v40_v9  ;;  %v65_v25 = vadd.f32 %v143_v2, %v42_v15  ;;  %v66_v26 = vadd.f32 %v143_v2, %v43_v16  ;;  %v67_v33 = vadd.f32 %v143_v2, %v44_v21  ;;  %v26_v34 = vld [vmem:[%s254_s0 + $0x60] sm:$0xff]  ;;  %v28_v36 = vld [vmem:[%s254_s0 + $0x70] sm:$0xff]  ;;  %v29_v41 = vld [vmem:[%s254_s0 + $0x78] sm:$0xff] }
   0x7   :  { %v76_v23 = vmax.f32 %v60_v13, 0.0  ;;  %v64_v24 = vadd.f32 %v143_v2, %v41_v14  ;;  %v77_v30 = vmax.f32 %v61_v18, 0.0  ;;  %v78_v31 = vmax.f32 %v62_v19, 0.0 }
   0x8   :  { %v79_v32 = vmax.f32 %v63_v20, 0.0  ;;  %v81_v38 = vmax.f32 %v65_v25, 0.0  ;;  %v82_v39 = vmax.f32 %v66_v26, 0.0  ;;  %v45_v40 = vmul.f32 %v112_v1, %v22_v22 }
   0x9   :  { %92 = vst [vmem:[%s257_s3] sm:$0xff] %v76_v23  ;;  %v80_v37 = vmax.f32 %v64_v24, 0.0  ;;  %93 = vst [vmem:[%s257_s3 + $0x8] sm:$0xff] %v77_v30  ;;  %v83_v42 = vmax.f32 %v67_v33, 0.0  ;;  %v46_v43 = vmul.f32 %v112_v1, %v23_v27  ;;  %v47_v44 = vmul.f32 %v112_v1, %v24_v28 }
   0xa   :  { %94 = vst [vmem:[%s257_s3 + $0x10] sm:$0xff] %v78_v31  ;;  %95 = vst [vmem:[%s257_s3 + $0x18] sm:$0xff] %v79_v32  ;;  %v48_v45 = vmul.f32 %v112_v1, %v25_v29  ;;  %v68_v46 = vadd.f32 %v143_v2, %v45_v40  ;;  %v49_v47 = vmul.f32 %v112_v1, %v26_v34 }
   0xb   :  { %96 = vst [vmem:[%s257_s3 + $0x20] sm:$0xff] %v80_v37  ;;  %97 = vst [vmem:[%s257_s3 + $0x28] sm:$0xff] %v81_v38  ;;  %v50_v48 = vmul.f32 %v112_v1, %v27_v35  ;;  %v51_v49 = vmul.f32 %v112_v1, %v28_v36  ;;  %v69_v50 = vadd.f32 %v143_v2, %v46_v43 }
   0xc   :  { %98 = vst [vmem:[%s257_s3 + $0x30] sm:$0xff] %v82_v39  ;;  %99 = vst [vmem:[%s257_s3 + $0x38] sm:$0xff] %v83_v42  ;;  %v70_v51 = vadd.f32 %v143_v2, %v47_v44  ;;  %v71_v52 = vadd.f32 %v143_v2, %v48_v45  ;;  %v52_v53 = vmul.f32 %v112_v1, %v29_v41  ;;  %v84_v54 = vmax.f32 %v68_v46, 0.0 }
   0xd   :  { %v72_v55 = vadd.f32 %v143_v2, %v49_v47  ;;  %v73_v56 = vadd.f32 %v143_v2, %v50_v48  ;;  %v74_v57 = vadd.f32 %v143_v2, %v51_v49  ;;  %v85_v58 = vmax.f32 %v69_v50, 0.0 }
   0xe   :  { %v86_v59 = vmax.f32 %v70_v51, 0.0  ;;  %v87_v60 = vmax.f32 %v71_v52, 0.0  ;;  %v75_v61 = vadd.f32 %v143_v2, %v52_v53  ;;  %100 = vst [vmem:[%s257_s3 + $0x40] sm:$0xff] %v84_v54 }
   0xf   :  { %v88_v62 = vmax.f32 %v72_v55, 0.0  ;;  %v89_v63 = vmax.f32 %v73_v56, 0.0  ;;  %v90_v0 = vmax.f32 %v74_v57, 0.0  ;;  %101 = vst [vmem:[%s257_s3 + $0x48] sm:$0xff] %v85_v58 }
  0x10   :  { %102 = vst [vmem:[%s257_s3 + $0x50] sm:$0xff] %v86_v59  ;;  %103 = vst [vmem:[%s257_s3 + $0x58] sm:$0xff] %v87_v60  ;;  %v91_v1 = vmax.f32 %v75_v61, 0.0 }
  0x11   :  { %104 = vst [vmem:[%s257_s3 + $0x60] sm:$0xff] %v88_v62  ;;  %105 = vst [vmem:[%s257_s3 + $0x68] sm:$0xff] %v89_v63 }
  0x12   :  { %106 = vst [vmem:[%s257_s3 + $0x70] sm:$0xff] %v90_v0  ;;  %107 = vst [vmem:[%s257_s3 + $0x78] sm:$0xff] %v91_v1 }

// kernel: generator_forward.11
= control target key start
LH: loop header
LB: loop body
LE: loop exit
PB: predicated region body
PF: predicated region fallthrough
CT: control target
= control target key end

     0   :  { %s2484_s1 = inlined_call_operand.vmem [shape: bf16[1024,128], index: 1, kind: input, shape index: {}]   ;;  %s2485_s0 = inlined_call_operand.vmem [shape: bf16[128,1024], index: 0, kind: input, shape index: {}]   ;;  %s2486_s2 = inlined_call_operand.vmem [shape: f32[128,128], index: 2, kind: output, shape index: {0}]   ;;  %s2487_s3 = inlined_call_operand.vmem [shape: f32[1,1,128], index: 3, kind: output, shape index: {1}]   ;;  %s2488_s4 = inlined_call_operand.vmem [shape: f32[1,1,128], index: 4, kind: output, shape index: {2}]  }
   0x1   :  { %v1771_v0 = vld [vmem:[%s2484_s1 + $0x78] sm:$0xff]   ;;  %v1775_v4 = vld [vmem:[%s2484_s1 + $0x70] sm:$0xff]   ;;  %v1779_v8 = vld [vmem:[%s2484_s1 + $0x68] sm:$0xff]  }
   0x2   :  { %v1772_v1 = vld [vmem:[%s2484_s1 + $0xf8] sm:$0xff]   ;;  %1515 = vmatprep.subr.bf16.mxu0 %v1771_v0  ;;  %v1776_v5 = vld [vmem:[%s2484_s1 + $0xf0] sm:$0xff]   ;;  %v1780_v9 = vld [vmem:[%s2484_s1 + $0xe8] sm:$0xff]  }
   0x3   :  { %v1773_v2 = vld [vmem:[%s2484_s1 + $0x38] sm:$0xff]   ;;  %1579 = vmatprep.subr.bf16.mxu1 %v1772_v1  ;;  %v1777_v6 = vld [vmem:[%s2484_s1 + $0x30] sm:$0xff]   ;;  %v1781_v10 = vld [vmem:[%s2484_s1 + $0x28] sm:$0xff]  }
   0x4   :  { %v1774_v3 = vld [vmem:[%s2484_s1 + $0xb8] sm:$0xff]   ;;  %1516 = vmatpush3.bf16.msra.mxu0 %v1773_v2  ;;  %v1778_v7 = vld [vmem:[%s2484_s1 + $0xb0] sm:$0xff]   ;;  %v1782_v11 = vld [vmem:[%s2484_s1 + $0xa8] sm:$0xff]  }
   0x5   :  { %1580 = vmatpush3.bf16.msra.mxu1 %v1774_v3  ;;  %1517 = vmatprep.subr.bf16.mxu0 %v1775_v4  ;;  %v1783_v12 = vld [vmem:[%s2484_s1 + $0x60] sm:$0xff]   ;;  %v1787_v16 = vld [vmem:[%s2484_s1 + $0x58] sm:$0xff]   ;;  %v1791_v20 = vld [vmem:[%s2484_s1 + $0x50] sm:$0xff]  }
   0x6   :  { %1581 = vmatprep.subr.bf16.mxu1 %v1776_v5  ;;  %v1784_v13 = vld [vmem:[%s2484_s1 + $0xe0] sm:$0xff]   ;;  %v1788_v17 = vld [vmem:[%s2484_s1 + $0xd8] sm:$0xff]   ;;  %v1792_v21 = vld [vmem:[%s2484_s1 + $0xd0] sm:$0xff]  }
   0x7   :  { %v1785_v14 = vld [vmem:[%s2484_s1 + $0x20] sm:$0xff]   ;;  %v1789_v18 = vld [vmem:[%s2484_s1 + $0x18] sm:$0xff]   ;;  %v1793_v22 = vld [vmem:[%s2484_s1 + $0x10] sm:$0xff]  }
   0x8   :  { %1518 = vmatpush3.bf16.msra.mxu0 %v1777_v6  ;;  %v1786_v15 = vld [vmem:[%s2484_s1 + $0xa0] sm:$0xff]   ;;  %v1790_v19 = vld [vmem:[%s2484_s1 + $0x98] sm:$0xff]   ;;  %v1794_v23 = vld [vmem:[%s2484_s1 + $0x90] sm:$0xff]  }
   0x9   :  { %1582 = vmatpush3.bf16.msra.mxu1 %v1778_v7  ;;  %1519 = vmatprep.subr.bf16.mxu0 %v1779_v8  ;;  %v1795_v24 = vld [vmem:[%s2484_s1 + $0x48] sm:$0xff]   ;;  %v1799_v28 = vld [vmem:[%s2484_s1 + $0x40] sm:$0xff]   ;;  %v1803_v40 = vld [vmem:[%s2484_s1 + $0x178] sm:$0xff]  }
   0xa   :  { %1583 = vmatprep.subr.bf16.mxu1 %v1780_v9  ;;  %v1796_v25 = vld [vmem:[%s2484_s1 + $0xc8] sm:$0xff]   ;;  %v1800_v29 = vld [vmem:[%s2484_s1 + $0xc0] sm:$0xff]   ;;  %v1804_v41 = vld [vmem:[%s2484_s1 + $0x138] sm:$0xff]  }
   0xb   :  { %v1797_v26 = vld [vmem:[%s2484_s1 + $0x8] sm:$0xff]   ;;  %v1801_v30 = vld [vmem:[%s2484_s1] sm:$0xff]   ;;  %v1805_v42 = vld [vmem:[%s2484_s1 + $0x1f8] sm:$0xff]  }
   0xc   :  { %1520 = vmatpush3.bf16.msra.mxu0 %v1781_v10  ;;  %v1798_v27 = vld [vmem:[%s2484_s1 + $0x88] sm:$0xff]   ;;  %v1802_v31 = vld [vmem:[%s2484_s1 + $0x80] sm:$0xff]   ;;  %v1806_v43 = vld [vmem:[%s2484_s1 + $0x1b8] sm:$0xff]  }
   0xd   :  { %1584 = vmatpush3.bf16.msra.mxu1 %v1782_v11  ;;  %1521 = vmatprep.subr.bf16.mxu0 %v1783_v12  ;;  %v15_v32 = vld [vmem:[%s2485_s0] sm:$0xff]  ;;  %v16_v34 = vld [vmem:[%s2485_s0 + $0x8] sm:$0xff]  ;;  %v1807_v50 = vld [vmem:[%s2484_s1 + $0x170] sm:$0xff]  }
   0xe   :  { %1585 = vmatprep.subr.bf16.mxu1 %v1784_v13  ;;  %v19_v33 = vld [vmem:[%s2485_s0 + $0x20] sm:$0xff]  ;;  %v20_v37 = vld [vmem:[%s2485_s0 + $0x28] sm:$0xff]  ;;  %v1808_v52 = vld [vmem:[%s2484_s1 + $0x130] sm:$0xff]  }
   0xf   :  { %v1387_v35 = vcombine.low %v15_v32, %v19_v33  ;;  %v1388_v36 = vcombine.high %v15_v32, %v19_v33  ;;  %v1389_v38 = vcombine.low %v16_v34, %v20_v37  ;;  %v1390_v39 = vcombine.high %v16_v34, %v20_v37  ;;  %v23_v44 = vld [vmem:[%s2485_s0 + $0x40] sm:$0xff]  ;;  %v24_v47 = vld [vmem:[%s2485_s0 + $0x48] sm:$0xff]  ;;  %v1809_v54 = vld [vmem:[%s2484_s1 + $0x1f0] sm:$0xff]  }
  0x10   :  { %1522 = vmatpush3.bf16.msra.mxu0 %v1785_v14  ;;  %v27_v45 = vld [vmem:[%s2485_s0 + $0x60] sm:$0xff]  ;;  %v28_v48 = vld [vmem:[%s2485_s0 + $0x68] sm:$0xff]  ;;  %v1810_v55 = vld [vmem:[%s2484_s1 + $0x1b0] sm:$0xff]  }
  0x11   :  { %1586 = vmatpush3.bf16.msra.mxu1 %v1786_v15  ;;  %1523 = vmatprep.subr.bf16.mxu0 %v1787_v16  ;;  %v1396_v46 = vcombine.high %v23_v44, %v27_v45  ;;  %v1398_v49 = vcombine.high %v24_v47, %v28_v48  ;;  %v1395_v51 = vcombine.low %v23_v44, %v27_v45  ;;  %v31_v56 = vld [vmem:[%s2485_s0 + $0x80] sm:$0xff]  ;;  %v32_v58 = vld [vmem:[%s2485_s0 + $0x88] sm:$0xff]  ;;  %v1825_v32 = vld [vmem:[%s2484_s1 + $0x1d0] sm:$0xff]  }
  0x12   :  { %1587 = vmatprep.subr.bf16.mxu1 %v1788_v17  ;;  %943 = vmatprep.mubr.bf16.mxu0 %v1388_v36  ;;  %v1397_v53 = vcombine.low %v24_v47, %v28_v48  ;;  %v35_v57 = vld [vmem:[%s2485_s0 + $0xa0] sm:$0xff]  ;;  %v36_v59 = vld [vmem:[%s2485_s0 + $0xa8] sm:$0xff]  ;;  %v1826_v33 = vld [vmem:[%s2484_s1 + $0x190] sm:$0xff]  }
  0x13   :  { %1040 = vmatprep.mubr.bf16.mxu1 %v1390_v39  ;;  %v1404_v60 = vcombine.high %v31_v56, %v35_v57  ;;  %v1406_v61 = vcombine.high %v32_v58, %v36_v59  ;;  %v1811_v62 = vld [vmem:[%s2484_s1 + $0x168] sm:$0xff]   ;;  %v1403_v2 = vcombine.low %v31_v56, %v35_v57  ;;  %v39_v3 = vld [vmem:[%s2485_s0 + $0xc0] sm:$0xff]  ;;  %v1405_v6 = vcombine.low %v32_v58, %v36_v59 }
  0x14   :  { %1524 = vmatpush3.bf16.msra.mxu0 %v1789_v18  ;;  %v1812_v63 = vld [vmem:[%s2484_s1 + $0x128] sm:$0xff]   ;;  %v43_v4 = vld [vmem:[%s2485_s0 + $0xe0] sm:$0xff]  ;;  %v1819_v18 = vld [vmem:[%s2484_s1 + $0x158] sm:$0xff]  }
  0x15   :  { %1588 = vmatpush3.bf16.msra.mxu1 %v1790_v19  ;;  %1525 = vmatprep.subr.bf16.mxu0 %v1791_v20  ;;  %v1813_v0 = vld [vmem:[%s2484_s1 + $0x1e8] sm:$0xff]   ;;  %v1412_v7 = vcombine.high %v39_v3, %v43_v4  ;;  %v1815_v10 = vld [vmem:[%s2484_s1 + $0x160] sm:$0xff]   ;;  %v1411_v19 = vcombine.low %v39_v3, %v43_v4  ;;  %v1820_v20 = vld [vmem:[%s2484_s1 + $0x118] sm:$0xff]  }
  0x16   :  { %1589 = vmatprep.subr.bf16.mxu1 %v1792_v21  ;;  %v1814_v1 = vld [vmem:[%s2484_s1 + $0x1a8] sm:$0xff]   ;;  %v1816_v11 = vld [vmem:[%s2484_s1 + $0x120] sm:$0xff]  }
  0x17   :  { %v40_v5 = vld [vmem:[%s2485_s0 + $0xc8] sm:$0xff]  ;;  %v1817_v12 = vld [vmem:[%s2484_s1 + $0x1e0] sm:$0xff]  }
  0x18   :  { %1526 = vmatpush3.bf16.msra.mxu0 %v1793_v22  ;;  %v44_v8 = vld [vmem:[%s2485_s0 + $0xe8] sm:$0xff]  ;;  %v1818_v13 = vld [vmem:[%s2484_s1 + $0x1a0] sm:$0xff]  }
  0x19   :  { %1590 = vmatpush3.bf16.msra.mxu1 %v1794_v23  ;;  %1527 = vmatprep.subr.bf16.mxu0 %v1795_v24  ;;  %v1414_v9 = vcombine.high %v40_v5, %v44_v8  ;;  %v47_v14 = vld [vmem:[%s2485_s0 + $0x100] sm:$0xff]  ;;  %v48_v16 = vld [vmem:[%s2485_s0 + $0x108] sm:$0xff]  ;;  %v1413_v21 = vcombine.low %v40_v5, %v44_v8  ;;  %v1821_v23 = vld [vmem:[%s2484_s1 + $0x1d8] sm:$0xff]  }
  0x1a   :  { %1591 = vmatprep.subr.bf16.mxu1 %v1796_v25  ;;  %v51_v15 = vld [vmem:[%s2485_s0 + $0x120] sm:$0xff]  ;;  %v52_v17 = vld [vmem:[%s2485_s0 + $0x128] sm:$0xff]  ;;  %v1822_v25 = vld [vmem:[%s2484_s1 + $0x198] sm:$0xff]  }
  0x1b   :  { %v1420_v22 = vcombine.high %v47_v14, %v51_v15  ;;  %v1422_v24 = vcombine.high %v48_v16, %v52_v17  ;;  %v1419_v34 = vcombine.low %v47_v14, %v51_v15  ;;  %v1828_v39 = vld [vmem:[%s2484_s1 + $0x108] sm:$0xff]   ;;  %v1832_v48 = vld [vmem:[%s2484_s1 + $0x100] sm:$0xff]   ;;  %v26_v8 = vld [vmem:[%s2485_s0 + $0x58] sm:$0xff] }
  0x1c   :  { %1528 = vmatpush3.bf16.msra.mxu0 %v1797_v26  ;;  %v55_v26 = vld [vmem:[%s2485_s0 + $0x140] sm:$0xff]  ;;  %v64_v44 = vld [vmem:[%s2485_s0 + $0x188] sm:$0xff]  ;;  %v33_v14 = vld [vmem:[%s2485_s0 + $0x90] sm:$0xff] }
  0x1d   :  { %1592 = vmatpush3.bf16.msra.mxu1 %v1798_v27  ;;  %1529 = vmatprep.subr.bf16.mxu0 %v1799_v28  ;;  %v59_v27 = vld [vmem:[%s2485_s0 + $0x160] sm:$0xff]  ;;  %v1823_v28 = vld [vmem:[%s2484_s1 + $0x150] sm:$0xff]   ;;  %v68_v45 = vld [vmem:[%s2485_s0 + $0x1a8] sm:$0xff] }
  0x1e   :  { %1593 = vmatprep.subr.bf16.mxu1 %v1800_v29  ;;  %v56_v29 = vld [vmem:[%s2485_s0 + $0x148] sm:$0xff]  ;;  %v1428_v36 = vcombine.high %v55_v26, %v59_v27  ;;  %v1427_v47 = vcombine.low %v55_v26, %v59_v27  ;;  %v1437_v59 = vcombine.low %v64_v44, %v68_v45  ;;  %v37_v15 = vld [vmem:[%s2485_s0 + $0xb0] sm:$0xff] }
  0x1f   :  { %v72_v56 = vld [vmem:[%s2485_s0 + $0x1c8] sm:$0xff]  ;;  %v1407_v26 = vcombine.low %v33_v14, %v37_v15 }
  0x20   :  { %1530 = vmatpush3.bf16.msra.mxu0 %v1801_v30  ;;  %v60_v30 = vld [vmem:[%s2485_s0 + $0x168] sm:$0xff] }
  0x21   :  { %1594 = vmatpush3.bf16.msra.mxu1 %v1802_v31  ;;  %1643 = vmatprep.subr.bf16.mxu0 %v1803_v40  ;;  %v1824_v31 = vld [vmem:[%s2484_s1 + $0x110] sm:$0xff]   ;;  %v1430_v37 = vcombine.high %v56_v29, %v60_v30  ;;  %v1829_v40 = vld [vmem:[%s2484_s1 + $0x1c8] sm:$0xff]  }
  0x22   :  { %1707 = vmatprep.subr.bf16.mxu1 %v1805_v42  ;;  %v67_v42 = vld [vmem:[%s2485_s0 + $0x1a0] sm:$0xff]  ;;  %v76_v57 = vld [vmem:[%s2485_s0 + $0x1e8] sm:$0xff] }
  0x23   :  { %944 = vmatmul.mubr.bf16.vlgmr.msra.gmra.mxu0 %v1387_v35  ;;  %v1421_v35 = vcombine.low %v48_v16, %v52_v17  ;;  %v1445_v3 = vcombine.low %v72_v56, %v76_v57  ;;  %v34_v16 = vld [vmem:[%s2485_s0 + $0x98] sm:$0xff] }
  0x24   :  { %1041 = vmatmul.mubr.bf16.vlgmr.msra.gmra.mxu1 %v1389_v38  ;;  %1644 = vmatpush3.bf16.msra.mxu0 %v1804_v41  ;;  %v1827_v38 = vld [vmem:[%s2484_s1 + $0x148] sm:$0xff]   ;;  %v63_v41 = vld [vmem:[%s2485_s0 + $0x180] sm:$0xff]  ;;  %v38_v17 = vld [vmem:[%s2485_s0 + $0xb8] sm:$0xff] }
  0x25   :  { %1708 = vmatpush3.bf16.msra.mxu1 %v1806_v43  ;;  %951 = vmatprep.mubr.bf16.mxu0 %v1396_v46  ;;  %v1830_v43 = vld [vmem:[%s2484_s1 + $0x188] sm:$0xff]   ;;  %v1831_v46 = vld [vmem:[%s2484_s1 + $0x140] sm:$0xff]   ;;  %v1435_v58 = vcombine.low %v63_v41, %v67_v42  ;;  %v1409_v27 = vcombine.low %v34_v16, %v38_v17 }
  0x26   :  { %1048 = vmatprep.mubr.bf16.mxu1 %v1398_v49  ;;  %1645 = vmatprep.subr.bf16.mxu0 %v1807_v50  ;;  %v1429_v49 = vcombine.low %v56_v29, %v60_v30  ;;  %v1436_v50 = vcombine.high %v63_v41, %v67_v42  ;;  %v49_v30 = vld [vmem:[%s2485_s0 + $0x110] sm:$0xff]  ;;  %v62_v41 = vld [vmem:[%s2485_s0 + $0x178] sm:$0xff] }
  0x27   :  { %1709 = vmatprep.subr.bf16.mxu1 %v1809_v54  ;;  %v71_v54 = vld [vmem:[%s2485_s0 + $0x1c0] sm:$0xff] }
  0x28   :  { %1646 = vmatpush3.bf16.msra.mxu0 %v1808_v52  ;;  %v1438_v52 = vcombine.high %v64_v44, %v68_v45 }
  0x29   :  { %1710 = vmatpush3.bf16.msra.mxu1 %v1810_v55  ;;  %1647 = vmatprep.subr.bf16.mxu0 %v1811_v62  ;;  %v75_v55 = vld [vmem:[%s2485_s0 + $0x1e0] sm:$0xff]  ;;  %v17_v62 = vld [vmem:[%s2485_s0 + $0x10] sm:$0xff] }
  0x2a   :  { %1711 = vmatprep.subr.bf16.mxu1 %v1813_v0  ;;  %v18_v0 = vld [vmem:[%s2485_s0 + $0x18] sm:$0xff] }
  0x2b   :  { %952 = vmatmul.mubr.bf16.gmra.mxu0 %v1395_v51  ;;  %v1833_v51 = vld [vmem:[%s2484_s1 + $0x1c0] sm:$0xff]  }
  0x2c   :  { %1049 = vmatmul.mubr.bf16.gmra.mxu1 %v1397_v53  ;;  %959 = vmatprep.mubr.bf16.mxu0 %v1404_v60  ;;  %v1834_v53 = vld [vmem:[%s2484_s1 + $0x180] sm:$0xff]   ;;  %v1444_v60 = vcombine.high %v71_v54, %v75_v55 }
  0x2d   :  { %1056 = vmatprep.mubr.bf16.mxu1 %v1406_v61  ;;  %1648 = vmatpush3.bf16.msra.mxu0 %v1812_v63  ;;  %v1446_v61 = vcombine.high %v72_v56, %v76_v57  ;;  %v21_v63 = vld [vmem:[%s2485_s0 + $0x30] sm:$0xff]  ;;  %v74_v56 = vld [vmem:[%s2485_s0 + $0x1d8] sm:$0xff] }
  0x2e   :  { %1712 = vmatpush3.bf16.msra.mxu1 %v1814_v1  ;;  %1649 = vmatprep.subr.bf16.mxu0 %v1815_v10  ;;  %v22_v1 = vld [vmem:[%s2485_s0 + $0x38] sm:$0xff]  ;;  %v1392_v4 = vcombine.high %v17_v62, %v21_v63  ;;  %v1391_v10 = vcombine.low %v17_v62, %v21_v63 }
  0x2f   :  { %1713 = vmatprep.subr.bf16.mxu1 %v1817_v12  ;;  %v1394_v5 = vcombine.high %v18_v0, %v22_v1  ;;  %v78_v57 = vld [vmem:[%s2485_s0 + $0x1f8] sm:$0xff] }
  0x30   :  { %v1449_v63 = vcombine.low %v74_v56, %v78_v57 }
  0x31   :  { %1650 = vmatpush3.bf16.msra.mxu0 %v1816_v11  ;;  %v1393_v11 = vcombine.low %v18_v0, %v22_v1 }
  0x32   :  { %1714 = vmatpush3.bf16.msra.mxu1 %v1818_v13  ;;  %1651 = vmatprep.subr.bf16.mxu0 %v1819_v18 }
  0x33   :  { %960 = vmatmul.mubr.bf16.gmra.mxu0 %v1403_v2  ;;  %1715 = vmatprep.subr.bf16.mxu1 %v1821_v23  ;;  %v1443_v2 = vcombine.low %v71_v54, %v75_v55  ;;  %v45_v23 = vld [vmem:[%s2485_s0 + $0xf0] sm:$0xff] }
  0x34   :  { %1057 = vmatmul.mubr.bf16.gmra.mxu1 %v1405_v6  ;;  %967 = vmatprep.mubr.bf16.mxu0 %v1412_v7  ;;  %v25_v6 = vld [vmem:[%s2485_s0 + $0x50] sm:$0xff] }
  0x35   :  { %1064 = vmatprep.mubr.bf16.mxu1 %v1414_v9  ;;  %1652 = vmatpush3.bf16.msra.mxu0 %v1820_v20  ;;  %v29_v7 = vld [vmem:[%s2485_s0 + $0x70] sm:$0xff]  ;;  %v30_v9 = vld [vmem:[%s2485_s0 + $0x78] sm:$0xff]  ;;  %v1408_v20 = vcombine.high %v33_v14, %v37_v15 }
  0x36   :  { %1716 = vmatpush3.bf16.msra.mxu1 %v1822_v25  ;;  %1653 = vmatprep.subr.bf16.mxu0 %v1823_v28  ;;  %v1400_v12 = vcombine.high %v25_v6, %v29_v7  ;;  %v1402_v13 = vcombine.high %v26_v8, %v30_v9  ;;  %v1399_v18 = vcombine.low %v25_v6, %v29_v7  ;;  %v46_v25 = vld [vmem:[%s2485_s0 + $0xf8] sm:$0xff]  ;;  %v73_v54 = vld [vmem:[%s2485_s0 + $0x1d0] sm:$0xff] }
  0x37   :  { %1717 = vmatprep.subr.bf16.mxu1 %v1825_v32  ;;  %v50_v32 = vld [vmem:[%s2485_s0 + $0x118] sm:$0xff]  ;;  %v77_v55 = vld [vmem:[%s2485_s0 + $0x1f0] sm:$0xff] }
  0x38   :  { %v1447_v62 = vcombine.low %v73_v54, %v77_v55 }
  0x39   :  { %1654 = vmatpush3.bf16.msra.mxu0 %v1824_v31  ;;  %v53_v31 = vld [vmem:[%s2485_s0 + $0x130] sm:$0xff] }
  0x3a   :  { %1718 = vmatpush3.bf16.msra.mxu1 %v1826_v33  ;;  %1655 = vmatprep.subr.bf16.mxu0 %v1827_v38  ;;  %v54_v33 = vld [vmem:[%s2485_s0 + $0x138] sm:$0xff]  ;;  %v57_v38 = vld [vmem:[%s2485_s0 + $0x150] sm:$0xff]  ;;  %v1423_v42 = vcombine.low %v49_v30, %v53_v31 }
  0x3b   :  { %968 = vmatmul.mubr.bf16.gmra.mxu0 %v1411_v19  ;;  %1719 = vmatprep.subr.bf16.mxu1 %v1829_v40  ;;  %v1401_v19 = vcombine.low %v26_v8, %v30_v9  ;;  %v58_v40 = vld [vmem:[%s2485_s0 + $0x158] sm:$0xff] }
  0x3c   :  { %1065 = vmatmul.mubr.bf16.gmra.mxu1 %v1413_v21  ;;  %975 = vmatprep.mubr.bf16.mxu0 %v1420_v22  ;;  %v1410_v21 = vcombine.high %v34_v16, %v38_v17  ;;  %v41_v22 = vld [vmem:[%s2485_s0 + $0xd0] sm:$0xff]  ;;  %v1434_v45 = vcombine.high %v58_v40, %v62_v41 }
  0x3d   :  { %1072 = vmatprep.mubr.bf16.mxu1 %v1422_v24  ;;  %1656 = vmatpush3.bf16.msra.mxu0 %v1828_v39  ;;  %v42_v24 = vld [vmem:[%s2485_s0 + $0xd8] sm:$0xff]  ;;  %v1416_v28 = vcombine.high %v41_v22, %v45_v23  ;;  %v61_v39 = vld [vmem:[%s2485_s0 + $0x170] sm:$0xff] }
  0x3e   :  { %1720 = vmatpush3.bf16.msra.mxu1 %v1830_v43  ;;  %1657 = vmatprep.subr.bf16.mxu0 %v1831_v46  ;;  %v1418_v29 = vcombine.high %v42_v24, %v46_v25  ;;  %v1425_v43 = vcombine.low %v50_v32, %v54_v33  ;;  %v1432_v44 = vcombine.high %v57_v38, %v61_v39  ;;  %v65_v46 = vld [vmem:[%s2485_s0 + $0x190] sm:$0xff] }
  0x3f   :  { %1721 = vmatprep.subr.bf16.mxu1 %v1833_v51  ;;  %v1433_v51 = vcombine.low %v58_v40, %v62_v41 }
  0x41   :  { %1658 = vmatpush3.bf16.msra.mxu0 %v1832_v48  ;;  %v66_v48 = vld [vmem:[%s2485_s0 + $0x198] sm:$0xff] }
  0x42   :  { %1722 = vmatpush3.bf16.msra.mxu1 %v1834_v53 }
  0x43   :  { %976 = vmatmul.mubr.bf16.gmra.mxu0 %v1419_v34  ;;  %v1415_v34 = vcombine.low %v41_v22, %v45_v23 }
  0x44   :  { %1073 = vmatmul.mubr.bf16.gmra.mxu1 %v1421_v35  ;;  %983 = vmatprep.mubr.bf16.mxu0 %v1428_v36  ;;  %v1417_v35 = vcombine.low %v42_v24, %v46_v25  ;;  %v1424_v36 = vcombine.high %v49_v30, %v53_v31 }
  0x45   :  { %1080 = vmatprep.mubr.bf16.mxu1 %v1430_v37  ;;  %v1426_v37 = vcombine.high %v50_v32, %v54_v33 }
  0x4b   :  { %984 = vmatmul.mubr.bf16.gmra.mxu0 %v1427_v47  ;;  %v69_v47 = vld [vmem:[%s2485_s0 + $0x1b0] sm:$0xff] }
  0x4c   :  { %1081 = vmatmul.mubr.bf16.gmra.mxu1 %v1429_v49  ;;  %991 = vmatprep.mubr.bf16.mxu0 %v1436_v50  ;;  %v70_v49 = vld [vmem:[%s2485_s0 + $0x1b8] sm:$0xff]  ;;  %v1431_v50 = vcombine.low %v57_v38, %v61_v39 }
  0x4d   :  { %1088 = vmatprep.mubr.bf16.mxu1 %v1438_v52  ;;  %v1440_v52 = vcombine.high %v65_v46, %v69_v47  ;;  %v1442_v53 = vcombine.high %v66_v48, %v70_v49 }
  0x53   :  { %992 = vmatmul.mubr.bf16.gmra.mxu0 %v1435_v58  ;;  %v1439_v58 = vcombine.low %v65_v46, %v69_v47 }
  0x54   :  { %1089 = vmatmul.mubr.bf16.gmra.mxu1 %v1437_v59  ;;  %999 = vmatprep.mubr.bf16.mxu0 %v1444_v60  ;;  %v1441_v59 = vcombine.low %v66_v48, %v70_v49  ;;  %v1448_v60 = vcombine.high %v73_v54, %v77_v55 }
  0x55   :  { %1096 = vmatprep.mubr.bf16.mxu1 %v1446_v61  ;;  %v1450_v61 = vcombine.high %v74_v56, %v78_v57 }
  0x5b   :  { %1000 = vmatmul.mubr.bf16.gmra.mxu0 %v1443_v2 }
  0x5c   :  { %1097 = vmatmul.mubr.bf16.gmra.mxu1 %v1445_v3  ;;  %1137 = vmatprep.mubr.bf16.mxu0 %v1392_v4 }
  0x5d   :  { %1234 = vmatprep.mubr.bf16.mxu1 %v1394_v5 }
  0x63   :  { %1138 = vmatmul.mubr.bf16.vlgmr.msra.gmra.mxu0 %v1391_v10 }
  0x64   :  { %1235 = vmatmul.mubr.bf16.vlgmr.msra.gmra.mxu1 %v1393_v11  ;;  %1145 = vmatprep.mubr.bf16.mxu0 %v1400_v12 }
  0x65   :  { %1242 = vmatprep.mubr.bf16.mxu1 %v1402_v13 }
  0x6b   :  { %1146 = vmatmul.mubr.bf16.gmra.mxu0 %v1399_v18 }
  0x6c   :  { %1243 = vmatmul.mubr.bf16.gmra.mxu1 %v1401_v19  ;;  %1153 = vmatprep.mubr.bf16.mxu0 %v1408_v20 }
  0x6d   :  { %1250 = vmatprep.mubr.bf16.mxu1 %v1410_v21 }
  0x73   :  { %1154 = vmatmul.mubr.bf16.gmra.mxu0 %v1407_v26 }
  0x74   :  { %1251 = vmatmul.mubr.bf16.gmra.mxu1 %v1409_v27  ;;  %1161 = vmatprep.mubr.bf16.mxu0 %v1416_v28 }
  0x75   :  { %1258 = vmatprep.mubr.bf16.mxu1 %v1418_v29 }
  0x7b   :  { %1162 = vmatmul.mubr.bf16.gmra.mxu0 %v1415_v34 }
  0x7c   :  { %1259 = vmatmul.mubr.bf16.gmra.mxu1 %v1417_v35  ;;  %1169 = vmatprep.mubr.bf16.mxu0 %v1424_v36 }
  0x7d   :  { %1266 = vmatprep.mubr.bf16.mxu1 %v1426_v37 }
  0x83   :  { %1170 = vmatmul.mubr.bf16.gmra.mxu0 %v1423_v42 }
  0x84   :  { %1267 = vmatmul.mubr.bf16.gmra.mxu1 %v1425_v43  ;;  %1177 = vmatprep.mubr.bf16.mxu0 %v1432_v44 }
  0x85   :  { %1274 = vmatprep.mubr.bf16.mxu1 %v1434_v45 }
  0x8b   :  { %1178 = vmatmul.mubr.bf16.gmra.mxu0 %v1431_v50 }
  0x8c   :  { %1275 = vmatmul.mubr.bf16.gmra.mxu1 %v1433_v51  ;;  %1185 = vmatprep.mubr.bf16.mxu0 %v1440_v52 }
  0x8d   :  { %1282 = vmatprep.mubr.bf16.mxu1 %v1442_v53 }
  0x93   :  { %1186 = vmatmul.mubr.bf16.gmra.mxu0 %v1439_v58 }
  0x94   :  { %1283 = vmatmul.mubr.bf16.gmra.mxu1 %v1441_v59  ;;  %1193 = vmatprep.mubr.bf16.mxu0 %v1448_v60 }
  0x95   :  { %1290 = vmatprep.mubr.bf16.mxu1 %v1450_v61 }
  0x9b   :  { %1194 = vmatmul.mubr.bf16.gmra.mxu0 %v1447_v62 }
  0x9c   :  { %1291 = vmatmul.mubr.bf16.gmra.mxu1 %v1449_v63 }
  0xe3   :  { %v2244_v0 = vpop.f32.mrf.mxu0 }
  0xe4   :  { %v2246_v1 = vpop.f32.mrf.mxu1 }
  0xe5   :  { %v1532_v2 = vpop.f32.mrf.mxu0 }
  0xe6   :  { %v1596_v3 = vpop.f32.mrf.mxu1  ;;  %v1533_v63 = vadd.f32 %v1532_v2, %v2244_v0 }
  0xe7   :  { %v2248_v4 = vpop.f32.mrf.mxu0 }
  0xe8   :  { %v2250_v5 = vpop.f32.mrf.mxu1 }
  0xe9   :  { %v2252_v6 = vpop.f32.mrf.mxu0 }
  0xea   :  { %v2254_v7 = vpop.f32.mrf.mxu1 }
  0xeb   :  { %v2256_v8 = vpop.f32.mrf.mxu0 }
  0xec   :  { %v2258_v9 = vpop.f32.mrf.mxu1 }
  0xed   :  { %v2260_v10 = vpop.f32.mrf.mxu0 }
  0xee   :  { %v2262_v11 = vpop.f32.mrf.mxu1 }
  0xef   :  { %v2264_v12 = vpop.f32.mrf.mxu0  ;;  %v1603_v2 = vadd.f32 %v2262_v11, %v2258_v9 }
  0xf0   :  { %v2266_v13 = vpop.f32.mrf.mxu1 }
  0xf1   :  { %v2268_v14 = vpop.f32.mrf.mxu0 }
  0xf2   :  { %v2270_v15 = vpop.f32.mrf.mxu1 }
  0xf3   :  { %v2272_v16 = vpop.f32.mrf.mxu0  ;;  %v1606_v9 = vadd.f32 %v2270_v15, %v2266_v13 }
  0xf4   :  { %v2274_v17 = vpop.f32.mrf.mxu1 }
  0xf5   :  { %v2276_v18 = vpop.f32.mrf.mxu0 }
  0xf6   :  { %v2278_v19 = vpop.f32.mrf.mxu1 }
  0xf7   :  { %v2280_v20 = vpop.f32.mrf.mxu0  ;;  %v1609_v13 = vadd.f32 %v2278_v19, %v2274_v17 }
  0xf8   :  { %v2282_v21 = vpop.f32.mrf.mxu1 }
  0xf9   :  { %v2284_v22 = vpop.f32.mrf.mxu0 }
  0xfa   :  { %v2286_v23 = vpop.f32.mrf.mxu1  ;;  %v1548_v17 = vadd.f32 %v2284_v22, %v2280_v20 }
  0xfb   :  { %v2288_v24 = vpop.f32.mrf.mxu0  ;;  %v1612_v19 = vadd.f32 %v2286_v23, %v2282_v21 }
  0xfc   :  { %v2290_v25 = vpop.f32.mrf.mxu1 }
  0xfd   :  { %v2292_v26 = vpop.f32.mrf.mxu0  ;;  %v1062_v23 = vadd.f32 %v1612_v19, %v1548_v17 }
  0xfe   :  { %v2294_v27 = vpop.f32.mrf.mxu1  ;;  %v1551_v20 = vadd.f32 %v2292_v26, %v2288_v24 }
  0xff   :  { %v2296_v28 = vpop.f32.mrf.mxu0  ;;  %v1615_v21 = vadd.f32 %v2294_v27, %v2290_v25 }
 0x100   :  { %v2298_v29 = vpop.f32.mrf.mxu1 }
 0x101   :  { %v2300_v30 = vpop.f32.mrf.mxu0  ;;  %v1067_v24 = vadd.f32 %v1615_v21, %v1551_v20 }
 0x102   :  { %v2302_v31 = vpop.f32.mrf.mxu1  ;;  %v1554_v25 = vadd.f32 %v2300_v30, %v2296_v28 }
 0x103   :  { %v2304_v32 = vpop.f32.mrf.mxu0  ;;  %v1618_v27 = vadd.f32 %v2302_v31, %v2298_v29 }
 0x104   :  { %v2306_v33 = vpop.f32.mrf.mxu1 }
 0x105   :  { %v2308_v34 = vpop.f32.mrf.mxu0  ;;  %v1070_v31 = vadd.f32 %v1618_v27, %v1554_v25 }
 0x106   :  { %v2310_v35 = vpop.f32.mrf.mxu1  ;;  %v1557_v28 = vadd.f32 %v2308_v34, %v2304_v32 }
 0x107   :  { %v2312_v36 = vpop.f32.mrf.mxu0  ;;  %v1621_v29 = vadd.f32 %v2310_v35, %v2306_v33 }
 0x108   :  { %v2314_v37 = vpop.f32.mrf.mxu1 }
 0x109   :  { %v2316_v38 = vpop.f32.mrf.mxu0  ;;  %v1075_v32 = vadd.f32 %v1621_v29, %v1557_v28 }
 0x10a   :  { %v2318_v39 = vpop.f32.mrf.mxu1  ;;  %v1560_v33 = vadd.f32 %v2316_v38, %v2312_v36 }
 0x10b   :  { %v2320_v40 = vpop.f32.mrf.mxu0  ;;  %v1624_v35 = vadd.f32 %v2318_v39, %v2314_v37 }
 0x10c   :  { %v2322_v41 = vpop.f32.mrf.mxu1 }
 0x10d   :  { %v2324_v42 = vpop.f32.mrf.mxu0  ;;  %v1078_v39 = vadd.f32 %v1624_v35, %v1560_v33 }
 0x10e   :  { %v2326_v43 = vpop.f32.mrf.mxu1  ;;  %v1563_v36 = vadd.f32 %v2324_v42, %v2320_v40 }
 0x10f   :  { %v2328_v44 = vpop.f32.mrf.mxu0  ;;  %v1627_v37 = vadd.f32 %v2326_v43, %v2322_v41 }
 0x110   :  { %v2330_v45 = vpop.f32.mrf.mxu1 }
 0x111   :  { %v2332_v46 = vpop.f32.mrf.mxu0  ;;  %v1083_v40 = vadd.f32 %v1627_v37, %v1563_v36 }
 0x112   :  { %v2334_v47 = vpop.f32.mrf.mxu1  ;;  %v1566_v41 = vadd.f32 %v2332_v46, %v2328_v44 }
 0x113   :  { %v2336_v48 = vpop.f32.mrf.mxu0  ;;  %v1630_v43 = vadd.f32 %v2334_v47, %v2330_v45 }
 0x114   :  { %v2338_v49 = vpop.f32.mrf.mxu1 }
 0x115   :  { %2489 = vst [vmem:[#allocation2_spill] sm:$0xff] %v2338_v49  ;;  %v2340_v50 = vpop.f32.mrf.mxu0 }
 0x116   :  { %v2342_v51 = vpop.f32.mrf.mxu1  ;;  %v1569_v44 = vadd.f32 %v2340_v50, %v2336_v48 }
 0x117   :  { %2490 = vst [vmem:[#allocation3_spill] sm:$0xff] %v2342_v51  ;;  %v2344_v52 = vpop.f32.mrf.mxu0 }
 0x118   :  { %2491 = vst [vmem:[#allocation4_spill] sm:$0xff] %v2344_v52  ;;  %v2346_v53 = vpop.f32.mrf.mxu1 }
 0x119   :  { %2492 = vst [vmem:[#allocation5_spill] sm:$0xff] %v2346_v53  ;;  %v2348_v54 = vpop.f32.mrf.mxu0  ;;  %v1597_v53 = vadd.f32 %v1596_v3, %v2246_v1  ;;  %v1539_v1 = vadd.f32 %v2260_v10, %v2256_v8  ;;  %v1542_v8 = vadd.f32 %v2268_v14, %v2264_v12  ;;  %v1545_v12 = vadd.f32 %v2276_v18, %v2272_v16 }
 0x11a   :  { %2493 = vst [vmem:[#allocation6_spill] sm:$0xff] %v2348_v54  ;;  %v2350_v55 = vpop.f32.mrf.mxu1 }
 0x11b   :  { %2494 = vst [vmem:[#allocation7_spill] sm:$0xff] %v2350_v55  ;;  %v2352_v56 = vpop.f32.mrf.mxu0  ;;  %v1054_v15 = vadd.f32 %v1606_v9, %v1542_v8  ;;  %v1059_v16 = vadd.f32 %v1609_v13, %v1545_v12 }
 0x11c   :  { %2495 = vst [vmem:[#allocation8_spill] sm:$0xff] %v2352_v56  ;;  %v2354_v57 = vpop.f32.mrf.mxu1  ;;  %v2503_v46 = vld [vmem:[#allocation2_spill] sm:$0xff] }
 0x11d   :  { %2496 = vst [vmem:[#allocation9_spill] sm:$0xff] %v2354_v57  ;;  %v2356_v58 = vpop.f32.mrf.mxu0  ;;  %v1043_v57 = vadd.f32 %v1597_v53, %v1533_v63 }
 0x11e   :  { %2497 = vst [vmem:[#allocation10_spill] sm:$0xff] %v2356_v58  ;;  %v2358_v59 = vpop.f32.mrf.mxu1  ;;  %v1536_v58 = vadd.f32 %v2252_v6, %v2248_v4 }
 0x11f   :  { %2498 = vst [vmem:[#allocation11_spill] sm:$0xff] %v2358_v59  ;;  %v2360_v60 = vpop.f32.mrf.mxu0  ;;  %v2505_v50 = vld [vmem:[#allocation4_spill] sm:$0xff] }
 0x120   :  { %2499 = vst [vmem:[#allocation12_spill] sm:$0xff] %v2360_v60  ;;  %v2362_v61 = vpop.f32.mrf.mxu1  ;;  %v1600_v60 = vadd.f32 %v2254_v7, %v2250_v5 }
 0x121   :  { %2500 = vst [vmem:[#allocation13_spill] sm:$0xff] %v2362_v61  ;;  %v2364_v62 = vpop.f32.mrf.mxu0 }
 0x122   :  { %2501 = vst [vmem:[#allocation14_spill] sm:$0xff] %v2364_v62  ;;  %v2368_v54 = vpop.f32.mrf.mxu1  ;;  %v1046_v53 = vadd.f32 %v1600_v60, %v1536_v58 }
 0x123   :  { %2502 = vst [vmem:[#allocation15_spill] sm:$0xff] %v2368_v54  ;;  %v1659_v55 = vpop.f32.mrf.mxu0 }
 0x124   :  { %v1723_v56 = vpop.f32.mrf.mxu1  ;;  %v2511_v37 = vld [vmem:[#allocation9_spill] sm:$0xff] }
 0x125   :  { %v1660_v52 = vpop.f32.mrf.mxu0 }
 0x126   :  { %v1661_v59 = vadd.f32 %v1660_v52, %v1659_v55  ;;  %v1724_v61 = vpop.f32.mrf.mxu1  ;;  %v1051_v55 = vadd.f32 %v1603_v2, %v1539_v1 }
 0x127   :  { %v1662_v51 = vpop.f32.mrf.mxu0  ;;  %v1725_v49 = vadd.f32 %v1724_v61, %v1723_v56 }
 0x128   :  { %v1140_v62 = vadd.f32 %v1661_v59, %v1043_v57  ;;  %v1726_v0 = vpop.f32.mrf.mxu1 }
 0x129   :  { %v1663_v3 = vpop.f32.mrf.mxu0 }
 0x12a   :  { %v1237_v63 = vadd.f32 %v1725_v49, %v1140_v62  ;;  %v1664_v54 = vadd.f32 %v1663_v3, %v1662_v51  ;;  %v1727_v4 = vpop.f32.mrf.mxu1 }
 0x12b   :  { %v1665_v6 = vpop.f32.mrf.mxu0  ;;  %v1728_v7 = vadd.f32 %v1727_v4, %v1726_v0 }
 0x12c   :  { %1299 = vst [vmem:[%s2486_s2] sm:$0xff] %v1237_v63  ;;  %v1143_v5 = vadd.f32 %v1664_v54, %v1046_v53  ;;  %v1729_v52 = vpop.f32.mrf.mxu1  ;;  %v1337_v51 = vmul.f32 %v1237_v63, %v1237_v63 }
 0x12d   :  { %v1666_v56 = vpop.f32.mrf.mxu0 }
 0x12e   :  { %v1240_v10 = vadd.f32 %v1728_v7, %v1143_v5  ;;  %v1667_v11 = vadd.f32 %v1666_v56, %v1665_v6  ;;  %v1730_v49 = vpop.f32.mrf.mxu1 }
 0x12f   :  { %v1668_v57 = vpop.f32.mrf.mxu0  ;;  %v1731_v60 = vadd.f32 %v1730_v49, %v1729_v52 }
 0x130   :  { %1300 = vst [vmem:[%s2486_s2 + $0x8] sm:$0xff] %v1240_v10  ;;  %v1315_v54 = vadd.f32 %v1240_v10, %v1237_v63  ;;  %v1338_v58 = vmul.f32 %v1240_v10, %v1240_v10  ;;  %v1148_v59 = vadd.f32 %v1667_v11, %v1051_v55  ;;  %v1732_v61 = vpop.f32.mrf.mxu1 }
 0x131   :  { %v1669_v14 = vpop.f32.mrf.mxu0 }
 0x132   :  { %v1353_v62 = vadd.f32 %v1338_v58, %v1337_v51  ;;  %v1245_v0 = vadd.f32 %v1731_v60, %v1148_v59  ;;  %v1670_v1 = vadd.f32 %v1669_v14, %v1668_v57  ;;  %v1733_v2 = vpop.f32.mrf.mxu1 }
 0x133   :  { %v1671_v3 = vpop.f32.mrf.mxu0  ;;  %v1734_v6 = vadd.f32 %v1733_v2, %v1732_v61 }
 0x134   :  { %1301 = vst [vmem:[%s2486_s2 + $0x10] sm:$0xff] %v1245_v0  ;;  %v1316_v53 = vadd.f32 %v1315_v54, %v1245_v0  ;;  %v1339_v63 = vmul.f32 %v1245_v0, %v1245_v0  ;;  %v1151_v4 = vadd.f32 %v1670_v1, %v1054_v15  ;;  %v1735_v5 = vpop.f32.mrf.mxu1 }
 0x135   :  { %v1672_v18 = vpop.f32.mrf.mxu0 }
 0x136   :  { %v1354_v7 = vadd.f32 %v1353_v62, %v1339_v63  ;;  %v1248_v52 = vadd.f32 %v1734_v6, %v1151_v4  ;;  %v1673_v55 = vadd.f32 %v1672_v18, %v1671_v3  ;;  %v1736_v56 = vpop.f32.mrf.mxu1 }
 0x137   :  { %v1674_v8 = vpop.f32.mrf.mxu0  ;;  %v1737_v49 = vadd.f32 %v1736_v56, %v1735_v5 }
 0x138   :  { %1302 = vst [vmem:[%s2486_s2 + $0x18] sm:$0xff] %v1248_v52  ;;  %v1317_v9 = vadd.f32 %v1316_v53, %v1248_v52  ;;  %v1340_v10 = vmul.f32 %v1248_v52, %v1248_v52  ;;  %v1156_v11 = vadd.f32 %v1673_v55, %v1059_v16  ;;  %v1738_v51 = vpop.f32.mrf.mxu1 }
 0x139   :  { %v1675_v22 = vpop.f32.mrf.mxu0 }
 0x13a   :  { %v1355_v57 = vadd.f32 %v1354_v7, %v1340_v10  ;;  %v1253_v54 = vadd.f32 %v1737_v49, %v1156_v11  ;;  %v1676_v58 = vadd.f32 %v1675_v22, %v1674_v8  ;;  %v1739_v59 = vpop.f32.mrf.mxu1 }
 0x13b   :  { %v1677_v60 = vpop.f32.mrf.mxu0  ;;  %v1740_v14 = vadd.f32 %v1739_v59, %v1738_v51 }
 0x13c   :  { %1303 = vst [vmem:[%s2486_s2 + $0x20] sm:$0xff] %v1253_v54  ;;  %v1318_v61 = vadd.f32 %v1317_v9, %v1253_v54  ;;  %v1341_v12 = vmul.f32 %v1253_v54, %v1253_v54  ;;  %v1159_v13 = vadd.f32 %v1676_v58, %v1062_v23  ;;  %v1741_v15 = vpop.f32.mrf.mxu1 }
 0x13d   :  { %v1678_v26 = vpop.f32.mrf.mxu0 }
 0x13e   :  { %v1356_v62 = vadd.f32 %v1355_v57, %v1341_v12  ;;  %v1256_v0 = vadd.f32 %v1740_v14, %v1159_v13  ;;  %v1679_v1 = vadd.f32 %v1678_v26, %v1677_v60  ;;  %v1742_v2 = vpop.f32.mrf.mxu1 }
 0x13f   :  { %v1680_v3 = vpop.f32.mrf.mxu0  ;;  %v1743_v6 = vadd.f32 %v1742_v2, %v1741_v15 }
 0x140   :  { %1304 = vst [vmem:[%s2486_s2 + $0x28] sm:$0xff] %v1256_v0  ;;  %v1319_v53 = vadd.f32 %v1318_v61, %v1256_v0  ;;  %v1342_v63 = vmul.f32 %v1256_v0, %v1256_v0  ;;  %v1164_v4 = vadd.f32 %v1679_v1, %v1067_v24  ;;  %v1744_v5 = vpop.f32.mrf.mxu1 }
 0x141   :  { %v1681_v30 = vpop.f32.mrf.mxu0 }
 0x142   :  { %v1357_v16 = vadd.f32 %v1356_v62, %v1342_v63  ;;  %v1261_v17 = vadd.f32 %v1743_v6, %v1164_v4  ;;  %v1682_v18 = vadd.f32 %v1681_v30, %v1680_v3  ;;  %v1745_v19 = vpop.f32.mrf.mxu1  ;;  %v2504_v6 = vld [vmem:[#allocation3_spill] sm:$0xff] }
 0x143   :  { %v1683_v7 = vpop.f32.mrf.mxu0  ;;  %v1746_v8 = vadd.f32 %v1745_v19, %v1744_v5  ;;  %v1633_v45 = vadd.f32 %v2504_v6, %v2503_v46  ;;  %v1086_v5 = vadd.f32 %v1630_v43, %v1566_v41  ;;  %v2513_v43 = vld [vmem:[#allocation12_spill] sm:$0xff] }
 0x144   :  { %1305 = vst [vmem:[%s2486_s2 + $0x30] sm:$0xff] %v1261_v17  ;;  %v1320_v52 = vadd.f32 %v1319_v53, %v1261_v17  ;;  %v1343_v55 = vmul.f32 %v1261_v17, %v1261_v17  ;;  %v1167_v56 = vadd.f32 %v1682_v18, %v1070_v31  ;;  %v1747_v9 = vpop.f32.mrf.mxu1 }
 0x145   :  { %v1684_v34 = vpop.f32.mrf.mxu0  ;;  %v1091_v48 = vadd.f32 %v1633_v45, %v1569_v44 }
 0x146   :  { %v1358_v10 = vadd.f32 %v1357_v16, %v1343_v55  ;;  %v1264_v11 = vadd.f32 %v1746_v8, %v1167_v56  ;;  %v1685_v49 = vadd.f32 %v1684_v34, %v1683_v7  ;;  %v1748_v51 = vpop.f32.mrf.mxu1  ;;  %v2506_v55 = vld [vmem:[#allocation6_spill] sm:$0xff] }
 0x147   :  { %v1686_v20 = vpop.f32.mrf.mxu0  ;;  %v1749_v57 = vadd.f32 %v1748_v51, %v1747_v9  ;;  %v1572_v56 = vadd.f32 %v2506_v55, %v2505_v50  ;;  %v2507_v9 = vld [vmem:[#allocation5_spill] sm:$0xff] }
 0x148   :  { %1306 = vst [vmem:[%s2486_s2 + $0x38] sm:$0xff] %v1264_v11  ;;  %v1321_v21 = vadd.f32 %v1320_v52, %v1264_v11  ;;  %v1344_v22 = vmul.f32 %v1264_v11, %v1264_v11  ;;  %v1172_v23 = vadd.f32 %v1685_v49, %v1075_v32  ;;  %v1750_v54 = vpop.f32.mrf.mxu1  ;;  %v2508_v32 = vld [vmem:[#allocation7_spill] sm:$0xff] }
 0x149   :  { %v1687_v38 = vpop.f32.mrf.mxu0  ;;  %v1636_v33 = vadd.f32 %v2508_v32, %v2507_v9 }
 0x14a   :  { %v1359_v58 = vadd.f32 %v1358_v10, %v1344_v22  ;;  %v1269_v59 = vadd.f32 %v1749_v57, %v1172_v23  ;;  %v1688_v60 = vadd.f32 %v1687_v38, %v1686_v20  ;;  %v1751_v61 = vpop.f32.mrf.mxu1  ;;  %v2509_v57 = vld [vmem:[#allocation8_spill] sm:$0xff]  ;;  %v2512_v38 = vld [vmem:[#allocation11_spill] sm:$0xff] }
 0x14b   :  { %v1689_v12 = vpop.f32.mrf.mxu0  ;;  %v1752_v24 = vadd.f32 %v1751_v61, %v1750_v54  ;;  %v2510_v54 = vld [vmem:[#allocation10_spill] sm:$0xff] }
 0x14c   :  { %1307 = vst [vmem:[%s2486_s2 + $0x40] sm:$0xff] %v1269_v59  ;;  %v1322_v13 = vadd.f32 %v1321_v21, %v1269_v59  ;;  %v1345_v14 = vmul.f32 %v1269_v59, %v1269_v59  ;;  %v1175_v15 = vadd.f32 %v1688_v60, %v1078_v39  ;;  %v1753_v25 = vpop.f32.mrf.mxu1  ;;  %v1575_v36 = vadd.f32 %v2510_v54, %v2509_v57 }
 0x14d   :  { %v1690_v42 = vpop.f32.mrf.mxu0  ;;  %v1639_v39 = vadd.f32 %v2512_v38, %v2511_v37  ;;  %v1094_v59 = vadd.f32 %v1636_v33, %v1572_v56 }
 0x14e   :  { %v1360_v26 = vadd.f32 %v1359_v58, %v1345_v14  ;;  %v1272_v27 = vadd.f32 %v1752_v24, %v1175_v15  ;;  %v1691_v62 = vadd.f32 %v1690_v42, %v1689_v12  ;;  %v1754_v0 = vpop.f32.mrf.mxu1 }
 0x14f   :  { %v1692_v1 = vpop.f32.mrf.mxu0  ;;  %v1755_v63 = vadd.f32 %v1754_v0, %v1753_v25  ;;  %v1099_v42 = vadd.f32 %v1639_v39, %v1575_v36  ;;  %v2515_v0 = vld [vmem:[#allocation13_spill] sm:$0xff] }
 0x150   :  { %1308 = vst [vmem:[%s2486_s2 + $0x48] sm:$0xff] %v1272_v27  ;;  %v1323_v2 = vadd.f32 %v1322_v13, %v1272_v27  ;;  %v1346_v3 = vmul.f32 %v1272_v27, %v1272_v27  ;;  %v1180_v53 = vadd.f32 %v1691_v62, %v1083_v40  ;;  %v1756_v4 = vpop.f32.mrf.mxu1 }
 0x151   :  { %v1693_v47 = vpop.f32.mrf.mxu0 }
 0x152   :  { %v1361_v28 = vadd.f32 %v1360_v26, %v1346_v3  ;;  %v1277_v29 = vadd.f32 %v1755_v63, %v1180_v53  ;;  %v1694_v30 = vadd.f32 %v1693_v47, %v1692_v1  ;;  %v1757_v31 = vpop.f32.mrf.mxu1  ;;  %v2514_v26 = vld [vmem:[#allocation14_spill] sm:$0xff]  ;;  %v2516_v1 = vld [vmem:[#allocation15_spill] sm:$0xff] }
 0x153   :  { %v1695_v16 = vpop.f32.mrf.mxu0  ;;  %v1758_v7 = vadd.f32 %v1757_v31, %v1756_v4  ;;  %v1578_v27 = vadd.f32 %v2514_v26, %v2513_v43 }
 0x154   :  { %1309 = vst [vmem:[%s2486_s2 + $0x50] sm:$0xff] %v1277_v29  ;;  %v1324_v17 = vadd.f32 %v1323_v2, %v1277_v29  ;;  %v1347_v18 = vmul.f32 %v1277_v29, %v1277_v29  ;;  %v1183_v19 = vadd.f32 %v1694_v30, %v1086_v5  ;;  %v1759_v52 = vpop.f32.mrf.mxu1  ;;  %v1642_v2 = vadd.f32 %v2516_v1, %v2515_v0 }
 0x155   :  { %v1696_v8 = vpop.f32.mrf.mxu0 }
 0x156   :  { %v1362_v34 = vadd.f32 %v1361_v28, %v1347_v18  ;;  %v1280_v35 = vadd.f32 %v1758_v7, %v1183_v19  ;;  %v1697_v10 = vadd.f32 %v1696_v8, %v1695_v16  ;;  %v1760_v11 = vpop.f32.mrf.mxu1  ;;  %v1102_v29 = vadd.f32 %v1642_v2, %v1578_v27 }
 0x157   :  { %v1698_v49 = vpop.f32.mrf.mxu0  ;;  %v1761_v22 = vadd.f32 %v1760_v11, %v1759_v52 }
 0x158   :  { %1310 = vst [vmem:[%s2486_s2 + $0x58] sm:$0xff] %v1280_v35  ;;  %v1325_v51 = vadd.f32 %v1324_v17, %v1280_v35  ;;  %v1348_v20 = vmul.f32 %v1280_v35, %v1280_v35  ;;  %v1188_v21 = vadd.f32 %v1697_v10, %v1091_v48  ;;  %v1762_v23 = vpop.f32.mrf.mxu1 }
 0x159   :  { %v1699_v58 = vpop.f32.mrf.mxu0 }
 0x15a   :  { %v1363_v60 = vadd.f32 %v1362_v34, %v1348_v20  ;;  %v1285_v61 = vadd.f32 %v1761_v22, %v1188_v21  ;;  %v1700_v12 = vadd.f32 %v1699_v58, %v1698_v49  ;;  %v1763_v13 = vpop.f32.mrf.mxu1 }
 0x15b   :  { %v1701_v14 = vpop.f32.mrf.mxu0  ;;  %v1764_v40 = vadd.f32 %v1763_v13, %v1762_v23 }
 0x15c   :  { %1311 = vst [vmem:[%s2486_s2 + $0x60] sm:$0xff] %v1285_v61  ;;  %v1326_v15 = vadd.f32 %v1325_v51, %v1285_v61  ;;  %v1349_v24 = vmul.f32 %v1285_v61, %v1285_v61  ;;  %v1191_v25 = vadd.f32 %v1700_v12, %v1094_v59  ;;  %v1765_v41 = vpop.f32.mrf.mxu1 }
 0x15d   :  { %v1702_v62 = vpop.f32.mrf.mxu0 }
 0x15e   :  { %v1364_v3 = vadd.f32 %v1363_v60, %v1349_v24  ;;  %v1288_v53 = vadd.f32 %v1764_v40, %v1191_v25  ;;  %v1703_v63 = vadd.f32 %v1702_v62, %v1701_v14  ;;  %v1766_v4 = vpop.f32.mrf.mxu1 }
 0x15f   :  { %v1704_v44 = vpop.f32.mrf.mxu0  ;;  %v1767_v47 = vadd.f32 %v1766_v4, %v1765_v41 }
 0x160   :  { %1312 = vst [vmem:[%s2486_s2 + $0x68] sm:$0xff] %v1288_v53  ;;  %v1327_v46 = vadd.f32 %v1326_v15, %v1288_v53  ;;  %v1350_v6 = vmul.f32 %v1288_v53, %v1288_v53  ;;  %v1196_v45 = vadd.f32 %v1703_v63, %v1099_v42  ;;  %v1768_v5 = vpop.f32.mrf.mxu1 }
 0x161   :  { %v1705_v28 = vpop.f32.mrf.mxu0 }
 0x162   :  { %v1365_v30 = vadd.f32 %v1364_v3, %v1350_v6  ;;  %v1293_v31 = vadd.f32 %v1767_v47, %v1196_v45  ;;  %v1706_v16 = vadd.f32 %v1705_v28, %v1704_v44  ;;  %v1769_v17 = vpop.f32.mrf.mxu1 }
 0x163   :  { %v1770_v52 = vadd.f32 %v1769_v17, %v1768_v5 }
 0x164   :  { %1313 = vst [vmem:[%s2486_s2 + $0x70] sm:$0xff] %v1293_v31  ;;  %v1328_v18 = vadd.f32 %v1327_v46, %v1293_v31  ;;  %v1351_v19 = vmul.f32 %v1293_v31, %v1293_v31  ;;  %v1199_v7 = vadd.f32 %v1706_v16, %v1102_v29 }
 0x166   :  { %v1366_v48 = vadd.f32 %v1365_v30, %v1351_v19  ;;  %v1296_v50 = vadd.f32 %v1770_v52, %v1199_v7 }
 0x168   :  { %1314 = vst [vmem:[%s2486_s2 + $0x78] sm:$0xff] %v1296_v50  ;;  %v1329_v55 = vadd.f32 %v1328_v18, %v1296_v50  ;;  %v1352_v56 = vmul.f32 %v1296_v50, %v1296_v50 }
 0x16a   :  { %v1330_v8 = vrot.slane %v1329_v55, 4  ;;  %v1367_v9 = vadd.f32 %v1366_v48, %v1352_v56 }
 0x16c   :  { %v1331_v32 = vadd.f32 %v1330_v8, %v1329_v55  ;;  %v1368_v33 = vrot.slane %v1367_v9, 4 }
 0x16e   :  { %v1332_v34 = vrot.slane %v1331_v32, 2  ;;  %v1369_v35 = vadd.f32 %v1368_v33, %v1367_v9 }
 0x170   :  { %v1333_v10 = vadd.f32 %v1332_v34, %v1331_v32  ;;  %v1370_v11 = vrot.slane %v1369_v35, 2 }
 0x172   :  { %v1334_v49 = vrot.slane %v1333_v10, 1  ;;  %v1371_v51 = vadd.f32 %v1370_v11, %v1369_v35 }
 0x174   :  { %v1335_v20 = vadd.f32 %v1334_v49, %v1333_v10  ;;  %v1372_v21 = vrot.slane %v1371_v51, 1 }
 0x176   :  { %1336 = vst [vmem:[%s2487_s3] sm:$0x1] %v1335_v20  ;;  %v1373_v22 = vadd.f32 %v1372_v21, %v1371_v51 }
 0x178   :  { %1374 = vst [vmem:[%s2488_s4] sm:$0x1] %v1373_v22 }

// kernel: generator_forward.14
= control target key start
LH: loop header
LB: loop body
LE: loop exit
PB: predicated region body
PF: predicated region fallthrough
CT: control target
= control target key end

     0   :  { %s453_s12 = smov 0   ;;  %s612_s0 = inlined_call_operand.vmem [shape: f32[512,128], index: 0, kind: input, shape index: {}]   ;;  %s613_s1 = inlined_call_operand.vmem [shape: f32[1,128], index: 1, kind: input, shape index: {}]   ;;  %s614_s2 = inlined_call_operand.vmem [shape: f32[1,128], index: 2, kind: input, shape index: {}]   ;;  %s615_s3 = inlined_call_operand.vmem [shape: f32[512,128], index: 3, kind: output, shape index: {}]  }
   0x1 LB: > { %s404_s13 = sadd.s32 4294967295, %s431_s12   ;;  %p408_p0 = scmp.ge.s32.totalorder %s431_s12, 1  ;;  %s431_s12 = sphi %s453_s12, %s13_s12  }
   0x2   : > { %p138_p1 = scmp.lt.s32.totalorder %s431_s12, 3 }
   0x4   : > { %p139_p2 = pnand %p408_p0, %p138_p1 }
   0x5   : > { %s409_s14 = sshll.u32 (!%p139_p2), %s404_s13, 5 }
   0x6   : > { %142 = sbr.rel (%p139_p2) target bundleno = 44 (0x2c), region = 32  ;;  %p163_p3 = scmp.lt.s32.totalorder (!%p139_p2), %s409_s14, 63 }
   0xb   : > { %s617_s14 = smov (!%p163_p3, %s409_s14), 63  ;;  %v464_v0 = vld [vmem:[%s613_s1] ss:$0 sm:$0xff] }
   0xc   : > { %s410_s15 = sshll.u32 %s617_s14, 3  ;;  %v474_v1 = vld [vmem:[%s614_s2] ss:$0 sm:$0xff] }
   0xd   : > { %s469_s20 = scalar_lea.vmem %s612_s0, %s410_s15  ;;  %s497_s25 = scalar_lea.vmem %s615_s3, %s410_s15 }
   0xe   : > { %v174_v2 = vld [vmem:[%s469_s20] sm:$0xff]  ;;  %v175_v3 = vld [vmem:[%s469_s20 + $0x8] sm:$0xff]  ;;  %v176_v4 = vld [vmem:[%s469_s20 + $0x10] sm:$0xff] }
   0xf   : > { %v213_v5 = vmul.f32 %v464_v0, %v174_v2  ;;  %v214_v6 = vmul.f32 %v464_v0, %v175_v3  ;;  %v215_v7 = vmul.f32 %v464_v0, %v176_v4  ;;  %v177_v8 = vld [vmem:[%s469_s20 + $0x18] sm:$0xff]  ;;  %v178_v9 = vld [vmem:[%s469_s20 + $0x20] sm:$0xff]  ;;  %v179_v10 = vld [vmem:[%s469_s20 + $0x28] sm:$0xff] }
  0x10   : > { %v216_v11 = vmul.f32 %v464_v0, %v177_v8  ;;  %v217_v12 = vmul.f32 %v464_v0, %v178_v9  ;;  %v218_v13 = vmul.f32 %v464_v0, %v179_v10  ;;  %v180_v14 = vld [vmem:[%s469_s20 + $0x30] sm:$0xff]  ;;  %v181_v15 = vld [vmem:[%s469_s20 + $0x38] sm:$0xff]  ;;  %v182_v24 = vld [vmem:[%s469_s20 + $0x40] sm:$0xff] }
  0x11   : > { %v252_v16 = vadd.f32 %v474_v1, %v213_v5  ;;  %v253_v17 = vadd.f32 %v474_v1, %v214_v6  ;;  %v254_v18 = vadd.f32 %v474_v1, %v215_v7  ;;  %v219_v19 = vmul.f32 %v464_v0, %v180_v14  ;;  %v183_v25 = vld [vmem:[%s469_s20 + $0x48] sm:$0xff]  ;;  %v184_v26 = vld [vmem:[%s469_s20 + $0x50] sm:$0xff]  ;;  %v185_v31 = vld [vmem:[%s469_s20 + $0x58] sm:$0xff] }
  0x12   : > { %v255_v20 = vadd.f32 %v474_v1, %v216_v11  ;;  %v256_v21 = vadd.f32 %v474_v1, %v217_v12  ;;  %v257_v22 = vadd.f32 %v474_v1, %v218_v13  ;;  %v220_v23 = vmul.f32 %v464_v0, %v181_v15  ;;  %v186_v32 = vld [vmem:[%s469_s20 + $0x60] sm:$0xff]  ;;  %v187_v33 = vld [vmem:[%s469_s20 + $0x68] sm:$0xff]  ;;  %v188_v38 = vld [vmem:[%s469_s20 + $0x70] sm:$0xff] }
  0x13   : > { %v284_v27 = vmax.f32 %v252_v16, 0.0  ;;  %v285_v28 = vmax.f32 %v253_v17, 0.0  ;;  %v286_v29 = vmax.f32 %v254_v18, 0.0  ;;  %v258_v30 = vadd.f32 %v474_v1, %v219_v19  ;;  %v189_v43 = vld [vmem:[%s469_s20 + $0x78] sm:$0xff]  ;;  %v190_v56 = vld [vmem:[%s469_s20 + $0x80] sm:$0xff]  ;;  %v191_v57 = vld [vmem:[%s469_s20 + $0x88] sm:$0xff] }
  0x14   : > { %v287_v34 = vmax.f32 %v255_v20, 0.0  ;;  %v288_v35 = vmax.f32 %v256_v21, 0.0  ;;  %v289_v36 = vmax.f32 %v257_v22, 0.0  ;;  %v259_v37 = vadd.f32 %v474_v1, %v220_v23  ;;  %v192_v58 = vld [vmem:[%s469_s20 + $0x90] sm:$0xff]  ;;  %v193_v63 = vld [vmem:[%s469_s20 + $0x98] sm:$0xff]  ;;  %v194_v2 = vld [vmem:[%s469_s20 + $0xa0] sm:$0xff] }
  0x15   : > { %316 = vst [vmem:[%s497_s25] sm:$0xff] %v284_v27  ;;  %317 = vst [vmem:[%s497_s25 + $0x8] sm:$0xff] %v285_v28  ;;  %v290_v39 = vmax.f32 %v258_v30, 0.0  ;;  %v221_v40 = vmul.f32 %v464_v0, %v182_v24  ;;  %v222_v41 = vmul.f32 %v464_v0, %v183_v25  ;;  %v223_v42 = vmul.f32 %v464_v0, %v184_v26  ;;  %v195_v3 = vld [vmem:[%s469_s20 + $0xa8] sm:$0xff]  ;;  %v196_v8 = vld [vmem:[%s469_s20 + $0xb0] sm:$0xff] }
  0x16   : > { %318 = vst [vmem:[%s497_s25 + $0x10] sm:$0xff] %v286_v29  ;;  %319 = vst [vmem:[%s497_s25 + $0x18] sm:$0xff] %v287_v34  ;;  %v291_v44 = vmax.f32 %v259_v37, 0.0  ;;  %v224_v45 = vmul.f32 %v464_v0, %v185_v31  ;;  %v225_v46 = vmul.f32 %v464_v0, %v186_v32  ;;  %v226_v47 = vmul.f32 %v464_v0, %v187_v33  ;;  %v197_v13 = vld [vmem:[%s469_s20 + $0xb8] sm:$0xff]  ;;  %v198_v26 = vld [vmem:[%s469_s20 + $0xc0] sm:$0xff] }
  0x17   : > { %320 = vst [vmem:[%s497_s25 + $0x20] sm:$0xff] %v288_v35  ;;  %321 = vst [vmem:[%s497_s25 + $0x28] sm:$0xff] %v289_v36  ;;  %v260_v48 = vadd.f32 %v474_v1, %v221_v40  ;;  %v261_v49 = vadd.f32 %v474_v1, %v222_v41  ;;  %v262_v50 = vadd.f32 %v474_v1, %v223_v42  ;;  %v199_v27 = vld [vmem:[%s469_s20 + $0xc8] sm:$0xff]  ;;  %v200_v28 = vld [vmem:[%s469_s20 + $0xd0] sm:$0xff] }
  0x18   : > { %322 = vst [vmem:[%s497_s25 + $0x30] sm:$0xff] %v290_v39  ;;  %v227_v51 = vmul.f32 %v464_v0, %v188_v38  ;;  %323 = vst [vmem:[%s497_s25 + $0x38] sm:$0xff] %v291_v44  ;;  %v263_v52 = vadd.f32 %v474_v1, %v224_v45  ;;  %v264_v53 = vadd.f32 %v474_v1, %v225_v46  ;;  %v201_v33 = vld [vmem:[%s469_s20 + $0xd8] sm:$0xff]  ;;  %v202_v34 = vld [vmem:[%s469_s20 + $0xe0] sm:$0xff] }
  0x19   : > { %v265_v54 = vadd.f32 %v474_v1, %v226_v47  ;;  %v228_v55 = vmul.f32 %v464_v0, %v189_v43  ;;  %v292_v59 = vmax.f32 %v260_v48, 0.0  ;;  %v293_v60 = vmax.f32 %v261_v49, 0.0  ;;  %v203_v35 = vld [vmem:[%s469_s20 + $0xe8] sm:$0xff]  ;;  %v204_v40 = vld [vmem:[%s469_s20 + $0xf0] sm:$0xff]  ;;  %v205_v45 = vld [vmem:[%s469_s20 + $0xf8] sm:$0xff] }
  0x1a   : > { %v294_v61 = vmax.f32 %v262_v50, 0.0  ;;  %v266_v62 = vadd.f32 %v474_v1, %v227_v51  ;;  %v295_v4 = vmax.f32 %v263_v52, 0.0  ;;  %v296_v5 = vmax.f32 %v264_v53, 0.0 }
  0x1b   : > { %v297_v6 = vmax.f32 %v265_v54, 0.0  ;;  %v267_v7 = vadd.f32 %v474_v1, %v228_v55  ;;  %324 = vst [vmem:[%s497_s25 + $0x40] sm:$0xff] %v292_v59  ;;  %325 = vst [vmem:[%s497_s25 + $0x48] sm:$0xff] %v293_v60  ;;  %v229_v10 = vmul.f32 %v464_v0, %v190_v56  ;;  %v230_v11 = vmul.f32 %v464_v0, %v191_v57 }
  0x1c   : > { %326 = vst [vmem:[%s497_s25 + $0x50] sm:$0xff] %v294_v61  ;;  %v298_v9 = vmax.f32 %v266_v62, 0.0  ;;  %v231_v12 = vmul.f32 %v464_v0, %v192_v58  ;;  %327 = vst [vmem:[%s497_s25 + $0x58] sm:$0xff] %v295_v4  ;;  %v232_v15 = vmul.f32 %v464_v0, %v193_v63  ;;  %v233_v16 = vmul.f32 %v464_v0, %v194_v2 }
  0x1d   : > { %328 = vst [vmem:[%s497_s25 + $0x60] sm:$0xff] %v296_v5  ;;  %329 = vst [vmem:[%s497_s25 + $0x68] sm:$0xff] %v297_v6  ;;  %v299_v14 = vmax.f32 %v267_v7, 0.0  ;;  %v234_v17 = vmul.f32 %v464_v0, %v195_v3  ;;  %v268_v18 = vadd.f32 %v474_v1, %v229_v10  ;;  %v269_v19 = vadd.f32 %v474_v1, %v230_v11 }
  0x1e   : > { %330 = vst [vmem:[%s497_s25 + $0x70] sm:$0xff] %v298_v9  ;;  %v270_v20 = vadd.f32 %v474_v1, %v231_v12  ;;  %v235_v21 = vmul.f32 %v464_v0, %v196_v8  ;;  %v271_v22 = vadd.f32 %v474_v1, %v232_v15  ;;  %v272_v23 = vadd.f32 %v474_v1, %v233_v16 }
  0x1f   : > { %331 = vst [vmem:[%s497_s25 + $0x78] sm:$0xff] %v299_v14  ;;  %v273_v24 = vadd.f32 %v474_v1, %v234_v17  ;;  %v236_v25 = vmul.f32 %v464_v0, %v197_v13  ;;  %v300_v29 = vmax.f32 %v268_v18, 0.0  ;;  %v301_v30 = vmax.f32 %v269_v19, 0.0 }
  0x20   : > { %v302_v31 = vmax.f32 %v270_v20, 0.0  ;;  %v274_v32 = vadd.f32 %v474_v1, %v235_v21  ;;  %v303_v36 = vmax.f32 %v271_v22, 0.0  ;;  %v304_v37 = vmax.f32 %v272_v23, 0.0 }
  0x21   : > { %v305_v38 = vmax.f32 %v273_v24, 0.0  ;;  %v275_v39 = vadd.f32 %v474_v1, %v236_v25  ;;  %332 = vst [vmem:[%s497_s25 + $0x80] sm:$0xff] %v300_v29  ;;  %333 = vst [vmem:[%s497_s25 + $0x88] sm:$0xff] %v301_v30  ;;  %v237_v42 = vmul.f32 %v464_v0, %v198_v26  ;;  %v238_v43 = vmul.f32 %v464_v0, %v199_v27 }
  0x22   : > { %334 = vst [vmem:[%s497_s25 + $0x90] sm:$0xff] %v302_v31  ;;  %v306_v41 = vmax.f32 %v274_v32, 0.0  ;;  %v239_v44 = vmul.f32 %v464_v0, %v200_v28  ;;  %335 = vst [vmem:[%s497_s25 + $0x98] sm:$0xff] %v303_v36  ;;  %v240_v47 = vmul.f32 %v464_v0, %v201_v33  ;;  %v241_v48 = vmul.f32 %v464_v0, %v202_v34 }
  0x23   : > { %336 = vst [vmem:[%s497_s25 + $0xa0] sm:$0xff] %v304_v37  ;;  %337 = vst [vmem:[%s497_s25 + $0xa8] sm:$0xff] %v305_v38  ;;  %v307_v46 = vmax.f32 %v275_v39, 0.0  ;;  %v242_v49 = vmul.f32 %v464_v0, %v203_v35  ;;  %v276_v50 = vadd.f32 %v474_v1, %v237_v42  ;;  %v277_v51 = vadd.f32 %v474_v1, %v238_v43 }
  0x24   : > { %338 = vst [vmem:[%s497_s25 + $0xb0] sm:$0xff] %v306_v41  ;;  %v278_v52 = vadd.f32 %v474_v1, %v239_v44  ;;  %v243_v53 = vmul.f32 %v464_v0, %v204_v40  ;;  %v279_v54 = vadd.f32 %v474_v1, %v240_v47  ;;  %v280_v55 = vadd.f32 %v474_v1, %v241_v48 }
  0x25   : > { %339 = vst [vmem:[%s497_s25 + $0xb8] sm:$0xff] %v307_v46  ;;  %v281_v56 = vadd.f32 %v474_v1, %v242_v49  ;;  %v244_v57 = vmul.f32 %v464_v0, %v205_v45  ;;  %v308_v58 = vmax.f32 %v276_v50, 0.0  ;;  %v309_v59 = vmax.f32 %v277_v51, 0.0 }
  0x26   : > { %v310_v60 = vmax.f32 %v278_v52, 0.0  ;;  %v282_v61 = vadd.f32 %v474_v1, %v243_v53  ;;  %v311_v62 = vmax.f32 %v279_v54, 0.0  ;;  %v312_v63 = vmax.f32 %v280_v55, 0.0 }
  0x27   : > { %v313_v2 = vmax.f32 %v281_v56, 0.0  ;;  %v283_v3 = vadd.f32 %v474_v1, %v244_v57  ;;  %340 = vst [vmem:[%s497_s25 + $0xc0] sm:$0xff] %v308_v58  ;;  %341 = vst [vmem:[%s497_s25 + $0xc8] sm:$0xff] %v309_v59 }
  0x28   : > { %342 = vst [vmem:[%s497_s25 + $0xd0] sm:$0xff] %v310_v60  ;;  %v314_v4 = vmax.f32 %v282_v61, 0.0  ;;  %343 = vst [vmem:[%s497_s25 + $0xd8] sm:$0xff] %v311_v62 }
  0x29   : > { %344 = vst [vmem:[%s497_s25 + $0xe0] sm:$0xff] %v312_v63  ;;  %345 = vst [vmem:[%s497_s25 + $0xe8] sm:$0xff] %v313_v2  ;;  %v315_v0 = vmax.f32 %v283_v3, 0.0 }
  0x2a   : > { %346 = vst [vmem:[%s497_s25 + $0xf0] sm:$0xff] %v314_v4 }
  0x2b   : > { %347 = vst [vmem:[%s497_s25 + $0xf8] sm:$0xff] %v315_v0 }
  0x2c PF: > { %s13_s12 = sadd.s32 1, %s431_s12  }
  0x2d   : > { %p10_p4 = scmp.ge.s32.totalorder %s13_s12, 4  }
  0x2f   :  { %12 = sbr.rel (!%p10_p4) target bundleno = 1 (0x1), region = 62 }

// kernel: generator_forward.13
= control target key start
LH: loop header
LB: loop body
LE: loop exit
PB: predicated region body
PF: predicated region fallthrough
CT: control target
= control target key end

     0   :  { %s1932_s15 = smov 0   ;;  %s2298_s0 = inlined_call_operand.vmem [shape: bf16[512,512], index: 0, kind: input, shape index: {}]   ;;  %s2299_s1 = inlined_call_operand.vmem [shape: bf16[512,128], index: 1, kind: input, shape index: {}]   ;;  %s2300_s2 = inlined_call_operand.vmem [shape: f32[512,128], index: 2, kind: output, shape index: {0}]   ;;  %s2301_s3 = inlined_call_operand.vmem [shape: f32[2,1,128], index: 3, kind: output, shape index: {1}]   ;;  %s2302_s4 = inlined_call_operand.vmem [shape: f32[2,1,128], index: 4, kind: output, shape index: {2}]  }
   0x1 LB: > { %s1938_s16 = sadd.s32 4294967295, %s1905_s15   ;;  %p1434_p0 = scmp.ge.s32.totalorder %s1905_s15, 1  ;;  %s1905_s15 = sphi %s1932_s15, %s15_s15  }
   0x2   : > { %p169_p1 = scmp.lt.s32.totalorder %s1905_s15, 3 }
   0x4   : > { %p170_p2 = pnand %p1434_p0, %p169_p1 }
   0x5   : > { %s1435_s25 = sshll.u32 (!%p170_p2), %s1938_s16, 5  ;;  %p215_p4 = scmp.lt.s32.totalorder (!%p170_p2), %s1938_s16, 1 }
   0x6   : > { %173 = sbr.rel (%p170_p2) target bundleno = 386 (0x182), region = 28  ;;  %p203_p3 = scmp.lt.s32.totalorder (!%p170_p2), %s1435_s25, 63 }
   0xb   : > { %v1771_v0 = vld [vmem:[%s2299_s1 + $0x78] sm:$0xff]   ;;  %v1775_v4 = vld [vmem:[%s2299_s1 + $0x70] sm:$0xff]   ;;  %v1779_v8 = vld [vmem:[%s2299_s1 + $0x68] sm:$0xff]   ;;  %s2304_s25 = smov (!%p203_p3, %s1435_s25), 63  ;;  %s2306_s16 = smov (!%p215_p4, %s1938_s16), 1 }
   0xc   : > { %v1772_v1 = vld [vmem:[%s2299_s1 + $0xf8] sm:$0xff]   ;;  %1539 = vmatprep.subr.bf16.mxu0 %v1771_v0  ;;  %v1776_v5 = vld [vmem:[%s2299_s1 + $0xf0] sm:$0xff]   ;;  %v1780_v9 = vld [vmem:[%s2299_s1 + $0xe8] sm:$0xff]   ;;  %s1538_s24 = sshll.u32 %s2304_s25, 4  ;;  %s1439_s13 = sshll.u32 %s2304_s25, 3 }
   0xd   : > { %v1773_v2 = vld [vmem:[%s2299_s1 + $0x38] sm:$0xff]   ;;  %1651 = vmatprep.subr.bf16.mxu1 %v1772_v1  ;;  %v1777_v6 = vld [vmem:[%s2299_s1 + $0x30] sm:$0xff]   ;;  %v1781_v10 = vld [vmem:[%s2299_s1 + $0x28] sm:$0xff]   ;;  %s2039_s8 = scalar_lea.vmem %s2298_s0, %s1538_s24  ;;  %s2115_s18 = scalar_lea.vmem %s2300_s2, %s1439_s13 }
   0xe   : > { %v1774_v3 = vld [vmem:[%s2299_s1 + $0xb8] sm:$0xff]   ;;  %1540 = vmatpush3.bf16.msra.mxu0 %v1773_v2  ;;  %v1778_v7 = vld [vmem:[%s2299_s1 + $0xb0] sm:$0xff]   ;;  %v1782_v11 = vld [vmem:[%s2299_s1 + $0xa8] sm:$0xff]   ;;  %s217_s20 = scalar_lea.vmem %s2301_s3, %s2306_s16  ;;  %s220_s23 = scalar_lea.vmem %s2302_s4, %s2306_s16 }
   0xf   : > { %1652 = vmatpush3.bf16.msra.mxu1 %v1774_v3  ;;  %1541 = vmatprep.subr.bf16.mxu0 %v1775_v4  ;;  %v1783_v12 = vld [vmem:[%s2299_s1 + $0x60] sm:$0xff]   ;;  %v1787_v16 = vld [vmem:[%s2299_s1 + $0x58] sm:$0xff]   ;;  %v1791_v20 = vld [vmem:[%s2299_s1 + $0x50] sm:$0xff]  }
  0x10   : > { %1653 = vmatprep.subr.bf16.mxu1 %v1776_v5  ;;  %v1784_v13 = vld [vmem:[%s2299_s1 + $0xe0] sm:$0xff]   ;;  %v1788_v17 = vld [vmem:[%s2299_s1 + $0xd8] sm:$0xff]   ;;  %v1792_v21 = vld [vmem:[%s2299_s1 + $0xd0] sm:$0xff]  }
  0x11   : > { %v1785_v14 = vld [vmem:[%s2299_s1 + $0x20] sm:$0xff]   ;;  %v1789_v18 = vld [vmem:[%s2299_s1 + $0x18] sm:$0xff]   ;;  %v1793_v22 = vld [vmem:[%s2299_s1 + $0x10] sm:$0xff]  }
  0x12   : > { %1542 = vmatpush3.bf16.msra.mxu0 %v1777_v6  ;;  %v1786_v15 = vld [vmem:[%s2299_s1 + $0xa0] sm:$0xff]   ;;  %v1790_v19 = vld [vmem:[%s2299_s1 + $0x98] sm:$0xff]   ;;  %v1794_v23 = vld [vmem:[%s2299_s1 + $0x90] sm:$0xff]  }
  0x13   : > { %1654 = vmatpush3.bf16.msra.mxu1 %v1778_v7  ;;  %1543 = vmatprep.subr.bf16.mxu0 %v1779_v8  ;;  %v1795_v24 = vld [vmem:[%s2299_s1 + $0x48] sm:$0xff]   ;;  %v1799_v28 = vld [vmem:[%s2299_s1 + $0x40] sm:$0xff]  }
  0x14   : > { %1655 = vmatprep.subr.bf16.mxu1 %v1780_v9  ;;  %v1796_v25 = vld [vmem:[%s2299_s1 + $0xc8] sm:$0xff]   ;;  %v1800_v29 = vld [vmem:[%s2299_s1 + $0xc0] sm:$0xff]  }
  0x15   : > { %v1797_v26 = vld [vmem:[%s2299_s1 + $0x8] sm:$0xff]   ;;  %v1801_v30 = vld [vmem:[%s2299_s1] sm:$0xff]  }
  0x16   : > { %1544 = vmatpush3.bf16.msra.mxu0 %v1781_v10  ;;  %v1798_v27 = vld [vmem:[%s2299_s1 + $0x88] sm:$0xff]   ;;  %v1802_v31 = vld [vmem:[%s2299_s1 + $0x80] sm:$0xff]  }
  0x17   : > { %1656 = vmatpush3.bf16.msra.mxu1 %v1782_v11  ;;  %1545 = vmatprep.subr.bf16.mxu0 %v1783_v12  ;;  %v1803_v32 = vld [vmem:[%s2039_s8] ss:$16 sps:$4 sm:$0xff]   ;;  %v1805_v33 = vld [vmem:[%s2039_s8 + $0x4] ss:$16 sps:$4 sm:$0xff]   ;;  %v1806_v34 = vld [vmem:[%s2039_s8 + $0x8] ss:$16 sps:$4 sm:$0xff]  }
  0x18   : > { %1657 = vmatprep.subr.bf16.mxu1 %v1784_v13  ;;  %v1808_v35 = vld [vmem:[%s2039_s8 + $0xc] ss:$16 sps:$4 sm:$0xff]   ;;  %894 = vmatprep.mubr.bf16.mxu0 %v1805_v33  ;;  %v1809_v36 = vld [vmem:[%s2039_s8 + $0x24] ss:$16 sps:$4 sm:$0xff]   ;;  %v1813_v38 = vld [vmem:[%s2039_s8 + $0x20] ss:$16 sps:$4 sm:$0xff]  }
  0x19   : > { %1055 = vmatprep.mubr.bf16.mxu1 %v1808_v35  ;;  %v1811_v37 = vld [vmem:[%s2039_s8 + $0x2c] ss:$16 sps:$4 sm:$0xff]   ;;  %v1814_v39 = vld [vmem:[%s2039_s8 + $0x28] ss:$16 sps:$4 sm:$0xff]   ;;  %v1815_v40 = vld [vmem:[%s2039_s8 + $0x44] ss:$16 sps:$4 sm:$0xff]  }
  0x1a   : > { %1546 = vmatpush3.bf16.msra.mxu0 %v1785_v14  ;;  %v1817_v41 = vld [vmem:[%s2039_s8 + $0x4c] ss:$16 sps:$4 sm:$0xff]   ;;  %v1819_v42 = vld [vmem:[%s2039_s8 + $0x40] ss:$16 sps:$4 sm:$0xff]   ;;  %v1820_v43 = vld [vmem:[%s2039_s8 + $0x48] ss:$16 sps:$4 sm:$0xff]  }
  0x1b   : > { %1658 = vmatpush3.bf16.msra.mxu1 %v1786_v15  ;;  %1547 = vmatprep.subr.bf16.mxu0 %v1787_v16  ;;  %v1821_v44 = vld [vmem:[%s2039_s8 + $0x64] ss:$16 sps:$4 sm:$0xff]   ;;  %v1823_v45 = vld [vmem:[%s2039_s8 + $0x6c] ss:$16 sps:$4 sm:$0xff]   ;;  %v1825_v46 = vld [vmem:[%s2039_s8 + $0x60] ss:$16 sps:$4 sm:$0xff]  }
  0x1c   : > { %1659 = vmatprep.subr.bf16.mxu1 %v1788_v17  ;;  %v1826_v47 = vld [vmem:[%s2039_s8 + $0x68] ss:$16 sps:$4 sm:$0xff]   ;;  %v1827_v48 = vld [vmem:[%s2039_s8 + $0x84] ss:$16 sps:$4 sm:$0xff]   ;;  %v1829_v49 = vld [vmem:[%s2039_s8 + $0x8c] ss:$16 sps:$4 sm:$0xff]  }
  0x1d   : > { %v1831_v50 = vld [vmem:[%s2039_s8 + $0x80] ss:$16 sps:$4 sm:$0xff]   ;;  %v1832_v51 = vld [vmem:[%s2039_s8 + $0x88] ss:$16 sps:$4 sm:$0xff]   ;;  %v1833_v52 = vld [vmem:[%s2039_s8 + $0xa4] ss:$16 sps:$4 sm:$0xff]  }
  0x1e   : > { %1548 = vmatpush3.bf16.msra.mxu0 %v1789_v18  ;;  %v1835_v53 = vld [vmem:[%s2039_s8 + $0xac] ss:$16 sps:$4 sm:$0xff]   ;;  %v1837_v54 = vld [vmem:[%s2039_s8 + $0xa0] ss:$16 sps:$4 sm:$0xff]   ;;  %v1838_v55 = vld [vmem:[%s2039_s8 + $0xa8] ss:$16 sps:$4 sm:$0xff]  }
  0x1f   : > { %1660 = vmatpush3.bf16.msra.mxu1 %v1790_v19  ;;  %1549 = vmatprep.subr.bf16.mxu0 %v1791_v20  ;;  %v1839_v56 = vld [vmem:[%s2039_s8 + $0xc4] ss:$16 sps:$4 sm:$0xff]   ;;  %v1841_v57 = vld [vmem:[%s2039_s8 + $0xcc] ss:$16 sps:$4 sm:$0xff]   ;;  %v1843_v58 = vld [vmem:[%s2039_s8 + $0xc0] ss:$16 sps:$4 sm:$0xff]  }
  0x20   : > { %1661 = vmatprep.subr.bf16.mxu1 %v1792_v21  ;;  %v1844_v59 = vld [vmem:[%s2039_s8 + $0xc8] ss:$16 sps:$4 sm:$0xff]   ;;  %v1845_v60 = vld [vmem:[%s2039_s8 + $0xe4] ss:$16 sps:$4 sm:$0xff]   ;;  %v1847_v61 = vld [vmem:[%s2039_s8 + $0xec] ss:$16 sps:$4 sm:$0xff]  }
  0x21   : > { %v1849_v62 = vld [vmem:[%s2039_s8 + $0xe0] ss:$16 sps:$4 sm:$0xff]   ;;  %v1850_v63 = vld [vmem:[%s2039_s8 + $0xe8] ss:$16 sps:$4 sm:$0xff]   ;;  %v1851_v0 = vld [vmem:[%s2039_s8 + $0x104] ss:$16 sps:$4 sm:$0xff]  }
  0x22   : > { %1550 = vmatpush3.bf16.msra.mxu0 %v1793_v22  ;;  %v1853_v1 = vld [vmem:[%s2039_s8 + $0x10c] ss:$16 sps:$4 sm:$0xff]   ;;  %v1855_v2 = vld [vmem:[%s2039_s8 + $0x100] ss:$16 sps:$4 sm:$0xff]   ;;  %v1856_v3 = vld [vmem:[%s2039_s8 + $0x108] ss:$16 sps:$4 sm:$0xff]  }
  0x23   : > { %1662 = vmatpush3.bf16.msra.mxu1 %v1794_v23  ;;  %1551 = vmatprep.subr.bf16.mxu0 %v1795_v24  ;;  %v1857_v4 = vld [vmem:[%s2039_s8 + $0x124] ss:$16 sps:$4 sm:$0xff]   ;;  %v1859_v5 = vld [vmem:[%s2039_s8 + $0x12c] ss:$16 sps:$4 sm:$0xff]   ;;  %v1861_v6 = vld [vmem:[%s2039_s8 + $0x120] ss:$16 sps:$4 sm:$0xff]  }
  0x24   : > { %1663 = vmatprep.subr.bf16.mxu1 %v1796_v25  ;;  %v1862_v7 = vld [vmem:[%s2039_s8 + $0x128] ss:$16 sps:$4 sm:$0xff]   ;;  %v1863_v8 = vld [vmem:[%s2039_s8 + $0x144] ss:$16 sps:$4 sm:$0xff]   ;;  %v1865_v9 = vld [vmem:[%s2039_s8 + $0x14c] ss:$16 sps:$4 sm:$0xff]  }
  0x25   : > { %v1867_v10 = vld [vmem:[%s2039_s8 + $0x140] ss:$16 sps:$4 sm:$0xff]   ;;  %v1868_v11 = vld [vmem:[%s2039_s8 + $0x148] ss:$16 sps:$4 sm:$0xff]   ;;  %v1869_v12 = vld [vmem:[%s2039_s8 + $0x164] ss:$16 sps:$4 sm:$0xff]  }
  0x26   : > { %1552 = vmatpush3.bf16.msra.mxu0 %v1797_v26  ;;  %v1871_v13 = vld [vmem:[%s2039_s8 + $0x16c] ss:$16 sps:$4 sm:$0xff]   ;;  %v1873_v14 = vld [vmem:[%s2039_s8 + $0x160] ss:$16 sps:$4 sm:$0xff]   ;;  %v1874_v15 = vld [vmem:[%s2039_s8 + $0x168] ss:$16 sps:$4 sm:$0xff]  }
  0x27   : > { %1664 = vmatpush3.bf16.msra.mxu1 %v1798_v27  ;;  %1553 = vmatprep.subr.bf16.mxu0 %v1799_v28  ;;  %v1875_v16 = vld [vmem:[%s2039_s8 + $0x184] ss:$16 sps:$4 sm:$0xff]   ;;  %v1877_v17 = vld [vmem:[%s2039_s8 + $0x18c] ss:$16 sps:$4 sm:$0xff]   ;;  %v1879_v18 = vld [vmem:[%s2039_s8 + $0x180] ss:$16 sps:$4 sm:$0xff]  }
  0x28   : > { %1665 = vmatprep.subr.bf16.mxu1 %v1800_v29  ;;  %v1880_v19 = vld [vmem:[%s2039_s8 + $0x188] ss:$16 sps:$4 sm:$0xff]   ;;  %v1881_v20 = vld [vmem:[%s2039_s8 + $0x1a4] ss:$16 sps:$4 sm:$0xff]   ;;  %v1883_v21 = vld [vmem:[%s2039_s8 + $0x1ac] ss:$16 sps:$4 sm:$0xff]  }
  0x29   : > { %v1885_v22 = vld [vmem:[%s2039_s8 + $0x1a0] ss:$16 sps:$4 sm:$0xff]   ;;  %v1886_v23 = vld [vmem:[%s2039_s8 + $0x1a8] ss:$16 sps:$4 sm:$0xff]   ;;  %v1887_v24 = vld [vmem:[%s2039_s8 + $0x1c4] ss:$16 sps:$4 sm:$0xff]  }
  0x2a   : > { %1554 = vmatpush3.bf16.msra.mxu0 %v1801_v30  ;;  %v1889_v25 = vld [vmem:[%s2039_s8 + $0x1cc] ss:$16 sps:$4 sm:$0xff]   ;;  %v1891_v26 = vld [vmem:[%s2039_s8 + $0x1c0] ss:$16 sps:$4 sm:$0xff]   ;;  %v1892_v27 = vld [vmem:[%s2039_s8 + $0x1c8] ss:$16 sps:$4 sm:$0xff]  }
  0x2b   : > { %1666 = vmatpush3.bf16.msra.mxu1 %v1802_v31  ;;  %v1893_v28 = vld [vmem:[%s2039_s8 + $0x1e4] ss:$16 sps:$4 sm:$0xff]   ;;  %v1895_v29 = vld [vmem:[%s2039_s8 + $0x1ec] ss:$16 sps:$4 sm:$0xff]   ;;  %v1897_v30 = vld [vmem:[%s2039_s8 + $0x1e0] ss:$16 sps:$4 sm:$0xff]  }
  0x2c   : > { %v1898_v31 = vld [vmem:[%s2039_s8 + $0x1e8] ss:$16 sps:$4 sm:$0xff]  }
  0x2d   : > { %895 = vmatmul.mubr.bf16.vlgmr.msra.gmra.mxu0 %v1803_v32 }
  0x2e   : > { %1056 = vmatmul.mubr.bf16.vlgmr.msra.gmra.mxu1 %v1806_v34  ;;  %902 = vmatprep.mubr.bf16.mxu0 %v1809_v36 }
  0x2f   : > { %1063 = vmatprep.mubr.bf16.mxu1 %v1811_v37 }
  0x35   : > { %903 = vmatmul.mubr.bf16.gmra.mxu0 %v1813_v38 }
  0x36   : > { %1064 = vmatmul.mubr.bf16.gmra.mxu1 %v1814_v39  ;;  %910 = vmatprep.mubr.bf16.mxu0 %v1815_v40 }
  0x37   : > { %1071 = vmatprep.mubr.bf16.mxu1 %v1817_v41 }
  0x3d   : > { %911 = vmatmul.mubr.bf16.gmra.mxu0 %v1819_v42 }
  0x3e   : > { %1072 = vmatmul.mubr.bf16.gmra.mxu1 %v1820_v43  ;;  %918 = vmatprep.mubr.bf16.mxu0 %v1821_v44 }
  0x3f   : > { %1079 = vmatprep.mubr.bf16.mxu1 %v1823_v45 }
  0x45   : > { %919 = vmatmul.mubr.bf16.gmra.mxu0 %v1825_v46 }
  0x46   : > { %1080 = vmatmul.mubr.bf16.gmra.mxu1 %v1826_v47  ;;  %926 = vmatprep.mubr.bf16.mxu0 %v1827_v48 }
  0x47   : > { %1087 = vmatprep.mubr.bf16.mxu1 %v1829_v49 }
  0x4d   : > { %927 = vmatmul.mubr.bf16.gmra.mxu0 %v1831_v50 }
  0x4e   : > { %1088 = vmatmul.mubr.bf16.gmra.mxu1 %v1832_v51  ;;  %934 = vmatprep.mubr.bf16.mxu0 %v1833_v52 }
  0x4f   : > { %1095 = vmatprep.mubr.bf16.mxu1 %v1835_v53 }
  0x55   : > { %935 = vmatmul.mubr.bf16.gmra.mxu0 %v1837_v54 }
  0x56   : > { %1096 = vmatmul.mubr.bf16.gmra.mxu1 %v1838_v55  ;;  %942 = vmatprep.mubr.bf16.mxu0 %v1839_v56 }
  0x57   : > { %1103 = vmatprep.mubr.bf16.mxu1 %v1841_v57 }
  0x5d   : > { %943 = vmatmul.mubr.bf16.gmra.mxu0 %v1843_v58 }
  0x5e   : > { %1104 = vmatmul.mubr.bf16.gmra.mxu1 %v1844_v59  ;;  %950 = vmatprep.mubr.bf16.mxu0 %v1845_v60 }
  0x5f   : > { %1111 = vmatprep.mubr.bf16.mxu1 %v1847_v61 }
  0x65   : > { %951 = vmatmul.mubr.bf16.gmra.mxu0 %v1849_v62 }
  0x66   : > { %1112 = vmatmul.mubr.bf16.gmra.mxu1 %v1850_v63  ;;  %958 = vmatprep.mubr.bf16.mxu0 %v1851_v0 }
  0x67   : > { %1119 = vmatprep.mubr.bf16.mxu1 %v1853_v1 }
  0x6d   : > { %959 = vmatmul.mubr.bf16.gmra.mxu0 %v1855_v2 }
  0x6e   : > { %1120 = vmatmul.mubr.bf16.gmra.mxu1 %v1856_v3  ;;  %966 = vmatprep.mubr.bf16.mxu0 %v1857_v4 }
  0x6f   : > { %1127 = vmatprep.mubr.bf16.mxu1 %v1859_v5 }
  0x75   : > { %967 = vmatmul.mubr.bf16.gmra.mxu0 %v1861_v6 }
  0x76   : > { %1128 = vmatmul.mubr.bf16.gmra.mxu1 %v1862_v7  ;;  %974 = vmatprep.mubr.bf16.mxu0 %v1863_v8 }
  0x77   : > { %1135 = vmatprep.mubr.bf16.mxu1 %v1865_v9 }
  0x7d   : > { %975 = vmatmul.mubr.bf16.gmra.mxu0 %v1867_v10 }
  0x7e   : > { %1136 = vmatmul.mubr.bf16.gmra.mxu1 %v1868_v11  ;;  %982 = vmatprep.mubr.bf16.mxu0 %v1869_v12 }
  0x7f   : > { %1143 = vmatprep.mubr.bf16.mxu1 %v1871_v13 }
  0x85   : > { %983 = vmatmul.mubr.bf16.gmra.mxu0 %v1873_v14 }
  0x86   : > { %1144 = vmatmul.mubr.bf16.gmra.mxu1 %v1874_v15  ;;  %990 = vmatprep.mubr.bf16.mxu0 %v1875_v16 }
  0x87   : > { %1151 = vmatprep.mubr.bf16.mxu1 %v1877_v17 }
  0x8d   : > { %991 = vmatmul.mubr.bf16.gmra.mxu0 %v1879_v18 }
  0x8e   : > { %1152 = vmatmul.mubr.bf16.gmra.mxu1 %v1880_v19  ;;  %998 = vmatprep.mubr.bf16.mxu0 %v1881_v20 }
  0x8f   : > { %1159 = vmatprep.mubr.bf16.mxu1 %v1883_v21 }
  0x95   : > { %999 = vmatmul.mubr.bf16.gmra.mxu0 %v1885_v22 }
  0x96   : > { %1160 = vmatmul.mubr.bf16.gmra.mxu1 %v1886_v23  ;;  %1006 = vmatprep.mubr.bf16.mxu0 %v1887_v24 }
  0x97   : > { %1167 = vmatprep.mubr.bf16.mxu1 %v1889_v25 }
  0x9d   : > { %1007 = vmatmul.mubr.bf16.gmra.mxu0 %v1891_v26 }
  0x9e   : > { %1168 = vmatmul.mubr.bf16.gmra.mxu1 %v1892_v27  ;;  %1014 = vmatprep.mubr.bf16.mxu0 %v1893_v28 }
  0x9f   : > { %1175 = vmatprep.mubr.bf16.mxu1 %v1895_v29 }
  0xa5   : > { %1015 = vmatmul.mubr.bf16.gmra.mxu0 %v1897_v30 }
  0xa6   : > { %1176 = vmatmul.mubr.bf16.gmra.mxu1 %v1898_v31 }
  0xed   : > { %v1555_v32 = vpop.f32.mrf.mxu0 }
  0xee   : > { %v1667_v33 = vpop.f32.mrf.mxu1 }
  0xef   : > { %v1556_v34 = vpop.f32.mrf.mxu0 }
  0xf0   : > { %v1557_v35 = vadd.f32 %v1556_v34, %v1555_v32  ;;  %v1668_v36 = vpop.f32.mrf.mxu1 }
  0xf1   : > { %v1669_v37 = vadd.f32 %v1668_v36, %v1667_v33  ;;  %v1558_v38 = vpop.f32.mrf.mxu0 }
  0xf2   : > { %v1670_v39 = vpop.f32.mrf.mxu1 }
  0xf3   : > { %v2117_v40 = vadd.f32 %v1669_v37, %v1557_v35  ;;  %v1559_v41 = vpop.f32.mrf.mxu0 }
  0xf4   : > { %v1560_v42 = vadd.f32 %v1559_v41, %v1558_v38  ;;  %v1671_v43 = vpop.f32.mrf.mxu1 }
  0xf5   : > { %1184 = vst [vmem:[%s2115_s18] sm:$0xff] %v2117_v40  ;;  %v1672_v44 = vadd.f32 %v1671_v43, %v1670_v39  ;;  %v1561_v45 = vpop.f32.mrf.mxu0 }
  0xf6   : > { %v1673_v46 = vpop.f32.mrf.mxu1 }
  0xf7   : > { %v2121_v47 = vadd.f32 %v1672_v44, %v1560_v42  ;;  %v1562_v48 = vpop.f32.mrf.mxu0 }
  0xf8   : > { %v1563_v49 = vadd.f32 %v1562_v48, %v1561_v45  ;;  %v1674_v50 = vpop.f32.mrf.mxu1 }
  0xf9   : > { %1185 = vst [vmem:[%s2115_s18 + $0x8] sm:$0xff] %v2121_v47  ;;  %v1675_v51 = vadd.f32 %v1674_v50, %v1673_v46  ;;  %v1564_v52 = vpop.f32.mrf.mxu0 }
  0xfa   : > { %v1676_v53 = vpop.f32.mrf.mxu1 }
  0xfb   : > { %v2125_v54 = vadd.f32 %v1675_v51, %v1563_v49  ;;  %v1565_v55 = vpop.f32.mrf.mxu0 }
  0xfc   : > { %v1566_v56 = vadd.f32 %v1565_v55, %v1564_v52  ;;  %v1677_v57 = vpop.f32.mrf.mxu1 }
  0xfd   : > { %1186 = vst [vmem:[%s2115_s18 + $0x10] sm:$0xff] %v2125_v54  ;;  %v1678_v58 = vadd.f32 %v1677_v57, %v1676_v53  ;;  %v1567_v59 = vpop.f32.mrf.mxu0 }
  0xfe   : > { %v1679_v60 = vpop.f32.mrf.mxu1 }
  0xff   : > { %v2129_v61 = vadd.f32 %v1678_v58, %v1566_v56  ;;  %v1568_v62 = vpop.f32.mrf.mxu0 }
 0x100   : > { %v1569_v63 = vadd.f32 %v1568_v62, %v1567_v59  ;;  %v1680_v0 = vpop.f32.mrf.mxu1 }
 0x101   : > { %1187 = vst [vmem:[%s2115_s18 + $0x18] sm:$0xff] %v2129_v61  ;;  %v1681_v1 = vadd.f32 %v1680_v0, %v1679_v60  ;;  %v1570_v2 = vpop.f32.mrf.mxu0 }
 0x102   : > { %v1682_v3 = vpop.f32.mrf.mxu1 }
 0x103   : > { %v2133_v4 = vadd.f32 %v1681_v1, %v1569_v63  ;;  %v1571_v5 = vpop.f32.mrf.mxu0 }
 0x104   : > { %v1572_v6 = vadd.f32 %v1571_v5, %v1570_v2  ;;  %v1683_v7 = vpop.f32.mrf.mxu1 }
 0x105   : > { %1188 = vst [vmem:[%s2115_s18 + $0x20] sm:$0xff] %v2133_v4  ;;  %v1684_v8 = vadd.f32 %v1683_v7, %v1682_v3  ;;  %v1573_v9 = vpop.f32.mrf.mxu0 }
 0x106   : > { %v1685_v10 = vpop.f32.mrf.mxu1 }
 0x107   : > { %v2137_v11 = vadd.f32 %v1684_v8, %v1572_v6  ;;  %v1574_v12 = vpop.f32.mrf.mxu0 }
 0x108   : > { %v1575_v13 = vadd.f32 %v1574_v12, %v1573_v9  ;;  %v1686_v14 = vpop.f32.mrf.mxu1 }
 0x109   : > { %1189 = vst [vmem:[%s2115_s18 + $0x28] sm:$0xff] %v2137_v11  ;;  %v1687_v15 = vadd.f32 %v1686_v14, %v1685_v10  ;;  %v1576_v16 = vpop.f32.mrf.mxu0 }
 0x10a   : > { %v1688_v17 = vpop.f32.mrf.mxu1 }
 0x10b   : > { %v2141_v18 = vadd.f32 %v1687_v15, %v1575_v13  ;;  %v1577_v19 = vpop.f32.mrf.mxu0 }
 0x10c   : > { %v1578_v20 = vadd.f32 %v1577_v19, %v1576_v16  ;;  %v1689_v21 = vpop.f32.mrf.mxu1 }
 0x10d   : > { %1190 = vst [vmem:[%s2115_s18 + $0x30] sm:$0xff] %v2141_v18  ;;  %v1690_v22 = vadd.f32 %v1689_v21, %v1688_v17  ;;  %v1579_v23 = vpop.f32.mrf.mxu0 }
 0x10e   : > { %v1691_v24 = vpop.f32.mrf.mxu1 }
 0x10f   : > { %v2145_v25 = vadd.f32 %v1690_v22, %v1578_v20  ;;  %v1580_v26 = vpop.f32.mrf.mxu0 }
 0x110   : > { %v1581_v27 = vadd.f32 %v1580_v26, %v1579_v23  ;;  %v1692_v28 = vpop.f32.mrf.mxu1 }
 0x111   : > { %1191 = vst [vmem:[%s2115_s18 + $0x38] sm:$0xff] %v2145_v25  ;;  %v1693_v29 = vadd.f32 %v1692_v28, %v1691_v24  ;;  %v1582_v30 = vpop.f32.mrf.mxu0 }
 0x112   : > { %v1694_v31 = vpop.f32.mrf.mxu1 }
 0x113   : > { %v2149_v32 = vadd.f32 %v1693_v29, %v1581_v27  ;;  %v1583_v33 = vpop.f32.mrf.mxu0 }
 0x114   : > { %v1584_v34 = vadd.f32 %v1583_v33, %v1582_v30  ;;  %v1695_v35 = vpop.f32.mrf.mxu1  ;;  %v1255_v33 = vmul.f32 %v2121_v47, %v2121_v47 }
 0x115   : > { %1192 = vst [vmem:[%s2115_s18 + $0x40] sm:$0xff] %v2149_v32  ;;  %v1696_v36 = vadd.f32 %v1695_v35, %v1694_v31  ;;  %v1585_v37 = vpop.f32.mrf.mxu0 }
 0x116   : > { %v1697_v38 = vpop.f32.mrf.mxu1 }
 0x117   : > { %v2153_v39 = vadd.f32 %v1696_v36, %v1584_v34  ;;  %v1586_v41 = vpop.f32.mrf.mxu0 }
 0x118   : > { %v1587_v42 = vadd.f32 %v1586_v41, %v1585_v37  ;;  %v1698_v43 = vpop.f32.mrf.mxu1  ;;  %v1216_v41 = vadd.f32 %v2121_v47, %v2117_v40 }
 0x119   : > { %1193 = vst [vmem:[%s2115_s18 + $0x48] sm:$0xff] %v2153_v39  ;;  %v1699_v44 = vadd.f32 %v1698_v43, %v1697_v38  ;;  %v1588_v45 = vpop.f32.mrf.mxu0  ;;  %v1254_v38 = vmul.f32 %v2117_v40, %v2117_v40 }
 0x11a   : > { %v1700_v46 = vpop.f32.mrf.mxu1 }
 0x11b   : > { %v2157_v48 = vadd.f32 %v1699_v44, %v1587_v42  ;;  %v1589_v49 = vpop.f32.mrf.mxu0  ;;  %v1256_v42 = vmul.f32 %v2125_v54, %v2125_v54 }
 0x11c   : > { %v1590_v50 = vadd.f32 %v1589_v49, %v1588_v45  ;;  %v1701_v51 = vpop.f32.mrf.mxu1  ;;  %v1217_v49 = vadd.f32 %v1216_v41, %v2125_v54 }
 0x11d   : > { %1194 = vst [vmem:[%s2115_s18 + $0x50] sm:$0xff] %v2157_v48  ;;  %v1702_v52 = vadd.f32 %v1701_v51, %v1700_v46  ;;  %v1591_v53 = vpop.f32.mrf.mxu0  ;;  %v1286_v46 = vadd.f32 %v1255_v33, %v1254_v38 }
 0x11e   : > { %v1703_v55 = vpop.f32.mrf.mxu1 }
 0x11f   : > { %v2161_v56 = vadd.f32 %v1702_v52, %v1590_v50  ;;  %v1592_v57 = vpop.f32.mrf.mxu0  ;;  %v1257_v50 = vmul.f32 %v2129_v61, %v2129_v61  ;;  %v1287_v47 = vadd.f32 %v1286_v46, %v1256_v42 }
 0x120   : > { %v1593_v58 = vadd.f32 %v1592_v57, %v1591_v53  ;;  %v1704_v59 = vpop.f32.mrf.mxu1  ;;  %v1258_v57 = vmul.f32 %v2133_v4, %v2133_v4 }
 0x121   : > { %1195 = vst [vmem:[%s2115_s18 + $0x58] sm:$0xff] %v2161_v56  ;;  %v1705_v60 = vadd.f32 %v1704_v59, %v1703_v55  ;;  %v1594_v62 = vpop.f32.mrf.mxu0  ;;  %v1218_v55 = vadd.f32 %v1217_v49, %v2129_v61 }
 0x122   : > { %v1706_v63 = vpop.f32.mrf.mxu1 }
 0x123   : > { %v2165_v0 = vadd.f32 %v1705_v60, %v1593_v58  ;;  %v1595_v1 = vpop.f32.mrf.mxu0  ;;  %v1288_v60 = vadd.f32 %v1287_v47, %v1257_v50 }
 0x124   : > { %v1596_v2 = vadd.f32 %v1595_v1, %v1594_v62  ;;  %v1707_v3 = vpop.f32.mrf.mxu1  ;;  %v1219_v62 = vadd.f32 %v1218_v55, %v2133_v4 }
 0x125   : > { %1196 = vst [vmem:[%s2115_s18 + $0x60] sm:$0xff] %v2165_v0  ;;  %v1708_v5 = vadd.f32 %v1707_v3, %v1706_v63  ;;  %v1597_v6 = vpop.f32.mrf.mxu0  ;;  %v1259_v63 = vmul.f32 %v2137_v11, %v2137_v11 }
 0x126   : > { %v1709_v7 = vpop.f32.mrf.mxu1 }
 0x127   : > { %v2169_v8 = vadd.f32 %v1708_v5, %v1596_v2  ;;  %v1598_v9 = vpop.f32.mrf.mxu0  ;;  %v1289_v5 = vadd.f32 %v1288_v60, %v1258_v57 }
 0x128   : > { %v1599_v10 = vadd.f32 %v1598_v9, %v1597_v6  ;;  %v1710_v12 = vpop.f32.mrf.mxu1  ;;  %v1220_v6 = vadd.f32 %v1219_v62, %v2137_v11 }
 0x129   : > { %1197 = vst [vmem:[%s2115_s18 + $0x68] sm:$0xff] %v2169_v8  ;;  %v1711_v13 = vadd.f32 %v1710_v12, %v1709_v7  ;;  %v1600_v14 = vpop.f32.mrf.mxu0  ;;  %v1260_v7 = vmul.f32 %v2141_v18, %v2141_v18  ;;  %v1290_v12 = vadd.f32 %v1289_v5, %v1259_v63 }
 0x12a   : > { %v1712_v15 = vpop.f32.mrf.mxu1 }
 0x12b   : > { %v2173_v16 = vadd.f32 %v1711_v13, %v1599_v10  ;;  %v1601_v17 = vpop.f32.mrf.mxu0  ;;  %v1221_v13 = vadd.f32 %v1220_v6, %v2141_v18 }
 0x12c   : > { %v1602_v19 = vadd.f32 %v1601_v17, %v1600_v14  ;;  %v1713_v20 = vpop.f32.mrf.mxu1  ;;  %v1261_v14 = vmul.f32 %v2145_v25, %v2145_v25 }
 0x12d   : > { %1198 = vst [vmem:[%s2115_s18 + $0x70] sm:$0xff] %v2173_v16  ;;  %v1714_v21 = vadd.f32 %v1713_v20, %v1712_v15  ;;  %v1603_v22 = vpop.f32.mrf.mxu0  ;;  %v1291_v20 = vadd.f32 %v1290_v12, %v1260_v7 }
 0x12e   : > { %v1715_v23 = vpop.f32.mrf.mxu1 }
 0x12f   : > { %v2177_v24 = vadd.f32 %v1714_v21, %v1602_v19  ;;  %v1604_v26 = vpop.f32.mrf.mxu0  ;;  %v1222_v21 = vadd.f32 %v1221_v13, %v2145_v25 }
 0x130   : > { %v1605_v27 = vadd.f32 %v1604_v26, %v1603_v22  ;;  %v1716_v28 = vpop.f32.mrf.mxu1  ;;  %v1262_v22 = vmul.f32 %v2149_v32, %v2149_v32 }
 0x131   : > { %1199 = vst [vmem:[%s2115_s18 + $0x78] sm:$0xff] %v2177_v24  ;;  %v1717_v29 = vadd.f32 %v1716_v28, %v1715_v23  ;;  %v1606_v30 = vpop.f32.mrf.mxu0  ;;  %v1223_v28 = vadd.f32 %v1222_v21, %v2149_v32  ;;  %v1269_v7 = vmul.f32 %v2177_v24, %v2177_v24 }
 0x132   : > { %v1718_v31 = vpop.f32.mrf.mxu1 }
 0x133   : > { %v2183_v34 = vadd.f32 %v1717_v29, %v1605_v27  ;;  %v1607_v35 = vpop.f32.mrf.mxu0  ;;  %v1292_v27 = vadd.f32 %v1291_v20, %v1261_v14  ;;  %v1263_v29 = vmul.f32 %v2153_v39, %v2153_v39 }
 0x134   : > { %v1608_v36 = vadd.f32 %v1607_v35, %v1606_v30  ;;  %v1719_v37 = vpop.f32.mrf.mxu1 }
 0x135   : > { %1200 = vst [vmem:[%s2115_s18 + $0x80] sm:$0xff] %v2183_v34  ;;  %v1720_v43 = vadd.f32 %v1719_v37, %v1718_v31  ;;  %v1609_v44 = vpop.f32.mrf.mxu0  ;;  %v1293_v35 = vadd.f32 %v1292_v27, %v1262_v22  ;;  %v1264_v37 = vmul.f32 %v2157_v48, %v2157_v48  ;;  %v1270_v14 = vmul.f32 %v2183_v34, %v2183_v34 }
 0x136   : > { %v1721_v45 = vpop.f32.mrf.mxu1 }
 0x137   : > { %v2196_v51 = vadd.f32 %v1720_v43, %v1608_v36  ;;  %v1610_v52 = vpop.f32.mrf.mxu0  ;;  %v1224_v36 = vadd.f32 %v1223_v28, %v2153_v39  ;;  %v1294_v42 = vadd.f32 %v1293_v35, %v1263_v29 }
 0x138   : > { %v1611_v53 = vadd.f32 %v1610_v52, %v1609_v44  ;;  %v1722_v40 = vpop.f32.mrf.mxu1  ;;  %v1265_v44 = vmul.f32 %v2161_v56, %v2161_v56 }
 0x139   : > { %1201 = vst [vmem:[%s2115_s18 + $0x88] sm:$0xff] %v2196_v51  ;;  %v1723_v58 = vadd.f32 %v1722_v40, %v1721_v45  ;;  %v1612_v59 = vpop.f32.mrf.mxu0  ;;  %v1225_v43 = vadd.f32 %v1224_v36, %v2157_v48  ;;  %v1295_v50 = vadd.f32 %v1294_v42, %v1264_v37  ;;  %v1271_v21 = vmul.f32 %v2196_v51, %v2196_v51 }
 0x13a   : > { %v1724_v54 = vpop.f32.mrf.mxu1 }
 0x13b   : > { %v2206_v1 = vadd.f32 %v1723_v58, %v1611_v53  ;;  %v1613_v2 = vpop.f32.mrf.mxu0  ;;  %v1226_v52 = vadd.f32 %v1225_v43, %v2161_v56  ;;  %v1266_v53 = vmul.f32 %v2165_v0, %v2165_v0  ;;  %v1296_v55 = vadd.f32 %v1295_v50, %v1265_v44 }
 0x13c   : > { %v1614_v3 = vadd.f32 %v1613_v2, %v1612_v59  ;;  %v1725_v61 = vpop.f32.mrf.mxu1  ;;  %v1267_v58 = vmul.f32 %v2169_v8, %v2169_v8  ;;  %v1268_v2 = vmul.f32 %v2173_v16, %v2173_v16 }
 0x13d   : > { %1202 = vst [vmem:[%s2115_s18 + $0x90] sm:$0xff] %v2206_v1  ;;  %v1726_v9 = vadd.f32 %v1725_v61, %v1724_v54  ;;  %v1615_v10 = vpop.f32.mrf.mxu0  ;;  %v1227_v57 = vadd.f32 %v1226_v52, %v2165_v0  ;;  %v1297_v62 = vadd.f32 %v1296_v55, %v1266_v53  ;;  %v1272_v28 = vmul.f32 %v2206_v1, %v2206_v1 }
 0x13e   : > { %v1727_v4 = vpop.f32.mrf.mxu1 }
 0x13f   : > { %v2216_v15 = vadd.f32 %v1726_v9, %v1614_v3  ;;  %v1616_v17 = vpop.f32.mrf.mxu0  ;;  %v1228_v63 = vadd.f32 %v1227_v57, %v2169_v8  ;;  %v1298_v5 = vadd.f32 %v1297_v62, %v1267_v58 }
 0x140   : > { %v1617_v19 = vadd.f32 %v1616_v17, %v1615_v10  ;;  %v1728_v11 = vpop.f32.mrf.mxu1 }
 0x141   : > { %1203 = vst [vmem:[%s2115_s18 + $0x98] sm:$0xff] %v2216_v15  ;;  %v1729_v23 = vadd.f32 %v1728_v11, %v1727_v4  ;;  %v1618_v26 = vpop.f32.mrf.mxu0  ;;  %v1229_v6 = vadd.f32 %v1228_v63, %v2173_v16  ;;  %v1299_v8 = vadd.f32 %v1298_v5, %v1268_v2  ;;  %v1273_v35 = vmul.f32 %v2216_v15, %v2216_v15 }
 0x142   : > { %v1730_v18 = vpop.f32.mrf.mxu1 }
 0x143   : > { %v2226_v30 = vadd.f32 %v1729_v23, %v1617_v19  ;;  %v1619_v31 = vpop.f32.mrf.mxu0  ;;  %v1230_v13 = vadd.f32 %v1229_v6, %v2177_v24  ;;  %v1300_v20 = vadd.f32 %v1299_v8, %v1269_v7 }
 0x144   : > { %v1620_v33 = vadd.f32 %v1619_v31, %v1618_v26  ;;  %v1731_v25 = vpop.f32.mrf.mxu1 }
 0x145   : > { %1204 = vst [vmem:[%s2115_s18 + $0xa0] sm:$0xff] %v2226_v30  ;;  %v1732_v38 = vadd.f32 %v1731_v25, %v1730_v18  ;;  %v1621_v41 = vpop.f32.mrf.mxu0  ;;  %v1231_v16 = vadd.f32 %v1230_v13, %v2183_v34  ;;  %v1301_v27 = vadd.f32 %v1300_v20, %v1270_v14  ;;  %v1274_v42 = vmul.f32 %v2226_v30, %v2226_v30 }
 0x146   : > { %v1733_v32 = vpop.f32.mrf.mxu1 }
 0x147   : > { %v2236_v45 = vadd.f32 %v1732_v38, %v1620_v33  ;;  %v1622_v46 = vpop.f32.mrf.mxu0  ;;  %v1232_v24 = vadd.f32 %v1231_v16, %v2196_v51  ;;  %v1302_v25 = vadd.f32 %v1301_v27, %v1271_v21 }
 0x148   : > { %v1623_v49 = vadd.f32 %v1622_v46, %v1621_v41  ;;  %v1734_v39 = vpop.f32.mrf.mxu1 }
 0x149   : > { %1205 = vst [vmem:[%s2115_s18 + $0xa8] sm:$0xff] %v2236_v45  ;;  %v1735_v40 = vadd.f32 %v1734_v39, %v1733_v32  ;;  %v1624_v47 = vpop.f32.mrf.mxu0  ;;  %v1233_v34 = vadd.f32 %v1232_v24, %v2206_v1  ;;  %v1303_v32 = vadd.f32 %v1302_v25, %v1272_v28  ;;  %v1275_v39 = vmul.f32 %v2236_v45, %v2236_v45 }
 0x14a   : > { %v1736_v48 = vpop.f32.mrf.mxu1 }
 0x14b   : > { %v2246_v59 = vadd.f32 %v1735_v40, %v1623_v49  ;;  %v1625_v54 = vpop.f32.mrf.mxu0  ;;  %v1234_v51 = vadd.f32 %v1233_v34, %v2216_v15  ;;  %v1304_v49 = vadd.f32 %v1303_v32, %v1273_v35 }
 0x14c   : > { %v1626_v60 = vadd.f32 %v1625_v54, %v1624_v47  ;;  %v1737_v56 = vpop.f32.mrf.mxu1 }
 0x14d   : > { %1206 = vst [vmem:[%s2115_s18 + $0xb0] sm:$0xff] %v2246_v59  ;;  %v1738_v3 = vadd.f32 %v1737_v56, %v1736_v48  ;;  %v1627_v61 = vpop.f32.mrf.mxu0  ;;  %v1235_v1 = vadd.f32 %v1234_v51, %v2226_v30  ;;  %v1305_v47 = vadd.f32 %v1304_v49, %v1274_v42  ;;  %v1276_v48 = vmul.f32 %v2246_v59, %v2246_v59 }
 0x14e   : > { %v1739_v0 = vpop.f32.mrf.mxu1 }
 0x14f   : > { %v1149_v9 = vadd.f32 %v1738_v3, %v1626_v60  ;;  %v1628_v10 = vpop.f32.mrf.mxu0  ;;  %v1236_v15 = vadd.f32 %v1235_v1, %v2236_v45  ;;  %v1306_v54 = vadd.f32 %v1305_v47, %v1275_v39 }
 0x150   : > { %v1629_v4 = vadd.f32 %v1628_v10, %v1627_v61  ;;  %v1740_v12 = vpop.f32.mrf.mxu1 }
 0x151   : > { %1207 = vst [vmem:[%s2115_s18 + $0xb8] sm:$0xff] %v1149_v9  ;;  %v1741_v17 = vadd.f32 %v1740_v12, %v1739_v0  ;;  %v1630_v19 = vpop.f32.mrf.mxu0  ;;  %v1237_v30 = vadd.f32 %v1236_v15, %v2246_v59  ;;  %v1277_v60 = vmul.f32 %v1149_v9, %v1149_v9  ;;  %v1307_v3 = vadd.f32 %v1306_v54, %v1276_v48 }
 0x152   : > { %v1742_v11 = vpop.f32.mrf.mxu1 }
 0x153   : > { %v1154_v22 = vadd.f32 %v1741_v17, %v1629_v4  ;;  %v1631_v23 = vpop.f32.mrf.mxu0  ;;  %v1238_v61 = vadd.f32 %v1237_v30, %v1149_v9  ;;  %v1308_v7 = vadd.f32 %v1307_v3, %v1277_v60 }
 0x154   : > { %v1632_v26 = vadd.f32 %v1631_v23, %v1630_v19  ;;  %v1743_v18 = vpop.f32.mrf.mxu1 }
 0x155   : > { %1208 = vst [vmem:[%s2115_s18 + $0xc0] sm:$0xff] %v1154_v22  ;;  %v1744_v29 = vadd.f32 %v1743_v18, %v1742_v11  ;;  %v1633_v31 = vpop.f32.mrf.mxu0  ;;  %v1278_v45 = vmul.f32 %v1154_v22, %v1154_v22  ;;  %v1239_v10 = vadd.f32 %v1238_v61, %v1154_v22 }
 0x156   : > { %v1745_v33 = vpop.f32.mrf.mxu1 }
 0x157   : > { %v1157_v36 = vadd.f32 %v1744_v29, %v1632_v26  ;;  %v1634_v37 = vpop.f32.mrf.mxu0  ;;  %v1309_v14 = vadd.f32 %v1308_v7, %v1278_v45 }
 0x158   : > { %v1635_v38 = vadd.f32 %v1634_v37, %v1633_v31  ;;  %v1746_v41 = vpop.f32.mrf.mxu1 }
 0x159   : > { %1209 = vst [vmem:[%s2115_s18 + $0xc8] sm:$0xff] %v1157_v36  ;;  %v1747_v43 = vadd.f32 %v1746_v41, %v1745_v33  ;;  %v1636_v44 = vpop.f32.mrf.mxu0  ;;  %v1279_v4 = vmul.f32 %v1157_v36, %v1157_v36  ;;  %v1240_v17 = vadd.f32 %v1239_v10, %v1157_v36 }
 0x15a   : > { %v1748_v46 = vpop.f32.mrf.mxu1 }
 0x15b   : > { %v1162_v50 = vadd.f32 %v1747_v43, %v1635_v38  ;;  %v1637_v52 = vpop.f32.mrf.mxu0  ;;  %v1310_v16 = vadd.f32 %v1309_v14, %v1279_v4 }
 0x15c   : > { %v1638_v53 = vadd.f32 %v1637_v52, %v1636_v44  ;;  %v1749_v40 = vpop.f32.mrf.mxu1 }
 0x15d   : > { %1210 = vst [vmem:[%s2115_s18 + $0xd0] sm:$0xff] %v1162_v50  ;;  %v1750_v55 = vadd.f32 %v1749_v40, %v1748_v46  ;;  %v1639_v57 = vpop.f32.mrf.mxu0  ;;  %v1280_v19 = vmul.f32 %v1162_v50, %v1162_v50  ;;  %v1241_v21 = vadd.f32 %v1240_v17, %v1162_v50 }
 0x15e   : > { %v1751_v58 = vpop.f32.mrf.mxu1 }
 0x15f   : > { %v1165_v56 = vadd.f32 %v1750_v55, %v1638_v53  ;;  %v1640_v62 = vpop.f32.mrf.mxu0  ;;  %v1311_v24 = vadd.f32 %v1310_v16, %v1280_v19 }
 0x160   : > { %v1641_v63 = vadd.f32 %v1640_v62, %v1639_v57  ;;  %v1752_v2 = vpop.f32.mrf.mxu1 }
 0x161   : > { %1211 = vst [vmem:[%s2115_s18 + $0xd8] sm:$0xff] %v1165_v56  ;;  %v1753_v0 = vadd.f32 %v1752_v2, %v1751_v58  ;;  %v1642_v5 = vpop.f32.mrf.mxu0  ;;  %v1281_v23 = vmul.f32 %v1165_v56, %v1165_v56  ;;  %v1242_v28 = vadd.f32 %v1241_v21, %v1165_v56 }
 0x162   : > { %v1754_v6 = vpop.f32.mrf.mxu1 }
 0x163   : > { %v1170_v12 = vadd.f32 %v1753_v0, %v1641_v63  ;;  %v1643_v8 = vpop.f32.mrf.mxu0  ;;  %v1312_v34 = vadd.f32 %v1311_v24, %v1281_v23 }
 0x164   : > { %v1644_v13 = vadd.f32 %v1643_v8, %v1642_v5  ;;  %v1755_v59 = vpop.f32.mrf.mxu1 }
 0x165   : > { %1212 = vst [vmem:[%s2115_s18 + $0xe0] sm:$0xff] %v1170_v12  ;;  %v1756_v11 = vadd.f32 %v1755_v59, %v1754_v6  ;;  %v1645_v9 = vpop.f32.mrf.mxu0  ;;  %v1282_v29 = vmul.f32 %v1170_v12, %v1170_v12  ;;  %v1243_v35 = vadd.f32 %v1242_v28, %v1170_v12 }
 0x166   : > { %v1757_v20 = vpop.f32.mrf.mxu1 }
 0x167   : > { %v1173_v26 = vadd.f32 %v1756_v11, %v1644_v13  ;;  %v1646_v18 = vpop.f32.mrf.mxu0  ;;  %v1313_v51 = vadd.f32 %v1312_v34, %v1282_v29 }
 0x168   : > { %v1647_v27 = vadd.f32 %v1646_v18, %v1645_v9  ;;  %v1758_v22 = vpop.f32.mrf.mxu1 }
 0x169   : > { %1213 = vst [vmem:[%s2115_s18 + $0xe8] sm:$0xff] %v1173_v26  ;;  %v1759_v31 = vadd.f32 %v1758_v22, %v1757_v20  ;;  %v1648_v33 = vpop.f32.mrf.mxu0  ;;  %v1283_v36 = vmul.f32 %v1173_v26, %v1173_v26  ;;  %v1244_v42 = vadd.f32 %v1243_v35, %v1173_v26 }
 0x16a   : > { %v1760_v25 = vpop.f32.mrf.mxu1 }
 0x16b   : > { %v1178_v37 = vadd.f32 %v1759_v31, %v1647_v27  ;;  %v1649_v38 = vpop.f32.mrf.mxu0  ;;  %v1314_v46 = vadd.f32 %v1313_v51, %v1283_v36 }
 0x16c   : > { %v1650_v41 = vadd.f32 %v1649_v38, %v1648_v33  ;;  %v1761_v32 = vpop.f32.mrf.mxu1 }
 0x16d   : > { %1214 = vst [vmem:[%s2115_s18 + $0xf0] sm:$0xff] %v1178_v37  ;;  %v1284_v43 = vmul.f32 %v1178_v37, %v1178_v37  ;;  %v1762_v44 = vadd.f32 %v1761_v32, %v1760_v25  ;;  %v1245_v49 = vadd.f32 %v1244_v42, %v1178_v37 }
 0x16f   : > { %v1181_v1 = vadd.f32 %v1762_v44, %v1650_v41  ;;  %v1315_v39 = vadd.f32 %v1314_v46, %v1284_v43 }
 0x171   : > { %1215 = vst [vmem:[%s2115_s18 + $0xf8] sm:$0xff] %v1181_v1  ;;  %v1246_v50 = vadd.f32 %v1245_v49, %v1181_v1  ;;  %v1285_v52 = vmul.f32 %v1181_v1, %v1181_v1 }
 0x173   : > { %v1247_v53 = vrot.slane %v1246_v50, 4  ;;  %v1316_v40 = vadd.f32 %v1315_v39, %v1285_v52 }
 0x175   : > { %v1248_v47 = vadd.f32 %v1247_v53, %v1246_v50  ;;  %v1317_v15 = vrot.slane %v1316_v40, 4 }
 0x177   : > { %v1249_v48 = vrot.slane %v1248_v47, 2  ;;  %v1318_v55 = vadd.f32 %v1317_v15, %v1316_v40 }
 0x179   : > { %v1250_v57 = vadd.f32 %v1249_v48, %v1248_v47  ;;  %v1319_v58 = vrot.slane %v1318_v55, 2 }
 0x17b   : > { %v1251_v54 = vrot.slane %v1250_v57, 1  ;;  %v1320_v30 = vadd.f32 %v1319_v58, %v1318_v55 }
 0x17d   : > { %v1252_v60 = vadd.f32 %v1251_v54, %v1250_v57  ;;  %v1321_v56 = vrot.slane %v1320_v30, 1 }
 0x17f   : > { %1253 = vst [vmem:[%s217_s20] sm:$0x1] %v1252_v60  ;;  %v1322_v62 = vadd.f32 %v1321_v56, %v1320_v30 }
 0x181   : > { %1323 = vst [vmem:[%s220_s23] sm:$0x1] %v1322_v62 }
 0x182 PF: > { %s15_s15 = sadd.s32 1, %s1905_s15  }
 0x183   : > { %p12_p5 = scmp.ge.s32.totalorder %s15_s15, 4  }
 0x185   :  { %14 = sbr.rel (!%p12_p5) target bundleno = 1 (0x1), region = 82 }

// kernel: generator_forward.15
= control target key start
LH: loop header
LB: loop body
LE: loop exit
PB: predicated region body
PF: predicated region fallthrough
CT: control target
= control target key end

     0   :  { %s1243_s15 = smov 0   ;;  %s1484_s0 = inlined_call_operand.vmem [shape: bf16[2048,256], index: 0, kind: input, shape index: {}]   ;;  %s1485_s1 = inlined_call_operand.vmem [shape: bf16[256,128], index: 1, kind: input, shape index: {}]   ;;  %s1486_s2 = inlined_call_operand.vmem [shape: f32[2048,128], index: 2, kind: output, shape index: {0}]   ;;  %s1487_s3 = inlined_call_operand.vmem [shape: f32[8,1,128], index: 3, kind: output, shape index: {1}]   ;;  %s1488_s4 = inlined_call_operand.vmem [shape: f32[8,1,128], index: 4, kind: output, shape index: {2}]  }
   0x1 LB: > { %s1249_s16 = sadd.s32 4294967295, %s1216_s15   ;;  %p953_p0 = scmp.ge.s32.totalorder %s1216_s15, 1  ;;  %s1216_s15 = sphi %s1243_s15, %s15_s15  }
   0x2   : > { %p169_p1 = scmp.lt.s32.totalorder %s1216_s15, 9 }
   0x4   : > { %p170_p2 = pnand %p953_p0, %p169_p1 }
   0x5   : > { %s954_s19 = sshll.u32 (!%p170_p2), %s1249_s16, 5  ;;  %p215_p4 = scmp.lt.s32.totalorder (!%p170_p2), %s1249_s16, 7 }
   0x6   : > { %173 = sbr.rel (%p170_p2) target bundleno = 350 (0x15e), region = 28  ;;  %p203_p3 = scmp.lt.s32.totalorder (!%p170_p2), %s954_s19, 255 }
   0xb   : > { %v1146_v0 = vld [vmem:[%s1485_s1 + $0x78] sm:$0xff]   ;;  %v1148_v2 = vld [vmem:[%s1485_s1 + $0x70] sm:$0xff]   ;;  %v1150_v4 = vld [vmem:[%s1485_s1 + $0x68] sm:$0xff]   ;;  %s1490_s19 = smov (!%p203_p3, %s954_s19), 255  ;;  %s1492_s16 = smov (!%p215_p4, %s1249_s16), 7 }
   0xc   : > { %v1147_v1 = vld [vmem:[%s1485_s1 + $0x38] sm:$0xff]   ;;  %1010 = vmatprep.subr.bf16.mxu0 %v1146_v0  ;;  %1122 = vmatprep.subr.bf16.mxu1 %v1146_v0  ;;  %v1149_v3 = vld [vmem:[%s1485_s1 + $0x30] sm:$0xff]   ;;  %v1151_v5 = vld [vmem:[%s1485_s1 + $0x28] sm:$0xff]   ;;  %s1009_s8 = sshll.u32 %s1490_s19, 3  ;;  %s217_s9 = scalar_lea.vmem %s1487_s3, %s1492_s16 }
   0xd   : > { %1011 = vmatpush3.bf16.msra.mxu0 %v1147_v1  ;;  %1130 = vmatpush3.bf16.msra.mxu1 %v1147_v1  ;;  %v1152_v6 = vld [vmem:[%s1485_s1 + $0x60] sm:$0xff]   ;;  %v1154_v8 = vld [vmem:[%s1485_s1 + $0x58] sm:$0xff]   ;;  %s1289_s13 = scalar_lea.vmem %s1484_s0, %s1009_s8  ;;  %v1156_v10 = vld [vmem:[%s1485_s1 + $0x50] sm:$0xff]   ;;  %s1349_s7 = scalar_lea.vmem %s1486_s2, %s1009_s8 }
   0xe   : > { %1012 = vmatprep.subr.bf16.mxu0 %v1148_v2  ;;  %1123 = vmatprep.subr.bf16.mxu1 %v1148_v2  ;;  %v1153_v7 = vld [vmem:[%s1485_s1 + $0x20] sm:$0xff]   ;;  %v1155_v9 = vld [vmem:[%s1485_s1 + $0x18] sm:$0xff]   ;;  %v1157_v12 = vld [vmem:[%s1485_s1 + $0x10] sm:$0xff]   ;;  %s220_s12 = scalar_lea.vmem %s1488_s4, %s1492_s16 }
   0xf   : > { %v1164_v11 = vld [vmem:[%s1289_s13 + $0x4] ss:$8 sps:$4 sm:$0xff]   ;;  %v1162_v18 = vld [vmem:[%s1289_s13] ss:$8 sps:$4 sm:$0xff]   ;;  %v1165_v19 = vld [vmem:[%s1289_s13 + $0x14] ss:$8 sps:$4 sm:$0xff]  }
  0x10   : > { %574 = vmatprep.mubr.bf16.mxu0 %v1164_v11  ;;  %v1158_v13 = vld [vmem:[%s1485_s1 + $0x48] sm:$0xff]   ;;  %v1160_v16 = vld [vmem:[%s1485_s1 + $0x40] sm:$0xff]   ;;  %v1180_v21 = vld [vmem:[%s1289_s13 + $0x94] ss:$8 sps:$4 sm:$0xff]  }
  0x11   : > { %1013 = vmatpush3.bf16.msra.mxu0 %v1149_v3  ;;  %1131 = vmatpush3.bf16.msra.mxu1 %v1149_v3  ;;  %v1176_v14 = vld [vmem:[%s1289_s13 + $0x84] ss:$8 sps:$4 sm:$0xff]   ;;  %v1174_v20 = vld [vmem:[%s1289_s13 + $0x80] ss:$8 sps:$4 sm:$0xff]   ;;  %v1167_v22 = vld [vmem:[%s1289_s13 + $0x10] ss:$8 sps:$4 sm:$0xff]  }
  0x12   : > { %1014 = vmatprep.subr.bf16.mxu0 %v1150_v4  ;;  %1124 = vmatprep.subr.bf16.mxu1 %v1150_v4  ;;  %v1159_v15 = vld [vmem:[%s1485_s1 + $0x8] sm:$0xff]   ;;  %v1161_v17 = vld [vmem:[%s1485_s1] sm:$0xff]   ;;  %v1182_v24 = vld [vmem:[%s1289_s13 + $0x90] ss:$8 sps:$4 sm:$0xff]  }
  0x13   : > { %638 = vmatprep.mubr.bf16.mxu1 %v1176_v14  ;;  %v1168_v23 = vld [vmem:[%s1289_s13 + $0x24] ss:$8 sps:$4 sm:$0xff]   ;;  %v1170_v26 = vld [vmem:[%s1289_s13 + $0x20] ss:$8 sps:$4 sm:$0xff]   ;;  %v1171_v27 = vld [vmem:[%s1289_s13 + $0x34] ss:$8 sps:$4 sm:$0xff]  }
  0x14   : > { %v1186_v25 = vld [vmem:[%s1289_s13 + $0xa4] ss:$8 sps:$4 sm:$0xff]   ;;  %v1188_v28 = vld [vmem:[%s1289_s13 + $0xa0] ss:$8 sps:$4 sm:$0xff]   ;;  %v1192_v29 = vld [vmem:[%s1289_s13 + $0xb4] ss:$8 sps:$4 sm:$0xff]  }
  0x15   : > { %1015 = vmatpush3.bf16.msra.mxu0 %v1151_v5  ;;  %1132 = vmatpush3.bf16.msra.mxu1 %v1151_v5  ;;  %v1173_v30 = vld [vmem:[%s1289_s13 + $0x30] ss:$8 sps:$4 sm:$0xff]   ;;  %v1177_v31 = vld [vmem:[%s1289_s13 + $0x44] ss:$8 sps:$4 sm:$0xff]   ;;  %v1179_v34 = vld [vmem:[%s1289_s13 + $0x40] ss:$8 sps:$4 sm:$0xff]  }
  0x16   : > { %1016 = vmatprep.subr.bf16.mxu0 %v1152_v6  ;;  %1125 = vmatprep.subr.bf16.mxu1 %v1152_v6  ;;  %v1194_v32 = vld [vmem:[%s1289_s13 + $0xb0] ss:$8 sps:$4 sm:$0xff]   ;;  %v1198_v33 = vld [vmem:[%s1289_s13 + $0xc4] ss:$8 sps:$4 sm:$0xff]   ;;  %v1183_v35 = vld [vmem:[%s1289_s13 + $0x54] ss:$8 sps:$4 sm:$0xff]  }
  0x17   : > { %v1200_v36 = vld [vmem:[%s1289_s13 + $0xc0] ss:$8 sps:$4 sm:$0xff]   ;;  %v1201_v37 = vld [vmem:[%s1289_s13 + $0xd4] ss:$8 sps:$4 sm:$0xff]   ;;  %v1185_v38 = vld [vmem:[%s1289_s13 + $0x50] ss:$8 sps:$4 sm:$0xff]  }
  0x18   : > { %v1189_v39 = vld [vmem:[%s1289_s13 + $0x64] ss:$8 sps:$4 sm:$0xff]   ;;  %v1203_v40 = vld [vmem:[%s1289_s13 + $0xd0] ss:$8 sps:$4 sm:$0xff]   ;;  %v1191_v42 = vld [vmem:[%s1289_s13 + $0x60] ss:$8 sps:$4 sm:$0xff]  }
  0x19   : > { %1017 = vmatpush3.bf16.msra.mxu0 %v1153_v7  ;;  %1133 = vmatpush3.bf16.msra.mxu1 %v1153_v7  ;;  %v1204_v41 = vld [vmem:[%s1289_s13 + $0xe4] ss:$8 sps:$4 sm:$0xff]   ;;  %v1195_v43 = vld [vmem:[%s1289_s13 + $0x74] ss:$8 sps:$4 sm:$0xff]   ;;  %v1206_v44 = vld [vmem:[%s1289_s13 + $0xe0] ss:$8 sps:$4 sm:$0xff]  }
  0x1a   : > { %1018 = vmatprep.subr.bf16.mxu0 %v1154_v8  ;;  %1126 = vmatprep.subr.bf16.mxu1 %v1154_v8  ;;  %v1207_v45 = vld [vmem:[%s1289_s13 + $0xf4] ss:$8 sps:$4 sm:$0xff]   ;;  %v1197_v46 = vld [vmem:[%s1289_s13 + $0x70] ss:$8 sps:$4 sm:$0xff]  }
  0x1b   : > { %v1209_v47 = vld [vmem:[%s1289_s13 + $0xf0] ss:$8 sps:$4 sm:$0xff]  }
  0x1d   : > { %1019 = vmatpush3.bf16.msra.mxu0 %v1155_v9  ;;  %1134 = vmatpush3.bf16.msra.mxu1 %v1155_v9 }
  0x1e   : > { %1020 = vmatprep.subr.bf16.mxu0 %v1156_v10  ;;  %1127 = vmatprep.subr.bf16.mxu1 %v1156_v10 }
  0x21   : > { %1021 = vmatpush3.bf16.msra.mxu0 %v1157_v12  ;;  %1135 = vmatpush3.bf16.msra.mxu1 %v1157_v12 }
  0x22   : > { %1022 = vmatprep.subr.bf16.mxu0 %v1158_v13  ;;  %1128 = vmatprep.subr.bf16.mxu1 %v1158_v13 }
  0x25   : > { %1023 = vmatpush3.bf16.msra.mxu0 %v1159_v15  ;;  %1136 = vmatpush3.bf16.msra.mxu1 %v1159_v15 }
  0x26   : > { %1024 = vmatprep.subr.bf16.mxu0 %v1160_v16  ;;  %1129 = vmatprep.subr.bf16.mxu1 %v1160_v16 }
  0x29   : > { %1025 = vmatpush3.bf16.msra.mxu0 %v1161_v17  ;;  %1137 = vmatpush3.bf16.msra.mxu1 %v1161_v17 }
  0x2c   : > { %575 = vmatmul.mubr.bf16.vlgmr.msra.gmra.mxu0 %v1162_v18  ;;  %639 = vmatmul.mubr.bf16.vlgmr.msra.gmra.mxu1 %v1174_v20 }
  0x2d   : > { %582 = vmatprep.mubr.bf16.mxu0 %v1165_v19  ;;  %646 = vmatprep.mubr.bf16.mxu1 %v1180_v21 }
  0x34   : > { %583 = vmatmul.mubr.bf16.gmra.mxu0 %v1167_v22  ;;  %647 = vmatmul.mubr.bf16.gmra.mxu1 %v1182_v24 }
  0x35   : > { %590 = vmatprep.mubr.bf16.mxu0 %v1168_v23  ;;  %654 = vmatprep.mubr.bf16.mxu1 %v1186_v25 }
  0x3c   : > { %591 = vmatmul.mubr.bf16.gmra.mxu0 %v1170_v26  ;;  %655 = vmatmul.mubr.bf16.gmra.mxu1 %v1188_v28 }
  0x3d   : > { %598 = vmatprep.mubr.bf16.mxu0 %v1171_v27  ;;  %662 = vmatprep.mubr.bf16.mxu1 %v1192_v29 }
  0x44   : > { %599 = vmatmul.mubr.bf16.gmra.mxu0 %v1173_v30  ;;  %663 = vmatmul.mubr.bf16.gmra.mxu1 %v1194_v32 }
  0x45   : > { %606 = vmatprep.mubr.bf16.mxu0 %v1177_v31  ;;  %670 = vmatprep.mubr.bf16.mxu1 %v1198_v33 }
  0x4c   : > { %607 = vmatmul.mubr.bf16.gmra.mxu0 %v1179_v34  ;;  %671 = vmatmul.mubr.bf16.gmra.mxu1 %v1200_v36 }
  0x4d   : > { %614 = vmatprep.mubr.bf16.mxu0 %v1183_v35  ;;  %678 = vmatprep.mubr.bf16.mxu1 %v1201_v37 }
  0x54   : > { %615 = vmatmul.mubr.bf16.gmra.mxu0 %v1185_v38  ;;  %679 = vmatmul.mubr.bf16.gmra.mxu1 %v1203_v40 }
  0x55   : > { %622 = vmatprep.mubr.bf16.mxu0 %v1189_v39  ;;  %686 = vmatprep.mubr.bf16.mxu1 %v1204_v41 }
  0x5c   : > { %623 = vmatmul.mubr.bf16.gmra.mxu0 %v1191_v42  ;;  %687 = vmatmul.mubr.bf16.gmra.mxu1 %v1206_v44 }
  0x5d   : > { %630 = vmatprep.mubr.bf16.mxu0 %v1195_v43  ;;  %694 = vmatprep.mubr.bf16.mxu1 %v1207_v45 }
  0x64   : > { %631 = vmatmul.mubr.bf16.gmra.mxu0 %v1197_v46  ;;  %695 = vmatmul.mubr.bf16.gmra.mxu1 %v1209_v47 }
  0xec   : > { %v1026_v48 = vpop.f32.mrf.mxu0  ;;  %v1074_v49 = vpop.f32.mrf.mxu1 }
  0xee   : > { %v1027_v50 = vpop.f32.mrf.mxu0  ;;  %v1075_v52 = vpop.f32.mrf.mxu1 }
  0xef   : > { %v1351_v51 = vadd.f32 %v1027_v50, %v1026_v48  ;;  %v1353_v54 = vadd.f32 %v1075_v52, %v1074_v49 }
  0xf0   : > { %v1029_v53 = vpop.f32.mrf.mxu0  ;;  %v1077_v55 = vpop.f32.mrf.mxu1 }
  0xf1   : > { %703 = vst [vmem:[%s1349_s7] sm:$0xff] %v1351_v51  ;;  %719 = vst [vmem:[%s1349_s7 + $0x80] sm:$0xff] %v1353_v54  ;;  %v773_v40 = vmul.f32 %v1351_v51, %v1351_v51 }
  0xf2   : > { %v1030_v56 = vpop.f32.mrf.mxu0  ;;  %v1078_v58 = vpop.f32.mrf.mxu1 }
  0xf3   : > { %v1031_v57 = vadd.f32 %v1030_v56, %v1029_v53  ;;  %v1359_v60 = vadd.f32 %v1078_v58, %v1077_v55 }
  0xf4   : > { %v1032_v59 = vpop.f32.mrf.mxu0  ;;  %v1080_v61 = vpop.f32.mrf.mxu1 }
  0xf5   : > { %704 = vst [vmem:[%s1349_s7 + $0x8] sm:$0xff] %v1031_v57  ;;  %720 = vst [vmem:[%s1349_s7 + $0x88] sm:$0xff] %v1359_v60  ;;  %v774_v35 = vmul.f32 %v1031_v57, %v1031_v57  ;;  %v735_v41 = vadd.f32 %v1031_v57, %v1351_v51 }
  0xf6   : > { %v1033_v62 = vpop.f32.mrf.mxu0  ;;  %v1081_v0 = vpop.f32.mrf.mxu1 }
  0xf7   : > { %v1034_v63 = vadd.f32 %v1033_v62, %v1032_v59  ;;  %v1364_v2 = vadd.f32 %v1081_v0, %v1080_v61  ;;  %v805_v45 = vadd.f32 %v774_v35, %v773_v40 }
  0xf8   : > { %v1035_v1 = vpop.f32.mrf.mxu0  ;;  %v1083_v3 = vpop.f32.mrf.mxu1 }
  0xf9   : > { %705 = vst [vmem:[%s1349_s7 + $0x10] sm:$0xff] %v1034_v63  ;;  %721 = vst [vmem:[%s1349_s7 + $0x90] sm:$0xff] %v1364_v2  ;;  %v775_v42 = vmul.f32 %v1034_v63, %v1034_v63  ;;  %v736_v46 = vadd.f32 %v1034_v63, %v735_v41 }
  0xfa   : > { %v1036_v4 = vpop.f32.mrf.mxu0  ;;  %v1084_v6 = vpop.f32.mrf.mxu1 }
  0xfb   : > { %v1037_v5 = vadd.f32 %v1036_v4, %v1035_v1  ;;  %v1369_v8 = vadd.f32 %v1084_v6, %v1083_v3  ;;  %v806_v53 = vadd.f32 %v805_v45, %v775_v42 }
  0xfc   : > { %v1038_v7 = vpop.f32.mrf.mxu0  ;;  %v1086_v9 = vpop.f32.mrf.mxu1 }
  0xfd   : > { %706 = vst [vmem:[%s1349_s7 + $0x18] sm:$0xff] %v1037_v5  ;;  %722 = vst [vmem:[%s1349_s7 + $0x98] sm:$0xff] %v1369_v8  ;;  %v776_v47 = vmul.f32 %v1037_v5, %v1037_v5  ;;  %v737_v55 = vadd.f32 %v1037_v5, %v736_v46 }
  0xfe   : > { %v1039_v10 = vpop.f32.mrf.mxu0  ;;  %v1087_v12 = vpop.f32.mrf.mxu1 }
  0xff   : > { %v1040_v11 = vadd.f32 %v1039_v10, %v1038_v7  ;;  %v1374_v14 = vadd.f32 %v1087_v12, %v1086_v9  ;;  %v807_v58 = vadd.f32 %v806_v53, %v776_v47 }
 0x100   : > { %v1041_v13 = vpop.f32.mrf.mxu0  ;;  %v1089_v15 = vpop.f32.mrf.mxu1 }
 0x101   : > { %707 = vst [vmem:[%s1349_s7 + $0x20] sm:$0xff] %v1040_v11  ;;  %723 = vst [vmem:[%s1349_s7 + $0xa0] sm:$0xff] %v1374_v14  ;;  %v777_v51 = vmul.f32 %v1040_v11, %v1040_v11  ;;  %v738_v59 = vadd.f32 %v1040_v11, %v737_v55 }
 0x102   : > { %v1042_v16 = vpop.f32.mrf.mxu0  ;;  %v1090_v18 = vpop.f32.mrf.mxu1 }
 0x103   : > { %v1043_v17 = vadd.f32 %v1042_v16, %v1041_v13  ;;  %v1379_v20 = vadd.f32 %v1090_v18, %v1089_v15  ;;  %v808_v3 = vadd.f32 %v807_v58, %v777_v51 }
 0x104   : > { %v1044_v19 = vpop.f32.mrf.mxu0  ;;  %v1092_v21 = vpop.f32.mrf.mxu1 }
 0x105   : > { %708 = vst [vmem:[%s1349_s7 + $0x28] sm:$0xff] %v1043_v17  ;;  %724 = vst [vmem:[%s1349_s7 + $0xa8] sm:$0xff] %v1379_v20  ;;  %v778_v61 = vmul.f32 %v1043_v17, %v1043_v17  ;;  %v739_v4 = vadd.f32 %v1043_v17, %v738_v59 }
 0x106   : > { %v1045_v22 = vpop.f32.mrf.mxu0  ;;  %v1093_v24 = vpop.f32.mrf.mxu1 }
 0x107   : > { %v1046_v23 = vadd.f32 %v1045_v22, %v1044_v19  ;;  %v1384_v26 = vadd.f32 %v1093_v24, %v1092_v21  ;;  %v809_v9 = vadd.f32 %v808_v3, %v778_v61 }
 0x108   : > { %v1047_v25 = vpop.f32.mrf.mxu0  ;;  %v1095_v27 = vpop.f32.mrf.mxu1 }
 0x109   : > { %709 = vst [vmem:[%s1349_s7 + $0x30] sm:$0xff] %v1046_v23  ;;  %725 = vst [vmem:[%s1349_s7 + $0xb0] sm:$0xff] %v1384_v26  ;;  %v779_v5 = vmul.f32 %v1046_v23, %v1046_v23  ;;  %v740_v10 = vadd.f32 %v1046_v23, %v739_v4 }
 0x10a   : > { %v1048_v28 = vpop.f32.mrf.mxu0  ;;  %v1096_v30 = vpop.f32.mrf.mxu1 }
 0x10b   : > { %v1049_v29 = vadd.f32 %v1048_v28, %v1047_v25  ;;  %v1389_v32 = vadd.f32 %v1096_v30, %v1095_v27  ;;  %v810_v18 = vadd.f32 %v809_v9, %v779_v5 }
 0x10c   : > { %v1050_v31 = vpop.f32.mrf.mxu0  ;;  %v1098_v33 = vpop.f32.mrf.mxu1 }
 0x10d   : > { %710 = vst [vmem:[%s1349_s7 + $0x38] sm:$0xff] %v1049_v29  ;;  %726 = vst [vmem:[%s1349_s7 + $0xb8] sm:$0xff] %v1389_v32  ;;  %v780_v12 = vmul.f32 %v1049_v29, %v1049_v29  ;;  %v741_v19 = vadd.f32 %v1049_v29, %v740_v10 }
 0x10e   : > { %v1051_v34 = vpop.f32.mrf.mxu0  ;;  %v1099_v37 = vpop.f32.mrf.mxu1 }
 0x10f   : > { %v1052_v36 = vadd.f32 %v1051_v34, %v1050_v31  ;;  %v1394_v39 = vadd.f32 %v1099_v37, %v1098_v33  ;;  %v811_v24 = vadd.f32 %v810_v18, %v780_v12  ;;  %v790_v18 = vmul.f32 %v1359_v60, %v1359_v60 }
 0x110   : > { %v1053_v38 = vpop.f32.mrf.mxu0  ;;  %v1101_v43 = vpop.f32.mrf.mxu1 }
 0x111   : > { %711 = vst [vmem:[%s1349_s7 + $0x40] sm:$0xff] %v1052_v36  ;;  %727 = vst [vmem:[%s1349_s7 + $0xc0] sm:$0xff] %v1394_v39  ;;  %v781_v17 = vmul.f32 %v1052_v36, %v1052_v36  ;;  %v742_v25 = vadd.f32 %v1052_v36, %v741_v19 }
 0x112   : > { %v1054_v44 = vpop.f32.mrf.mxu0  ;;  %v1102_v49 = vpop.f32.mrf.mxu1 }
 0x113   : > { %v1055_v48 = vadd.f32 %v1054_v44, %v1053_v38  ;;  %v1402_v52 = vadd.f32 %v1102_v49, %v1101_v43  ;;  %v812_v33 = vadd.f32 %v811_v24, %v781_v17 }
 0x114   : > { %v1056_v50 = vpop.f32.mrf.mxu0  ;;  %v1104_v56 = vpop.f32.mrf.mxu1 }
 0x115   : > { %712 = vst [vmem:[%s1349_s7 + $0x48] sm:$0xff] %v1055_v48  ;;  %728 = vst [vmem:[%s1349_s7 + $0xc8] sm:$0xff] %v1402_v52  ;;  %v782_v27 = vmul.f32 %v1055_v48, %v1055_v48  ;;  %v743_v34 = vadd.f32 %v1055_v48, %v742_v25  ;;  %v792_v25 = vmul.f32 %v1369_v8, %v1369_v8 }
 0x116   : > { %v1057_v57 = vpop.f32.mrf.mxu0  ;;  %v1105_v63 = vpop.f32.mrf.mxu1 }
 0x117   : > { %v1058_v62 = vadd.f32 %v1057_v57, %v1056_v50  ;;  %v1407_v1 = vadd.f32 %v1105_v63, %v1104_v56  ;;  %v813_v38 = vadd.f32 %v812_v33, %v782_v27 }
 0x118   : > { %v1059_v0 = vpop.f32.mrf.mxu0  ;;  %v1107_v6 = vpop.f32.mrf.mxu1 }
 0x119   : > { %713 = vst [vmem:[%s1349_s7 + $0x50] sm:$0xff] %v1058_v62  ;;  %729 = vst [vmem:[%s1349_s7 + $0xd0] sm:$0xff] %v1407_v1  ;;  %v783_v29 = vmul.f32 %v1058_v62, %v1058_v62  ;;  %v744_v40 = vadd.f32 %v1058_v62, %v743_v34 }
 0x11a   : > { %v1060_v7 = vpop.f32.mrf.mxu0  ;;  %v1108_v13 = vpop.f32.mrf.mxu1 }
 0x11b   : > { %v1061_v11 = vadd.f32 %v1060_v7, %v1059_v0  ;;  %v1412_v16 = vadd.f32 %v1108_v13, %v1107_v6  ;;  %v814_v45 = vadd.f32 %v813_v38, %v783_v29 }
 0x11c   : > { %v1062_v15 = vpop.f32.mrf.mxu0  ;;  %v1110_v21 = vpop.f32.mrf.mxu1 }
 0x11d   : > { %714 = vst [vmem:[%s1349_s7 + $0x58] sm:$0xff] %v1061_v11  ;;  %730 = vst [vmem:[%s1349_s7 + $0xd8] sm:$0xff] %v1412_v16  ;;  %v784_v41 = vmul.f32 %v1061_v11, %v1061_v11  ;;  %v745_v46 = vadd.f32 %v1061_v11, %v744_v40  ;;  %v789_v11 = vmul.f32 %v1353_v54, %v1353_v54 }
 0x11e   : > { %v1063_v22 = vpop.f32.mrf.mxu0  ;;  %v1111_v28 = vpop.f32.mrf.mxu1 }
 0x11f   : > { %v1064_v23 = vadd.f32 %v1063_v22, %v1062_v15  ;;  %v1417_v31 = vadd.f32 %v1111_v28, %v1110_v21  ;;  %v815_v50 = vadd.f32 %v814_v45, %v784_v41  ;;  %v791_v21 = vmul.f32 %v1364_v2, %v1364_v2 }
 0x120   : > { %v1065_v30 = vpop.f32.mrf.mxu0  ;;  %v1113_v35 = vpop.f32.mrf.mxu1  ;;  %v799_v45 = vmul.f32 %v1407_v1, %v1407_v1 }
 0x121   : > { %715 = vst [vmem:[%s1349_s7 + $0x60] sm:$0xff] %v1064_v23  ;;  %731 = vst [vmem:[%s1349_s7 + $0xe0] sm:$0xff] %v1417_v31  ;;  %v785_v47 = vmul.f32 %v1064_v23, %v1064_v23  ;;  %v746_v53 = vadd.f32 %v1064_v23, %v745_v46 }
 0x122   : > { %v1066_v37 = vpop.f32.mrf.mxu0  ;;  %v1114_v42 = vpop.f32.mrf.mxu1 }
 0x123   : > { %v1067_v36 = vadd.f32 %v1066_v37, %v1065_v30  ;;  %v1422_v44 = vadd.f32 %v1114_v42, %v1113_v35  ;;  %v816_v59 = vadd.f32 %v815_v50, %v785_v47 }
 0x124   : > { %v1068_v43 = vpop.f32.mrf.mxu0  ;;  %v1116_v48 = vpop.f32.mrf.mxu1 }
 0x125   : > { %716 = vst [vmem:[%s1349_s7 + $0x68] sm:$0xff] %v1067_v36  ;;  %732 = vst [vmem:[%s1349_s7 + $0xe8] sm:$0xff] %v1422_v44  ;;  %v786_v55 = vmul.f32 %v1067_v36, %v1067_v36  ;;  %v747_v61 = vadd.f32 %v1067_v36, %v746_v53  ;;  %v798_v36 = vmul.f32 %v1402_v52, %v1402_v52 }
 0x126   : > { %v1069_v49 = vpop.f32.mrf.mxu0  ;;  %v1117_v56 = vpop.f32.mrf.mxu1 }
 0x127   : > { %v1070_v51 = vadd.f32 %v1069_v49, %v1068_v43  ;;  %v1118_v58 = vadd.f32 %v1117_v56, %v1116_v48  ;;  %v817_v3 = vadd.f32 %v816_v59, %v786_v55 }
 0x128   : > { %v1071_v57 = vpop.f32.mrf.mxu0  ;;  %v1119_v63 = vpop.f32.mrf.mxu1 }
 0x129   : > { %717 = vst [vmem:[%s1349_s7 + $0x70] sm:$0xff] %v1070_v51  ;;  %v787_v62 = vmul.f32 %v1070_v51, %v1070_v51  ;;  %733 = vst [vmem:[%s1349_s7 + $0xf0] sm:$0xff] %v1118_v58  ;;  %v748_v4 = vadd.f32 %v1070_v51, %v747_v61  ;;  %v803_v51 = vmul.f32 %v1118_v58, %v1118_v58 }
 0x12a   : > { %v1072_v0 = vpop.f32.mrf.mxu0  ;;  %v1120_v6 = vpop.f32.mrf.mxu1 }
 0x12b   : > { %v1073_v5 = vadd.f32 %v1072_v0, %v1071_v57  ;;  %v1121_v7 = vadd.f32 %v1120_v6, %v1119_v63  ;;  %v818_v9 = vadd.f32 %v817_v3, %v787_v62 }
 0x12d   : > { %718 = vst [vmem:[%s1349_s7 + $0x78] sm:$0xff] %v1073_v5  ;;  %v749_v10 = vadd.f32 %v1073_v5, %v748_v4  ;;  %v788_v12 = vmul.f32 %v1073_v5, %v1073_v5  ;;  %734 = vst [vmem:[%s1349_s7 + $0xf8] sm:$0xff] %v1121_v7  ;;  %v804_v59 = vmul.f32 %v1121_v7, %v1121_v7 }
 0x12f   : > { %v750_v13 = vadd.f32 %v1353_v54, %v749_v10  ;;  %v819_v15 = vadd.f32 %v818_v9, %v788_v12  ;;  %v793_v54 = vmul.f32 %v1374_v14, %v1374_v14 }
 0x131   : > { %v751_v19 = vadd.f32 %v1359_v60, %v750_v13  ;;  %v820_v17 = vadd.f32 %v819_v15, %v789_v11  ;;  %v794_v60 = vmul.f32 %v1379_v20, %v1379_v20 }
 0x133   : > { %v752_v22 = vadd.f32 %v1364_v2, %v751_v19  ;;  %v821_v24 = vadd.f32 %v820_v17, %v790_v18  ;;  %v795_v2 = vmul.f32 %v1384_v26, %v1384_v26 }
 0x135   : > { %v753_v27 = vadd.f32 %v1369_v8, %v752_v22  ;;  %v822_v23 = vadd.f32 %v821_v24, %v791_v21  ;;  %v796_v8 = vmul.f32 %v1389_v32, %v1389_v32 }
 0x137   : > { %v823_v28 = vadd.f32 %v822_v23, %v792_v25  ;;  %v754_v30 = vadd.f32 %v1374_v14, %v753_v27  ;;  %v797_v14 = vmul.f32 %v1394_v39, %v1394_v39 }
 0x139   : > { %v755_v33 = vadd.f32 %v1379_v20, %v754_v30  ;;  %v824_v34 = vadd.f32 %v823_v28, %v793_v54 }
 0x13b   : > { %v756_v29 = vadd.f32 %v1384_v26, %v755_v33  ;;  %v825_v35 = vadd.f32 %v824_v34, %v794_v60 }
 0x13d   : > { %v757_v37 = vadd.f32 %v1389_v32, %v756_v29  ;;  %v826_v38 = vadd.f32 %v825_v35, %v795_v2 }
 0x13f   : > { %v758_v40 = vadd.f32 %v1394_v39, %v757_v37  ;;  %v827_v41 = vadd.f32 %v826_v38, %v796_v8  ;;  %v800_v39 = vmul.f32 %v1412_v16, %v1412_v16 }
 0x141   : > { %v759_v20 = vadd.f32 %v1402_v52, %v758_v40  ;;  %v828_v42 = vadd.f32 %v827_v41, %v797_v14  ;;  %v801_v52 = vmul.f32 %v1417_v31, %v1417_v31 }
 0x143   : > { %v829_v26 = vadd.f32 %v828_v42, %v798_v36  ;;  %v760_v43 = vadd.f32 %v1407_v1, %v759_v20  ;;  %v802_v1 = vmul.f32 %v1422_v44, %v1422_v44 }
 0x145   : > { %v830_v32 = vadd.f32 %v829_v26, %v799_v45  ;;  %v761_v46 = vadd.f32 %v1412_v16, %v760_v43 }
 0x147   : > { %v831_v47 = vadd.f32 %v830_v32, %v800_v39  ;;  %v762_v48 = vadd.f32 %v1417_v31, %v761_v46 }
 0x149   : > { %v832_v49 = vadd.f32 %v831_v47, %v801_v52  ;;  %v763_v50 = vadd.f32 %v1422_v44, %v762_v48 }
 0x14b   : > { %v833_v53 = vadd.f32 %v832_v49, %v802_v1  ;;  %v764_v55 = vadd.f32 %v1118_v58, %v763_v50 }
 0x14d   : > { %v834_v56 = vadd.f32 %v833_v53, %v803_v51  ;;  %v765_v57 = vadd.f32 %v1121_v7, %v764_v55 }
 0x14f   : > { %v766_v16 = vrot.slane %v765_v57, 4  ;;  %v835_v61 = vadd.f32 %v834_v56, %v804_v59 }
 0x151   : > { %v767_v62 = vadd.f32 %v766_v16, %v765_v57  ;;  %v836_v63 = vrot.slane %v835_v61, 4 }
 0x153   : > { %v768_v0 = vrot.slane %v767_v62, 2  ;;  %v837_v31 = vadd.f32 %v836_v63, %v835_v61 }
 0x155   : > { %v769_v3 = vadd.f32 %v768_v0, %v767_v62  ;;  %v838_v4 = vrot.slane %v837_v31, 2 }
 0x157   : > { %v770_v5 = vrot.slane %v769_v3, 1  ;;  %v839_v6 = vadd.f32 %v838_v4, %v837_v31 }
 0x159   : > { %v771_v44 = vadd.f32 %v770_v5, %v769_v3  ;;  %v840_v58 = vrot.slane %v839_v6, 1 }
 0x15b   : > { %772 = vst [vmem:[%s217_s9] sm:$0x1] %v771_v44  ;;  %v841_v7 = vadd.f32 %v840_v58, %v839_v6 }
 0x15d   : > { %842 = vst [vmem:[%s220_s12] sm:$0x1] %v841_v7 }
 0x15e PF: > { %s15_s15 = sadd.s32 1, %s1216_s15  }
 0x15f   : > { %p12_p5 = scmp.ge.s32.totalorder %s15_s15, 10  }
 0x161   :  { %14 = sbr.rel (!%p12_p5) target bundleno = 1 (0x1), region = 82 }

// kernel: generator_forward.16
= control target key start
LH: loop header
LB: loop body
LE: loop exit
PB: predicated region body
PF: predicated region fallthrough
CT: control target
= control target key end

     0   :  { %s453_s12 = smov 0   ;;  %s612_s0 = inlined_call_operand.vmem [shape: f32[2048,128], index: 0, kind: input, shape index: {}]   ;;  %s613_s1 = inlined_call_operand.vmem [shape: f32[1,128], index: 1, kind: input, shape index: {}]   ;;  %s614_s2 = inlined_call_operand.vmem [shape: f32[1,128], index: 2, kind: input, shape index: {}]   ;;  %s615_s3 = inlined_call_operand.vmem [shape: f32[2048,128], index: 3, kind: output, shape index: {}]  }
   0x1 LB: > { %s404_s13 = sadd.s32 4294967295, %s431_s12   ;;  %p408_p0 = scmp.ge.s32.totalorder %s431_s12, 1  ;;  %s431_s12 = sphi %s453_s12, %s13_s12  }
   0x2   : > { %p138_p1 = scmp.lt.s32.totalorder %s431_s12, 9 }
   0x4   : > { %p139_p2 = pnand %p408_p0, %p138_p1 }
   0x5   : > { %s409_s14 = sshll.u32 (!%p139_p2), %s404_s13, 5 }
   0x6   : > { %142 = sbr.rel (%p139_p2) target bundleno = 44 (0x2c), region = 32  ;;  %p163_p3 = scmp.lt.s32.totalorder (!%p139_p2), %s409_s14, 255 }
   0xb   : > { %s617_s14 = smov (!%p163_p3, %s409_s14), 255  ;;  %v464_v0 = vld [vmem:[%s613_s1] ss:$0 sm:$0xff] }
   0xc   : > { %s410_s15 = sshll.u32 %s617_s14, 3  ;;  %v474_v1 = vld [vmem:[%s614_s2] ss:$0 sm:$0xff] }
   0xd   : > { %s469_s20 = scalar_lea.vmem %s612_s0, %s410_s15  ;;  %s497_s25 = scalar_lea.vmem %s615_s3, %s410_s15 }
   0xe   : > { %v174_v2 = vld [vmem:[%s469_s20] sm:$0xff]  ;;  %v175_v3 = vld [vmem:[%s469_s20 + $0x8] sm:$0xff]  ;;  %v176_v4 = vld [vmem:[%s469_s20 + $0x10] sm:$0xff] }
   0xf   : > { %v213_v5 = vmul.f32 %v464_v0, %v174_v2  ;;  %v214_v6 = vmul.f32 %v464_v0, %v175_v3  ;;  %v215_v7 = vmul.f32 %v464_v0, %v176_v4  ;;  %v177_v8 = vld [vmem:[%s469_s20 + $0x18] sm:$0xff]  ;;  %v178_v9 = vld [vmem:[%s469_s20 + $0x20] sm:$0xff]  ;;  %v179_v10 = vld [vmem:[%s469_s20 + $0x28] sm:$0xff] }
  0x10   : > { %v216_v11 = vmul.f32 %v464_v0, %v177_v8  ;;  %v217_v12 = vmul.f32 %v464_v0, %v178_v9  ;;  %v218_v13 = vmul.f32 %v464_v0, %v179_v10  ;;  %v180_v14 = vld [vmem:[%s469_s20 + $0x30] sm:$0xff]  ;;  %v181_v15 = vld [vmem:[%s469_s20 + $0x38] sm:$0xff]  ;;  %v182_v24 = vld [vmem:[%s469_s20 + $0x40] sm:$0xff] }
  0x11   : > { %v252_v16 = vadd.f32 %v474_v1, %v213_v5  ;;  %v253_v17 = vadd.f32 %v474_v1, %v214_v6  ;;  %v254_v18 = vadd.f32 %v474_v1, %v215_v7  ;;  %v219_v19 = vmul.f32 %v464_v0, %v180_v14  ;;  %v183_v25 = vld [vmem:[%s469_s20 + $0x48] sm:$0xff]  ;;  %v184_v26 = vld [vmem:[%s469_s20 + $0x50] sm:$0xff]  ;;  %v185_v31 = vld [vmem:[%s469_s20 + $0x58] sm:$0xff] }
  0x12   : > { %v255_v20 = vadd.f32 %v474_v1, %v216_v11  ;;  %v256_v21 = vadd.f32 %v474_v1, %v217_v12  ;;  %v257_v22 = vadd.f32 %v474_v1, %v218_v13  ;;  %v220_v23 = vmul.f32 %v464_v0, %v181_v15  ;;  %v186_v32 = vld [vmem:[%s469_s20 + $0x60] sm:$0xff]  ;;  %v187_v33 = vld [vmem:[%s469_s20 + $0x68] sm:$0xff]  ;;  %v188_v38 = vld [vmem:[%s469_s20 + $0x70] sm:$0xff] }
  0x13   : > { %v284_v27 = vmax.f32 %v252_v16, 0.0  ;;  %v285_v28 = vmax.f32 %v253_v17, 0.0  ;;  %v286_v29 = vmax.f32 %v254_v18, 0.0  ;;  %v258_v30 = vadd.f32 %v474_v1, %v219_v19  ;;  %v189_v43 = vld [vmem:[%s469_s20 + $0x78] sm:$0xff]  ;;  %v190_v56 = vld [vmem:[%s469_s20 + $0x80] sm:$0xff]  ;;  %v191_v57 = vld [vmem:[%s469_s20 + $0x88] sm:$0xff] }
  0x14   : > { %v287_v34 = vmax.f32 %v255_v20, 0.0  ;;  %v288_v35 = vmax.f32 %v256_v21, 0.0  ;;  %v289_v36 = vmax.f32 %v257_v22, 0.0  ;;  %v259_v37 = vadd.f32 %v474_v1, %v220_v23  ;;  %v192_v58 = vld [vmem:[%s469_s20 + $0x90] sm:$0xff]  ;;  %v193_v63 = vld [vmem:[%s469_s20 + $0x98] sm:$0xff]  ;;  %v194_v2 = vld [vmem:[%s469_s20 + $0xa0] sm:$0xff] }
  0x15   : > { %316 = vst [vmem:[%s497_s25] sm:$0xff] %v284_v27  ;;  %317 = vst [vmem:[%s497_s25 + $0x8] sm:$0xff] %v285_v28  ;;  %v290_v39 = vmax.f32 %v258_v30, 0.0  ;;  %v221_v40 = vmul.f32 %v464_v0, %v182_v24  ;;  %v222_v41 = vmul.f32 %v464_v0, %v183_v25  ;;  %v223_v42 = vmul.f32 %v464_v0, %v184_v26  ;;  %v195_v3 = vld [vmem:[%s469_s20 + $0xa8] sm:$0xff]  ;;  %v196_v8 = vld [vmem:[%s469_s20 + $0xb0] sm:$0xff] }
  0x16   : > { %318 = vst [vmem:[%s497_s25 + $0x10] sm:$0xff] %v286_v29  ;;  %319 = vst [vmem:[%s497_s25 + $0x18] sm:$0xff] %v287_v34  ;;  %v291_v44 = vmax.f32 %v259_v37, 0.0  ;;  %v224_v45 = vmul.f32 %v464_v0, %v185_v31  ;;  %v225_v46 = vmul.f32 %v464_v0, %v186_v32  ;;  %v226_v47 = vmul.f32 %v464_v0, %v187_v33  ;;  %v197_v13 = vld [vmem:[%s469_s20 + $0xb8] sm:$0xff]  ;;  %v198_v26 = vld [vmem:[%s469_s20 + $0xc0] sm:$0xff] }
  0x17   : > { %320 = vst [vmem:[%s497_s25 + $0x20] sm:$0xff] %v288_v35  ;;  %321 = vst [vmem:[%s497_s25 + $0x28] sm:$0xff] %v289_v36  ;;  %v260_v48 = vadd.f32 %v474_v1, %v221_v40  ;;  %v261_v49 = vadd.f32 %v474_v1, %v222_v41  ;;  %v262_v50 = vadd.f32 %v474_v1, %v223_v42  ;;  %v199_v27 = vld [vmem:[%s469_s20 + $0xc8] sm:$0xff]  ;;  %v200_v28 = vld [vmem:[%s469_s20 + $0xd0] sm:$0xff] }
  0x18   : > { %322 = vst [vmem:[%s497_s25 + $0x30] sm:$0xff] %v290_v39  ;;  %v227_v51 = vmul.f32 %v464_v0, %v188_v38  ;;  %323 = vst [vmem:[%s497_s25 + $0x38] sm:$0xff] %v291_v44  ;;  %v263_v52 = vadd.f32 %v474_v1, %v224_v45  ;;  %v264_v53 = vadd.f32 %v474_v1, %v225_v46  ;;  %v201_v33 = vld [vmem:[%s469_s20 + $0xd8] sm:$0xff]  ;;  %v202_v34 = vld [vmem:[%s469_s20 + $0xe0] sm:$0xff] }
  0x19   : > { %v265_v54 = vadd.f32 %v474_v1, %v226_v47  ;;  %v228_v55 = vmul.f32 %v464_v0, %v189_v43  ;;  %v292_v59 = vmax.f32 %v260_v48, 0.0  ;;  %v293_v60 = vmax.f32 %v261_v49, 0.0  ;;  %v203_v35 = vld [vmem:[%s469_s20 + $0xe8] sm:$0xff]  ;;  %v204_v40 = vld [vmem:[%s469_s20 + $0xf0] sm:$0xff]  ;;  %v205_v45 = vld [vmem:[%s469_s20 + $0xf8] sm:$0xff] }
  0x1a   : > { %v294_v61 = vmax.f32 %v262_v50, 0.0  ;;  %v266_v62 = vadd.f32 %v474_v1, %v227_v51  ;;  %v295_v4 = vmax.f32 %v263_v52, 0.0  ;;  %v296_v5 = vmax.f32 %v264_v53, 0.0 }
  0x1b   : > { %v297_v6 = vmax.f32 %v265_v54, 0.0  ;;  %v267_v7 = vadd.f32 %v474_v1, %v228_v55  ;;  %324 = vst [vmem:[%s497_s25 + $0x40] sm:$0xff] %v292_v59  ;;  %325 = vst [vmem:[%s497_s25 + $0x48] sm:$0xff] %v293_v60  ;;  %v229_v10 = vmul.f32 %v464_v0, %v190_v56  ;;  %v230_v11 = vmul.f32 %v464_v0, %v191_v57 }
  0x1c   : > { %326 = vst [vmem:[%s497_s25 + $0x50] sm:$0xff] %v294_v61  ;;  %v298_v9 = vmax.f32 %v266_v62, 0.0  ;;  %v231_v12 = vmul.f32 %v464_v0, %v192_v58  ;;  %327 = vst [vmem:[%s497_s25 + $0x58] sm:$0xff] %v295_v4  ;;  %v232_v15 = vmul.f32 %v464_v0, %v193_v63  ;;  %v233_v16 = vmul.f32 %v464_v0, %v194_v2 }
  0x1d   : > { %328 = vst [vmem:[%s497_s25 + $0x60] sm:$0xff] %v296_v5  ;;  %329 = vst [vmem:[%s497_s25 + $0x68] sm:$0xff] %v297_v6  ;;  %v299_v14 = vmax.f32 %v267_v7, 0.0  ;;  %v234_v17 = vmul.f32 %v464_v0, %v195_v3  ;;  %v268_v18 = vadd.f32 %v474_v1, %v229_v10  ;;  %v269_v19 = vadd.f32 %v474_v1, %v230_v11 }
  0x1e   : > { %330 = vst [vmem:[%s497_s25 + $0x70] sm:$0xff] %v298_v9  ;;  %v270_v20 = vadd.f32 %v474_v1, %v231_v12  ;;  %v235_v21 = vmul.f32 %v464_v0, %v196_v8  ;;  %v271_v22 = vadd.f32 %v474_v1, %v232_v15  ;;  %v272_v23 = vadd.f32 %v474_v1, %v233_v16 }
  0x1f   : > { %331 = vst [vmem:[%s497_s25 + $0x78] sm:$0xff] %v299_v14  ;;  %v273_v24 = vadd.f32 %v474_v1, %v234_v17  ;;  %v236_v25 = vmul.f32 %v464_v0, %v197_v13  ;;  %v300_v29 = vmax.f32 %v268_v18, 0.0  ;;  %v301_v30 = vmax.f32 %v269_v19, 0.0 }
  0x20   : > { %v302_v31 = vmax.f32 %v270_v20, 0.0  ;;  %v274_v32 = vadd.f32 %v474_v1, %v235_v21  ;;  %v303_v36 = vmax.f32 %v271_v22, 0.0  ;;  %v304_v37 = vmax.f32 %v272_v23, 0.0 }
  0x21   : > { %v305_v38 = vmax.f32 %v273_v24, 0.0  ;;  %v275_v39 = vadd.f32 %v474_v1, %v236_v25  ;;  %332 = vst [vmem:[%s497_s25 + $0x80] sm:$0xff] %v300_v29  ;;  %333 = vst [vmem:[%s497_s25 + $0x88] sm:$0xff] %v301_v30  ;;  %v237_v42 = vmul.f32 %v464_v0, %v198_v26  ;;  %v238_v43 = vmul.f32 %v464_v0, %v199_v27 }
  0x22   : > { %334 = vst [vmem:[%s497_s25 + $0x90] sm:$0xff] %v302_v31  ;;  %v306_v41 = vmax.f32 %v274_v32, 0.0  ;;  %v239_v44 = vmul.f32 %v464_v0, %v200_v28  ;;  %335 = vst [vmem:[%s497_s25 + $0x98] sm:$0xff] %v303_v36  ;;  %v240_v47 = vmul.f32 %v464_v0, %v201_v33  ;;  %v241_v48 = vmul.f32 %v464_v0, %v202_v34 }
  0x23   : > { %336 = vst [vmem:[%s497_s25 + $0xa0] sm:$0xff] %v304_v37  ;;  %337 = vst [vmem:[%s497_s25 + $0xa8] sm:$0xff] %v305_v38  ;;  %v307_v46 = vmax.f32 %v275_v39, 0.0  ;;  %v242_v49 = vmul.f32 %v464_v0, %v203_v35  ;;  %v276_v50 = vadd.f32 %v474_v1, %v237_v42  ;;  %v277_v51 = vadd.f32 %v474_v1, %v238_v43 }
  0x24   : > { %338 = vst [vmem:[%s497_s25 + $0xb0] sm:$0xff] %v306_v41  ;;  %v278_v52 = vadd.f32 %v474_v1, %v239_v44  ;;  %v243_v53 = vmul.f32 %v464_v0, %v204_v40  ;;  %v279_v54 = vadd.f32 %v474_v1, %v240_v47  ;;  %v280_v55 = vadd.f32 %v474_v1, %v241_v48 }
  0x25   : > { %339 = vst [vmem:[%s497_s25 + $0xb8] sm:$0xff] %v307_v46  ;;  %v281_v56 = vadd.f32 %v474_v1, %v242_v49  ;;  %v244_v57 = vmul.f32 %v464_v0, %v205_v45  ;;  %v308_v58 = vmax.f32 %v276_v50, 0.0  ;;  %v309_v59 = vmax.f32 %v277_v51, 0.0 }
  0x26   : > { %v310_v60 = vmax.f32 %v278_v52, 0.0  ;;  %v282_v61 = vadd.f32 %v474_v1, %v243_v53  ;;  %v311_v62 = vmax.f32 %v279_v54, 0.0  ;;  %v312_v63 = vmax.f32 %v280_v55, 0.0 }
  0x27   : > { %v313_v2 = vmax.f32 %v281_v56, 0.0  ;;  %v283_v3 = vadd.f32 %v474_v1, %v244_v57  ;;  %340 = vst [vmem:[%s497_s25 + $0xc0] sm:$0xff] %v308_v58  ;;  %341 = vst [vmem:[%s497_s25 + $0xc8] sm:$0xff] %v309_v59 }
  0x28   : > { %342 = vst [vmem:[%s497_s25 + $0xd0] sm:$0xff] %v310_v60  ;;  %v314_v4 = vmax.f32 %v282_v61, 0.0  ;;  %343 = vst [vmem:[%s497_s25 + $0xd8] sm:$0xff] %v311_v62 }
  0x29   : > { %344 = vst [vmem:[%s497_s25 + $0xe0] sm:$0xff] %v312_v63  ;;  %345 = vst [vmem:[%s497_s25 + $0xe8] sm:$0xff] %v313_v2  ;;  %v315_v0 = vmax.f32 %v283_v3, 0.0 }
  0x2a   : > { %346 = vst [vmem:[%s497_s25 + $0xf0] sm:$0xff] %v314_v4 }
  0x2b   : > { %347 = vst [vmem:[%s497_s25 + $0xf8] sm:$0xff] %v315_v0 }
  0x2c PF: > { %s13_s12 = sadd.s32 1, %s431_s12  }
  0x2d   : > { %p10_p4 = scmp.ge.s32.totalorder %s13_s12, 10  }
  0x2f   :  { %12 = sbr.rel (!%p10_p4) target bundleno = 1 (0x1), region = 62 }

// kernel: generator_forward.17
= control target key start
LH: loop header
LB: loop body
LE: loop exit
PB: predicated region body
PF: predicated region fallthrough
CT: control target
= control target key end

     0   :  { %s804_s9 = smov 0   ;;  %s896_s0 = inlined_call_operand.vmem [shape: bf16[2048,8], index: 0, kind: input, shape index: {}]   ;;  %s897_s1 = inlined_call_operand.vmem [shape: bf16[8,128], index: 1, kind: input, shape index: {}]   ;;  %s898_s2 = inlined_call_operand.vmem [shape: f32[2048,128], index: 2, kind: output, shape index: {}]  }
   0x1 LB: > { %s595_s10 = sadd.s32 4294967295, %s787_s9   ;;  %p599_p0 = scmp.ge.s32.totalorder %s787_s9, 1  ;;  %s787_s9 = sphi %s804_s9, %s12_s9  }
   0x2   : > { %p113_p1 = scmp.lt.s32.totalorder %s787_s9, 9 }
   0x4   : > { %p114_p2 = pnand %p599_p0, %p113_p1 }
   0x5   : > { %s600_s13 = sshll.u32 (!%p114_p2), %s595_s10, 5 }
   0x6   : > { %117 = sbr.rel (%p114_p2) target bundleno = 255 (0xff), region = 28  ;;  %p136_p3 = scmp.lt.s32.totalorder (!%p114_p2), %s600_s13, 255 }
   0xb   : > { %v180_v0 = vld [vmem:[%s897_s1] sm:$0xf]  ;;  %vm310_vm0 = vcmask 1043456   ;;  %s900_s13 = smov (!%p136_p3, %s600_s13), 255  ;;  %vm261_vm1 = vcmask 64512  }
   0xc   : > { %691 = vmatprep.subr.msk.bf16.mxu0 %vm310_vm0, %v180_v0  ;;  %692 = vmatprep.subr.msk.bf16.mxu1 %vm310_vm0, %v180_v0  ;;  %v312_v1 = vsel %vm310_vm0, %v180_v0, 0  ;;  %s601_s14 = sshll.u32 %s900_s13, 2  ;;  %s603_s18 = sshll.u32 %s900_s13, 3 }
   0xd   : > { %656 = vmatpush3.bf16.msra.mxu0 %v312_v1  ;;  %690 = vmatpush3.bf16.msra.mxu1 %v312_v1  ;;  %s821_s17 = scalar_lea.vmem %s896_s0, %s601_s14  ;;  %s859_s21 = scalar_lea.vmem %s898_s2, %s603_s18 }
   0xe   : > { %v701_v2 = vld [vmem:[%s821_s17] sm:$0xff]   ;;  %v703_v4 = vld [vmem:[%s821_s17 + $0x8] sm:$0xff]   ;;  %v705_v6 = vld [vmem:[%s821_s17 + $0x10] sm:$0xff]  }
   0xf   : > { %v702_v3 = vld [vmem:[%s821_s17 + $0x40] sm:$0xff]   ;;  %657 = vmatprep.mubr.msk.bf16.mxu0 %vm261_vm1, %v701_v2  ;;  %v704_v5 = vld [vmem:[%s821_s17 + $0x48] sm:$0xff]   ;;  %v706_v7 = vld [vmem:[%s821_s17 + $0x50] sm:$0xff]  }
  0x10   : > { %673 = vmatprep.mubr.msk.bf16.mxu1 %vm261_vm1, %v702_v3  ;;  %658 = vmatmul.mubr.msk.bf16.vlgmr.msra.gmra.mxu0 %vm261_vm1, %v703_v4  ;;  %v707_v8 = vld [vmem:[%s821_s17 + $0x18] sm:$0xff]   ;;  %v709_v10 = vld [vmem:[%s821_s17 + $0x20] sm:$0xff]   ;;  %v711_v12 = vld [vmem:[%s821_s17 + $0x28] sm:$0xff]  }
  0x11   : > { %674 = vmatmul.mubr.msk.bf16.vlgmr.msra.gmra.mxu1 %vm261_vm1, %v704_v5  ;;  %661 = vmatprep.mubr.msk.bf16.mxu0 %vm261_vm1, %v705_v6  ;;  %v708_v9 = vld [vmem:[%s821_s17 + $0x58] sm:$0xff]   ;;  %v710_v11 = vld [vmem:[%s821_s17 + $0x60] sm:$0xff]   ;;  %v712_v13 = vld [vmem:[%s821_s17 + $0x68] sm:$0xff]  }
  0x12   : > { %677 = vmatprep.mubr.msk.bf16.mxu1 %vm261_vm1, %v706_v7  ;;  %v713_v14 = vld [vmem:[%s821_s17 + $0x30] sm:$0xff]   ;;  %v715_v16 = vld [vmem:[%s821_s17 + $0x38] sm:$0xff]  }
  0x13   : > { %v714_v15 = vld [vmem:[%s821_s17 + $0x70] sm:$0xff]   ;;  %v716_v17 = vld [vmem:[%s821_s17 + $0x78] sm:$0xff]  }
  0x18   : > { %662 = vmatmul.mubr.msk.bf16.gmra.mxu0 %vm261_vm1, %v707_v8 }
  0x19   : > { %678 = vmatmul.mubr.msk.bf16.gmra.mxu1 %vm261_vm1, %v708_v9  ;;  %665 = vmatprep.mubr.msk.bf16.mxu0 %vm261_vm1, %v709_v10 }
  0x1a   : > { %681 = vmatprep.mubr.msk.bf16.mxu1 %vm261_vm1, %v710_v11 }
  0x20   : > { %666 = vmatmul.mubr.msk.bf16.gmra.mxu0 %vm261_vm1, %v711_v12 }
  0x21   : > { %682 = vmatmul.mubr.msk.bf16.gmra.mxu1 %vm261_vm1, %v712_v13  ;;  %669 = vmatprep.mubr.msk.bf16.mxu0 %vm261_vm1, %v713_v14 }
  0x22   : > { %685 = vmatprep.mubr.msk.bf16.mxu1 %vm261_vm1, %v714_v15 }
  0x28   : > { %670 = vmatmul.mubr.msk.bf16.gmra.mxu0 %vm261_vm1, %v715_v16 }
  0x29   : > { %686 = vmatmul.mubr.msk.bf16.gmra.mxu1 %vm261_vm1, %v716_v17 }
  0xd0   : > { %v659_v18 = vpop.f32.mrf.mxu0 }
  0xd1   : > { %717 = vtanh.f32 %v659_v18  ;;  %v675_v19 = vpop.f32.mrf.mxu1 }
  0xd2   : > { %719 = vtanh.f32 %v675_v19  ;;  %v348_v20 = vpop.f32.mrf.mxu0 }
  0xd3   : > { %721 = vtanh.f32 %v348_v20  ;;  %v412_v21 = vpop.f32.mrf.mxu1 }
  0xd4   : > { %723 = vtanh.f32 %v412_v21  ;;  %v660_v22 = vpop.f32.mrf.mxu0 }
  0xd5   : > { %725 = vtanh.f32 %v660_v22  ;;  %v676_v23 = vpop.f32.mrf.mxu1 }
  0xd6   : > { %727 = vtanh.f32 %v676_v23  ;;  %v351_v24 = vpop.f32.mrf.mxu0 }
  0xd7   : > { %729 = vtanh.f32 %v351_v24  ;;  %v415_v25 = vpop.f32.mrf.mxu1 }
  0xd8   : > { %731 = vtanh.f32 %v415_v25  ;;  %v663_v26 = vpop.f32.mrf.mxu0 }
  0xd9   : > { %733 = vtanh.f32 %v663_v26  ;;  %v679_v27 = vpop.f32.mrf.mxu1 }
  0xda   : > { %735 = vtanh.f32 %v679_v27  ;;  %v364_v28 = vpop.f32.mrf.mxu0 }
  0xdb   : > { %737 = vtanh.f32 %v364_v28  ;;  %v428_v29 = vpop.f32.mrf.mxu1 }
  0xdc   : > { %739 = vtanh.f32 %v428_v29  ;;  %v664_v30 = vpop.f32.mrf.mxu0 }
  0xdd   : > { %741 = vtanh.f32 %v664_v30  ;;  %v680_v31 = vpop.f32.mrf.mxu1 }
  0xde   : > { %v718_v32 = vpop.eup %717  ;;  %743 = vtanh.f32 %v680_v31  ;;  %v367_v33 = vpop.f32.mrf.mxu0 }
  0xdf   : > { %v720_v34 = vpop.eup %719  ;;  %509 = vst [vmem:[%s859_s21 + $0x10] sm:$0xff] %v718_v32  ;;  %745 = vtanh.f32 %v367_v33  ;;  %v431_v35 = vpop.f32.mrf.mxu1 }
  0xe0   : > { %v722_v36 = vpop.eup %721  ;;  %525 = vst [vmem:[%s859_s21 + $0x90] sm:$0xff] %v720_v34  ;;  %747 = vtanh.f32 %v431_v35  ;;  %v667_v37 = vpop.f32.mrf.mxu0 }
  0xe1   : > { %v724_v38 = vpop.eup %723  ;;  %507 = vst [vmem:[%s859_s21] sm:$0xff] %v722_v36  ;;  %749 = vtanh.f32 %v667_v37  ;;  %v683_v39 = vpop.f32.mrf.mxu1 }
  0xe2   : > { %v726_v40 = vpop.eup %725  ;;  %523 = vst [vmem:[%s859_s21 + $0x80] sm:$0xff] %v724_v38  ;;  %751 = vtanh.f32 %v683_v39  ;;  %v380_v41 = vpop.f32.mrf.mxu0 }
  0xe3   : > { %v728_v42 = vpop.eup %727  ;;  %510 = vst [vmem:[%s859_s21 + $0x18] sm:$0xff] %v726_v40  ;;  %753 = vtanh.f32 %v380_v41  ;;  %v444_v43 = vpop.f32.mrf.mxu1 }
  0xe4   : > { %v730_v44 = vpop.eup %729  ;;  %526 = vst [vmem:[%s859_s21 + $0x98] sm:$0xff] %v728_v42  ;;  %755 = vtanh.f32 %v444_v43  ;;  %v668_v45 = vpop.f32.mrf.mxu0 }
  0xe5   : > { %v732_v46 = vpop.eup %731  ;;  %508 = vst [vmem:[%s859_s21 + $0x8] sm:$0xff] %v730_v44  ;;  %757 = vtanh.f32 %v668_v45  ;;  %v684_v47 = vpop.f32.mrf.mxu1 }
  0xe6   : > { %v734_v48 = vpop.eup %733  ;;  %524 = vst [vmem:[%s859_s21 + $0x88] sm:$0xff] %v732_v46  ;;  %759 = vtanh.f32 %v684_v47  ;;  %v383_v49 = vpop.f32.mrf.mxu0 }
  0xe7   : > { %v736_v50 = vpop.eup %735  ;;  %513 = vst [vmem:[%s859_s21 + $0x30] sm:$0xff] %v734_v48  ;;  %761 = vtanh.f32 %v383_v49  ;;  %v447_v51 = vpop.f32.mrf.mxu1 }
  0xe8   : > { %v738_v52 = vpop.eup %737  ;;  %529 = vst [vmem:[%s859_s21 + $0xb0] sm:$0xff] %v736_v50  ;;  %763 = vtanh.f32 %v447_v51  ;;  %v671_v53 = vpop.f32.mrf.mxu0 }
  0xe9   : > { %v740_v54 = vpop.eup %739  ;;  %511 = vst [vmem:[%s859_s21 + $0x20] sm:$0xff] %v738_v52  ;;  %765 = vtanh.f32 %v671_v53  ;;  %v687_v55 = vpop.f32.mrf.mxu1 }
  0xea   : > { %v742_v56 = vpop.eup %741  ;;  %527 = vst [vmem:[%s859_s21 + $0xa0] sm:$0xff] %v740_v54  ;;  %767 = vtanh.f32 %v687_v55  ;;  %v396_v57 = vpop.f32.mrf.mxu0 }
  0xeb   : > { %v744_v58 = vpop.eup %743  ;;  %514 = vst [vmem:[%s859_s21 + $0x38] sm:$0xff] %v742_v56  ;;  %769 = vtanh.f32 %v396_v57  ;;  %v460_v59 = vpop.f32.mrf.mxu1 }
  0xec   : > { %v746_v60 = vpop.eup %745  ;;  %530 = vst [vmem:[%s859_s21 + $0xb8] sm:$0xff] %v744_v58  ;;  %771 = vtanh.f32 %v460_v59  ;;  %v672_v61 = vpop.f32.mrf.mxu0 }
  0xed   : > { %v748_v62 = vpop.eup %747  ;;  %512 = vst [vmem:[%s859_s21 + $0x28] sm:$0xff] %v746_v60  ;;  %773 = vtanh.f32 %v672_v61  ;;  %v688_v63 = vpop.f32.mrf.mxu1 }
  0xee   : > { %v750_v0 = vpop.eup %749  ;;  %528 = vst [vmem:[%s859_s21 + $0xa8] sm:$0xff] %v748_v62  ;;  %775 = vtanh.f32 %v688_v63  ;;  %v399_v1 = vpop.f32.mrf.mxu0 }
  0xef   : > { %v752_v2 = vpop.eup %751  ;;  %517 = vst [vmem:[%s859_s21 + $0x50] sm:$0xff] %v750_v0  ;;  %777 = vtanh.f32 %v399_v1  ;;  %v463_v3 = vpop.f32.mrf.mxu1 }
  0xf0   : > { %v754_v4 = vpop.eup %753  ;;  %533 = vst [vmem:[%s859_s21 + $0xd0] sm:$0xff] %v752_v2  ;;  %779 = vtanh.f32 %v463_v3 }
  0xf1   : > { %v756_v5 = vpop.eup %755  ;;  %515 = vst [vmem:[%s859_s21 + $0x40] sm:$0xff] %v754_v4 }
  0xf2   : > { %v758_v6 = vpop.eup %757  ;;  %531 = vst [vmem:[%s859_s21 + $0xc0] sm:$0xff] %v756_v5 }
  0xf3   : > { %v760_v7 = vpop.eup %759  ;;  %518 = vst [vmem:[%s859_s21 + $0x58] sm:$0xff] %v758_v6 }
  0xf4   : > { %v762_v8 = vpop.eup %761  ;;  %534 = vst [vmem:[%s859_s21 + $0xd8] sm:$0xff] %v760_v7 }
  0xf5   : > { %v764_v9 = vpop.eup %763  ;;  %516 = vst [vmem:[%s859_s21 + $0x48] sm:$0xff] %v762_v8 }
  0xf6   : > { %v766_v10 = vpop.eup %765  ;;  %532 = vst [vmem:[%s859_s21 + $0xc8] sm:$0xff] %v764_v9 }
  0xf7   : > { %v768_v11 = vpop.eup %767  ;;  %521 = vst [vmem:[%s859_s21 + $0x70] sm:$0xff] %v766_v10 }
  0xf8   : > { %v770_v12 = vpop.eup %769  ;;  %537 = vst [vmem:[%s859_s21 + $0xf0] sm:$0xff] %v768_v11 }
  0xf9   : > { %v772_v13 = vpop.eup %771  ;;  %519 = vst [vmem:[%s859_s21 + $0x60] sm:$0xff] %v770_v12 }
  0xfa   : > { %v774_v14 = vpop.eup %773  ;;  %535 = vst [vmem:[%s859_s21 + $0xe0] sm:$0xff] %v772_v13 }
  0xfb   : > { %v776_v15 = vpop.eup %775  ;;  %522 = vst [vmem:[%s859_s21 + $0x78] sm:$0xff] %v774_v14 }
  0xfc   : > { %v778_v16 = vpop.eup %777  ;;  %538 = vst [vmem:[%s859_s21 + $0xf8] sm:$0xff] %v776_v15 }
  0xfd   : > { %v780_v17 = vpop.eup %779  ;;  %520 = vst [vmem:[%s859_s21 + $0x68] sm:$0xff] %v778_v16 }
  0xfe   : > { %536 = vst [vmem:[%s859_s21 + $0xe8] sm:$0xff] %v780_v17 }
  0xff PF: > { %s12_s9 = sadd.s32 1, %s787_s9  }
 0x100   : > { %p9_p4 = scmp.ge.s32.totalorder %s12_s9, 10  }
 0x102   :  { %11 = sbr.rel (!%p9_p4) target bundleno = 1 (0x1), region = 58 }

</bundles_post_ra>
